<compile_context>
chip_gen: v6e
topology: v6e:2x2x1
jax: 0.10.0
libtpu: 0.0.40
codegen_flags: <defaults>
</compile_context>

<pallas_src>
import functools

import jax
import jax.numpy as jnp
from jax.experimental import pallas as pl
from jax.experimental.pallas import tpu as pltpu


BN_EPS = 1e-5
LN_EPS = 1e-5
LANE = 128
# Conservative budget for the double-buffered conv input tile (safe on v7x's
# 64 MiB VMEM / 32 MiB scoped default as well as v5e/v6e).
_CONV_TILE_VMEM_BUDGET = 6 * 1024 * 1024
_CONV_VMEM_LIMIT = 32 * 1024 * 1024


def _round_up(a, m):
    return ((a + m - 1) // m) * m


# ---------------------------------------------------------------------------
# im2col glue (plain JAX, bf16): turns a 3-D conv into a matmul over Cin*k^3.
# ---------------------------------------------------------------------------
def im2col_3d(x, k, dil, pad):
    """x: (bs, C, D, H, W) -> patches (bs, C*k^3, D*H*W), 'same' output size."""
    bs, C, D, H, W = x.shape
    if k == 1:
        return x.reshape(bs, C, D * H * W)
    xp = jnp.pad(x, ((0, 0), (0, 0), (pad, pad), (pad, pad), (pad, pad)))
    cols = []
    for kd in range(k):
        for kh in range(k):
            for kw in range(k):
                od, oh, ow = kd * dil, kh * dil, kw * dil
                cols.append(xp[:, :, od:od + D, oh:oh + H, ow:ow + W])
    patches = jnp.stack(cols, axis=2)                 # (bs, C, k^3, D, H, W)
    return patches.reshape(bs, C * k * k * k, D * H * W)


# ---------------------------------------------------------------------------
# Pallas kernel 1: conv-as-matmul (bf16 operands, f32 accumulate), folded BN
# (eval) + optional ReLU.  out[c, n] = relu((W @ patches)[c, n]*scale[c]+shift[c])
# ---------------------------------------------------------------------------
def _conv_mm_kernel(w_ref, scale_ref, shift_ref, x_ref, o_ref, *, relu):
    acc = jnp.dot(w_ref[...], x_ref[0], preferred_element_type=jnp.float32)
    acc = acc * scale_ref[...] + shift_ref[...]
    if relu:
        acc = jnp.maximum(acc, 0.0)
    o_ref[0] = acc.astype(o_ref.dtype)


def conv3d_fused(x5, w_mat, scale, shift, *, k, dil, pad, relu,
                 out_dtype=jnp.bfloat16):
    """3-D conv (stride 1, 'same') as a tiled Pallas matmul.

    x5     : (bs, Cin, D, H, W)
    w_mat  : (Cout, Cin*k^3)   (rows may be a fusion of several conv heads)
    scale  : (Cout,)  folded-BN scale
    shift  : (Cout,)  folded-BN shift (+ conv bias)
    returns: (bs, Cout, D*H*W) in out_dtype
    """
    bs, Cin, D, H, W = x5.shape
    N = D * H * W
    Cout, K = w_mat.shape

    patches = im2col_3d(x5.astype(jnp.bfloat16), k, dil, pad)       # (bs, K, N)

    # Lane-tile the spatial axis; size the tile against a VMEM budget so the
    # double-buffered bf16 input tile + output tile fit on every generation.
    n_pad128 = _round_up(N, LANE)
    per_col_bytes = 2 * K * 2 + 2 * Cout * 4
    max_tile = max(LANE, (_CONV_TILE_VMEM_BUDGET // per_col_bytes) // LANE * LANE)
    tile_n = min(max_tile, 2048, n_pad128)
    n_pad = _round_up(N, tile_n)
    if n_pad != N:
        patches = jnp.pad(patches, ((0, 0), (0, 0), (0, n_pad - N)))

    out = pl.pallas_call(
        functools.partial(_conv_mm_kernel, relu=relu),
        out_shape=jax.ShapeDtypeStruct((bs, Cout, n_pad), out_dtype),
        grid=(bs, n_pad // tile_n),
        in_specs=[
            pl.BlockSpec((Cout, K), lambda b, j: (0, 0)),
            pl.BlockSpec((Cout, 1), lambda b, j: (0, 0)),
            pl.BlockSpec((Cout, 1), lambda b, j: (0, 0)),
            pl.BlockSpec((1, K, tile_n), lambda b, j: (b, 0, j)),
        ],
        out_specs=pl.BlockSpec((1, Cout, tile_n), lambda b, j: (b, 0, j)),
        compiler_params=pltpu.CompilerParams(
            dimension_semantics=("parallel", "parallel"),
            vmem_limit_bytes=_CONV_VMEM_LIMIT),
    )(w_mat.astype(jnp.bfloat16),
      scale.reshape(Cout, 1).astype(jnp.float32),
      shift.reshape(Cout, 1).astype(jnp.float32),
      patches)
    if n_pad != N:
        out = out[:, :, :N]
    return out


# ---------------------------------------------------------------------------
# Pallas kernel 2: channel (polarized) attention directly on the fused (q‖k)
# conv outputs: global softmax of k over the extended 3*DHW axis, softmax-
# weighted sum of q, 1x1 conv (inner_c -> C), LayerNorm over C, sigmoid, gate.
# ---------------------------------------------------------------------------
def _ch_attn_kernel(*args, n_k, inner_c):
    qk_refs = args[:n_k]
    wzw_ref, wzb_ref, lng_ref, lnb_ref, x_ref, o_ref = args[n_k:]

    # k rows (one per scale), global max over the extended axis
    k_rows = [r[0, inner_c:, :].astype(jnp.float32) for r in qk_refs]   # (1, N)
    m = jnp.max(k_rows[0], axis=-1, keepdims=True)
    for krow in k_rows[1:]:
        m = jnp.maximum(m, jnp.max(krow, axis=-1, keepdims=True))

    denom = jnp.zeros((1, 1), jnp.float32)
    z = jnp.zeros((inner_c, 1), jnp.float32)
    for r, krow in zip(qk_refs, k_rows):
        q = r[0, :inner_c, :].astype(jnp.float32)                       # (IC, N)
        e = jnp.exp(krow - m)                                           # (1, N)
        denom = denom + jnp.sum(e, axis=-1, keepdims=True)
        z = z + jnp.sum(q * e, axis=-1, keepdims=True)                  # (IC, 1)
    z = z / denom                                                       # softmax-weighted sum

    # 1x1x1 conv (inner_c -> C) + bias
    zc = jnp.dot(wzw_ref[...], z, preferred_element_type=jnp.float32) + wzb_ref[...]

    # LayerNorm over the channel axis (spatial dims singleton), eps=1e-5
    mu = jnp.mean(zc, axis=0, keepdims=True)
    var = jnp.mean(jnp.square(zc - mu), axis=0, keepdims=True)
    zn = (zc - mu) * jax.lax.rsqrt(var + LN_EPS)
    score = jax.nn.sigmoid(zn * lng_ref[...] + lnb_ref[...])            # (C, 1)

    o_ref[0] = (x_ref[0].astype(jnp.float32) * score).astype(o_ref.dtype)


def channel_attention(qk_list, wz_w, wz_b, ln_g, ln_b, xb, *, inner_c):
    n_k = len(qk_list)
    bs, C, N = xb.shape
    ic1 = inner_c + 1
    in_specs = [pl.BlockSpec((1, ic1, N), lambda b: (b, 0, 0)) for _ in range(n_k)]
    in_specs += [
        pl.BlockSpec((C, inner_c), lambda b: (0, 0)),
        pl.BlockSpec((C, 1), lambda b: (0, 0)),
        pl.BlockSpec((C, 1), lambda b: (0, 0)),
        pl.BlockSpec((C, 1), lambda b: (0, 0)),
        pl.BlockSpec((1, C, N), lambda b: (b, 0, 0)),
    ]
    return pl.pallas_call(
        functools.partial(_ch_attn_kernel, n_k=n_k, inner_c=inner_c),
        out_shape=jax.ShapeDtypeStruct((bs, C, N), jnp.bfloat16),
        grid=(bs,),
        in_specs=in_specs,
        out_specs=pl.BlockSpec((1, C, N), lambda b: (b, 0, 0)),
        compiler_params=pltpu.CompilerParams(dimension_semantics=("parallel",)),
    )(*qk_list, wz_w, wz_b, ln_g, ln_b, xb)


# ---------------------------------------------------------------------------
# Pallas kernel 3: spatial (polarized) attention directly on the fused (q‖k)
# conv outputs: spatial mean of k, softmax over 3*inner_c, weighted sum of q
# rows -> (1, N), sigmoid, gate ch_out.
# ---------------------------------------------------------------------------
def _sp_attn_kernel(*args, n_k, inner_c):
    qk_refs = args[:n_k]
    x_ref, o_ref = args[n_k], args[n_k + 1]

    kmeans = []
    for r in qk_refs:
        kk = r[0, inner_c:, :].astype(jnp.float32)                      # (IC, N)
        kmeans.append(jnp.mean(kk, axis=-1, keepdims=True))             # (IC, 1)
    m = jnp.max(kmeans[0], axis=0, keepdims=True)
    for km in kmeans[1:]:
        m = jnp.maximum(m, jnp.max(km, axis=0, keepdims=True))

    denom = jnp.zeros((1, 1), jnp.float32)
    wz = jnp.zeros((1, x_ref.shape[-1]), jnp.float32)
    for r, km in zip(qk_refs, kmeans):
        e = jnp.exp(km - m)                                             # (IC, 1)
        denom = denom + jnp.sum(e, axis=0, keepdims=True)
        q = r[0, :inner_c, :].astype(jnp.float32)                       # (IC, N)
        wz = wz + jnp.sum(e * q, axis=0, keepdims=True)                 # (1, N)

    score = jax.nn.sigmoid(wz / denom)
    o_ref[0] = (x_ref[0].astype(jnp.float32) * score).astype(o_ref.dtype)


def spatial_attention(qk_list, ch_out, *, inner_c):
    n_k = len(qk_list)
    bs, C, N = ch_out.shape
    ic2 = 2 * inner_c
    in_specs = [pl.BlockSpec((1, ic2, N), lambda b: (b, 0, 0)) for _ in range(n_k)]
    in_specs += [pl.BlockSpec((1, C, N), lambda b: (b, 0, 0))]
    return pl.pallas_call(
        functools.partial(_sp_attn_kernel, n_k=n_k, inner_c=inner_c),
        out_shape=jax.ShapeDtypeStruct((bs, C, N), jnp.float32),
        grid=(bs,),
        in_specs=in_specs,
        out_specs=pl.BlockSpec((1, C, N), lambda b: (b, 0, 0)),
        compiler_params=pltpu.CompilerParams(dimension_semantics=("parallel",)),
    )(*qk_list, ch_out)


# ---------------------------------------------------------------------------
# Model: parameter init (BN in eval mode with default stats) + forward pass.
# ---------------------------------------------------------------------------
def make_model(in_channel, channel, kernels=(1, 3, 5), r=4):
    n_k = len(kernels)
    inner_c = max(4, channel // (n_k * r))
    ks = tuple(3 if k > 1 else 1 for k in kernels)
    pads = tuple((k - 1) // 2 for k in kernels)
    dils = tuple(1 if k < 3 else (k - 1) // 2 for k in kernels)

    def init(key):
        keys = iter(jax.random.split(key, 128))

        def w(shape, s=0.1):
            return jax.random.normal(next(keys), shape, jnp.float32) * s

        def bn(c):
            return dict(g=jnp.ones((c,), jnp.float32), b=jnp.zeros((c,), jnp.float32),
                        m=jnp.zeros((c,), jnp.float32), v=jnp.ones((c,), jnp.float32))

        return dict(
            basic_w=w((channel, in_channel, 3, 3, 3)),
            basic_b=w((channel,), 0.01),
            ch_q_w=[w((inner_c, channel, ks[i], ks[i], ks[i])) for i in range(n_k)],
            ch_q_bn=[bn(inner_c) for _ in range(n_k)],
            ch_k_w=[w((1, channel, ks[i], ks[i], ks[i])) for i in range(n_k)],
            ch_k_b=[w((1,), 0.01) for _ in range(n_k)],
            ch_k_bn=[bn(1) for _ in range(n_k)],
            ch_wz_w=w((channel, inner_c, 1, 1, 1)),
            ch_wz_b=w((channel,), 0.01),
            ln_g=jnp.ones((channel,), jnp.float32),
            ln_b=jnp.zeros((channel,), jnp.float32),
            sp_q_w=[w((inner_c, channel, ks[i], ks[i], ks[i])) for i in range(n_k)],
            sp_q_bn=[bn(inner_c) for _ in range(n_k)],
            sp_k_w=[w((inner_c, channel, ks[i], ks[i], ks[i])) for i in range(n_k)],
            sp_k_bn=[bn(inner_c) for _ in range(n_k)],
        )

    def _fold_bn(bn_p, bias, cout):
        s = bn_p["g"] * jax.lax.rsqrt(bn_p["v"] + BN_EPS)
        b0 = bias if bias is not None else jnp.zeros((cout,), jnp.float32)
        return s, (b0 - bn_p["m"]) * s + bn_p["b"]

    def forward(params, x):
        bs, _, D, H, W = x.shape
        C = channel

        # basic_conv (k=3, pad=1) with bias, no BN / ReLU
        w_b = params["basic_w"].reshape(C, -1)
        xb = conv3d_fused(x, w_b, jnp.ones((C,), jnp.float32), params["basic_b"],
                          k=3, dil=1, pad=1, relu=False)                 # (bs, C, N)
        x5 = xb.reshape(bs, C, D, H, W)

        # ---- channel-attention branch: one fused (q‖k) conv per scale ----
        qk_ch = []
        for i in range(n_k):
            wq = params["ch_q_w"][i].reshape(inner_c, -1)
            wk = params["ch_k_w"][i].reshape(1, -1)
            sq, hq = _fold_bn(params["ch_q_bn"][i], None, inner_c)
            sk, hk = _fold_bn(params["ch_k_bn"][i], params["ch_k_b"][i], 1)
            qk_ch.append(conv3d_fused(
                x5, jnp.concatenate([wq, wk], axis=0),
                jnp.concatenate([sq, sk]), jnp.concatenate([hq, hk]),
                k=ks[i], dil=dils[i], pad=pads[i], relu=True))           # (bs, IC+1, N)

        ch_out = channel_attention(
            qk_ch,
            params["ch_wz_w"].reshape(C, inner_c),
            params["ch_wz_b"].reshape(C, 1),
            params["ln_g"].reshape(C, 1),
            params["ln_b"].reshape(C, 1),
            xb, inner_c=inner_c)                                         # (bs, C, N)
        ch5 = ch_out.reshape(bs, C, D, H, W)

        # ---- spatial-attention branch: one fused (q‖k) conv per scale ----
        qk_sp = []
        for i in range(n_k):
            wq = params["sp_q_w"][i].reshape(inner_c, -1)
            wk = params["sp_k_w"][i].reshape(inner_c, -1)
            sq, hq = _fold_bn(params["sp_q_bn"][i], None, inner_c)
            sk, hk = _fold_bn(params["sp_k_bn"][i], None, inner_c)
            qk_sp.append(conv3d_fused(
                ch5, jnp.concatenate([wq, wk], axis=0),
                jnp.concatenate([sq, sk]), jnp.concatenate([hq, hk]),
                k=ks[i], dil=dils[i], pad=pads[i], relu=True))           # (bs, 2*IC, N)

        sp_out = spatial_attention(qk_sp, ch_out, inner_c=inner_c)       # (bs, C, N) f32
        return sp_out.reshape(bs, C, D, H, W)

    return init, forward


if __name__ == "__main__":
    key = jax.random.PRNGKey(0)
    bs, in_channel, channel = 2, 4, 16
    D = H = W = 8

    init, forward = make_model(in_channel, channel, kernels=(1, 3, 5), r=4)
    params = init(key)
    x = jax.random.normal(jax.random.fold_in(key, 999),
                          (bs, in_channel, D, H, W), jnp.float32)

    fwd = jax.jit(forward)
    out = jax.block_until_ready(fwd(params, x))

    assert out.shape == (bs, channel, D, H, W), out.shape
    assert bool(jnp.all(jnp.isfinite(out)))
    print("KERNEL_OK")
</pallas_src>

<mosaic_0001>
module attributes {stable_mosaic.version = 11 : i64} {
  func.func @_conv_mm_kernel(%arg0: i32, %arg1: i32, %arg2: memref<16x108xbf16, #tpu.memory_space<vmem>>, %arg3: memref<16x1xf32, #tpu.memory_space<vmem>>, %arg4: memref<16x1xf32, #tpu.memory_space<vmem>>, %arg5: memref<1x108x512xbf16, #tpu.memory_space<vmem>>, %arg6: memref<1x16x512xbf16, #tpu.memory_space<vmem>>) attributes {dimension_semantics = [#tpu.dimension_semantics<parallel>, #tpu.dimension_semantics<parallel>], iteration_bounds = array<i64: 2, 1>, scalar_prefetch = 0 : i64, scratch_operands = 0 : i64, tpu.core_type = #tpu.core_type<tc>, window_params = [{pipeline_mode = #tpu.pipeline_mode<synchronous>, transform_indices = @transform_0, window_bounds = array<i64: 16, 108>}, {pipeline_mode = #tpu.pipeline_mode<synchronous>, transform_indices = @transform_1, window_bounds = array<i64: 16, 1>}, {pipeline_mode = #tpu.pipeline_mode<synchronous>, transform_indices = @transform_2, window_bounds = array<i64: 16, 1>}, {transform_indices = @transform_3, window_bounds = array<i64: 1, 108, 512>}, {transform_indices = @transform_4, window_bounds = array<i64: 1, 16, 512>}]} {
    %c0 = arith.constant 0 : index
    %c0_0 = arith.constant 0 : index
    %0 = vector.load %arg2[%c0, %c0_0] : memref<16x108xbf16, #tpu.memory_space<vmem>>, vector<16x108xbf16>
    %c0_1 = arith.constant 0 : index
    %c0_2 = arith.constant 0 : index
    %c0_3 = arith.constant 0 : index
    %1 = vector.load %arg5[%c0_1, %c0_2, %c0_3] : memref<1x108x512xbf16, #tpu.memory_space<vmem>>, vector<1x108x512xbf16>
    %2 = vector.shape_cast %1 : vector<1x108x512xbf16> to vector<108x512xbf16>
    %cst = arith.constant dense<0.000000e+00> : vector<16x512xf32>
    %3 = tpu.matmul %0, %2, %cst {dimension_numbers = #tpu.dot_dimension_numbers<[1], [0], [0], [1], [0, 0, 1, 1], [], []>} : vector<16x108xbf16>, vector<108x512xbf16>, vector<16x512xf32> -> vector<16x512xf32>
    %c0_4 = arith.constant 0 : index
    %c0_5 = arith.constant 0 : index
    %4 = vector.load %arg3[%c0_4, %c0_5] : memref<16x1xf32, #tpu.memory_space<vmem>>, vector<16x1xf32>
    %5 = vector.broadcast %4 : vector<16x1xf32> to vector<16x512xf32>
    %6 = arith.mulf %3, %5 : vector<16x512xf32>
    %c0_6 = arith.constant 0 : index
    %c0_7 = arith.constant 0 : index
    %7 = vector.load %arg4[%c0_6, %c0_7] : memref<16x1xf32, #tpu.memory_space<vmem>>, vector<16x1xf32>
    %8 = vector.broadcast %7 : vector<16x1xf32> to vector<16x512xf32>
    %9 = arith.addf %6, %8 : vector<16x512xf32>
    %10 = arith.truncf %9 : vector<16x512xf32> to vector<16x512xbf16>
    %c0_8 = arith.constant 0 : index
    %c0_9 = arith.constant 0 : index
    %c0_10 = arith.constant 0 : index
    %11 = vector.load %arg6[%c0_8, %c0_9, %c0_10] : memref<1x16x512xbf16, #tpu.memory_space<vmem>>, vector<1x16x512xbf16>
    %12 = vector.shape_cast %11 : vector<1x16x512xbf16> to vector<16x512xbf16>
    %13 = vector.shape_cast %10 : vector<16x512xbf16> to vector<1x16x512xbf16>
    tpu.vector_store %arg6[%c0_8, %c0_9, %c0_10], %13 {strides = array<i32>} : memref<1x16x512xbf16, #tpu.memory_space<vmem>>, vector<1x16x512xbf16>,
    return
  }
  func.func @transform_0(%arg0: i32, %arg1: i32) -> (i32, i32) {
    %c0_i32 = arith.constant 0 : i32
    %c0_i32_0 = arith.constant 0 : i32
    %c0_i32_1 = arith.constant 0 : i32
    return %c0_i32, %c0_i32_0 : i32, i32
  }
  func.func @transform_1(%arg0: i32, %arg1: i32) -> (i32, i32) {
    %c0_i32 = arith.constant 0 : i32
    %c0_i32_0 = arith.constant 0 : i32
    %c0_i32_1 = arith.constant 0 : i32
    return %c0_i32, %c0_i32_0 : i32, i32
  }
  func.func @transform_2(%arg0: i32, %arg1: i32) -> (i32, i32) {
    %c0_i32 = arith.constant 0 : i32
    %c0_i32_0 = arith.constant 0 : i32
    %c0_i32_1 = arith.constant 0 : i32
    return %c0_i32, %c0_i32_0 : i32, i32
  }
  func.func @transform_3(%arg0: i32, %arg1: i32) -> (i32, i32, i32) {
    %c0_i32 = arith.constant 0 : i32
    %c0_i32_0 = arith.constant 0 : i32
    return %arg0, %c0_i32, %arg1 : i32, i32, i32
  }
  func.func @transform_4(%arg0: i32, %arg1: i32) -> (i32, i32, i32) {
    %c0_i32 = arith.constant 0 : i32
    %c0_i32_0 = arith.constant 0 : i32
    return %arg0, %c0_i32, %arg1 : i32, i32, i32
  }
}

module attributes {stable_mosaic.version = 11 : i64} {
  func.func @_conv_mm_kernel(%arg0: i32, %arg1: i32, %arg2: memref<5x432xbf16, #tpu.memory_space<vmem>>, %arg3: memref<5x1xf32, #tpu.memory_space<vmem>>, %arg4: memref<5x1xf32, #tpu.memory_space<vmem>>, %arg5: memref<1x432x512xbf16, #tpu.memory_space<vmem>>, %arg6: memref<1x5x512xbf16, #tpu.memory_space<vmem>>) attributes {dimension_semantics = [#tpu.dimension_semantics<parallel>, #tpu.dimension_semantics<parallel>], iteration_bounds = array<i64: 2, 1>, scalar_prefetch = 0 : i64, scratch_operands = 0 : i64, tpu.core_type = #tpu.core_type<tc>, window_params = [{pipeline_mode = #tpu.pipeline_mode<synchronous>, transform_indices = @transform_0, window_bounds = array<i64: 5, 432>}, {pipeline_mode = #tpu.pipeline_mode<synchronous>, transform_indices = @transform_1, window_bounds = array<i64: 5, 1>}, {pipeline_mode = #tpu.pipeline_mode<synchronous>, transform_indices = @transform_2, window_bounds = array<i64: 5, 1>}, {transform_indices = @transform_3, window_bounds = array<i64: 1, 432, 512>}, {transform_indices = @transform_4, window_bounds = array<i64: 1, 5, 512>}]} {
    %c0 = arith.constant 0 : index
    %c0_0 = arith.constant 0 : index
    %0 = vector.load %arg2[%c0, %c0_0] : memref<5x432xbf16, #tpu.memory_space<vmem>>, vector<5x432xbf16>
    %c0_1 = arith.constant 0 : index
    %c0_2 = arith.constant 0 : index
    %c0_3 = arith.constant 0 : index
    %1 = vector.load %arg5[%c0_1, %c0_2, %c0_3] : memref<1x432x512xbf16, #tpu.memory_space<vmem>>, vector<1x432x512xbf16>
    %2 = vector.shape_cast %1 : vector<1x432x512xbf16> to vector<432x512xbf16>
    %cst = arith.constant dense<0.000000e+00> : vector<5x512xf32>
    %3 = tpu.matmul %0, %2, %cst {dimension_numbers = #tpu.dot_dimension_numbers<[1], [0], [0], [1], [0, 0, 1, 1], [], []>} : vector<5x432xbf16>, vector<432x512xbf16>, vector<5x512xf32> -> vector<5x512xf32>
    %c0_4 = arith.constant 0 : index
    %c0_5 = arith.constant 0 : index
    %4 = vector.load %arg3[%c0_4, %c0_5] : memref<5x1xf32, #tpu.memory_space<vmem>>, vector<5x1xf32>
    %5 = vector.broadcast %4 : vector<5x1xf32> to vector<5x512xf32>
    %6 = arith.mulf %3, %5 : vector<5x512xf32>
    %c0_6 = arith.constant 0 : index
    %c0_7 = arith.constant 0 : index
    %7 = vector.load %arg4[%c0_6, %c0_7] : memref<5x1xf32, #tpu.memory_space<vmem>>, vector<5x1xf32>
    %8 = vector.broadcast %7 : vector<5x1xf32> to vector<5x512xf32>
    %9 = arith.addf %6, %8 : vector<5x512xf32>
    %cst_8 = arith.constant 0.000000e+00 : f32
    %10 = vector.broadcast %cst_8 : f32 to vector<5x512xf32>
    %11 = arith.maximumf %9, %10 : vector<5x512xf32>
    %12 = arith.truncf %11 : vector<5x512xf32> to vector<5x512xbf16>
    %c0_9 = arith.constant 0 : index
    %c0_10 = arith.constant 0 : index
    %c0_11 = arith.constant 0 : index
    %13 = vector.load %arg6[%c0_9, %c0_10, %c0_11] : memref<1x5x512xbf16, #tpu.memory_space<vmem>>, vector<1x5x512xbf16>
    %14 = vector.shape_cast %13 : vector<1x5x512xbf16> to vector<5x512xbf16>
    %15 = vector.shape_cast %12 : vector<5x512xbf16> to vector<1x5x512xbf16>
    tpu.vector_store %arg6[%c0_9, %c0_10, %c0_11], %15 {strides = array<i32>} : memref<1x5x512xbf16, #tpu.memory_space<vmem>>, vector<1x5x512xbf16>,
    return
  }
  func.func @transform_0(%arg0: i32, %arg1: i32) -> (i32, i32) {
    %c0_i32 = arith.constant 0 : i32
    %c0_i32_0 = arith.constant 0 : i32
    %c0_i32_1 = arith.constant 0 : i32
    return %c0_i32, %c0_i32_0 : i32, i32
  }
  func.func @transform_1(%arg0: i32, %arg1: i32) -> (i32, i32) {
    %c0_i32 = arith.constant 0 : i32
    %c0_i32_0 = arith.constant 0 : i32
    %c0_i32_1 = arith.constant 0 : i32
    return %c0_i32, %c0_i32_0 : i32, i32
  }
  func.func @transform_2(%arg0: i32, %arg1: i32) -> (i32, i32) {
    %c0_i32 = arith.constant 0 : i32
    %c0_i32_0 = arith.constant 0 : i32
    %c0_i32_1 = arith.constant 0 : i32
    return %c0_i32, %c0_i32_0 : i32, i32
  }
  func.func @transform_3(%arg0: i32, %arg1: i32) -> (i32, i32, i32) {
    %c0_i32 = arith.constant 0 : i32
    %c0_i32_0 = arith.constant 0 : i32
    return %arg0, %c0_i32, %arg1 : i32, i32, i32
  }
  func.func @transform_4(%arg0: i32, %arg1: i32) -> (i32, i32, i32) {
    %c0_i32 = arith.constant 0 : i32
    %c0_i32_0 = arith.constant 0 : i32
    return %arg0, %c0_i32, %arg1 : i32, i32, i32
  }
}

module attributes {stable_mosaic.version = 11 : i64} {
  func.func @_conv_mm_kernel(%arg0: i32, %arg1: i32, %arg2: memref<5x16xbf16, #tpu.memory_space<vmem>>, %arg3: memref<5x1xf32, #tpu.memory_space<vmem>>, %arg4: memref<5x1xf32, #tpu.memory_space<vmem>>, %arg5: memref<1x16x512xbf16, #tpu.memory_space<vmem>>, %arg6: memref<1x5x512xbf16, #tpu.memory_space<vmem>>) attributes {dimension_semantics = [#tpu.dimension_semantics<parallel>, #tpu.dimension_semantics<parallel>], iteration_bounds = array<i64: 2, 1>, scalar_prefetch = 0 : i64, scratch_operands = 0 : i64, tpu.core_type = #tpu.core_type<tc>, window_params = [{pipeline_mode = #tpu.pipeline_mode<synchronous>, transform_indices = @transform_0, window_bounds = array<i64: 5, 16>}, {pipeline_mode = #tpu.pipeline_mode<synchronous>, transform_indices = @transform_1, window_bounds = array<i64: 5, 1>}, {pipeline_mode = #tpu.pipeline_mode<synchronous>, transform_indices = @transform_2, window_bounds = array<i64: 5, 1>}, {transform_indices = @transform_3, window_bounds = array<i64: 1, 16, 512>}, {transform_indices = @transform_4, window_bounds = array<i64: 1, 5, 512>}]} {
    %c0 = arith.constant 0 : index
    %c0_0 = arith.constant 0 : index
    %0 = vector.load %arg2[%c0, %c0_0] : memref<5x16xbf16, #tpu.memory_space<vmem>>, vector<5x16xbf16>
    %c0_1 = arith.constant 0 : index
    %c0_2 = arith.constant 0 : index
    %c0_3 = arith.constant 0 : index
    %1 = vector.load %arg5[%c0_1, %c0_2, %c0_3] : memref<1x16x512xbf16, #tpu.memory_space<vmem>>, vector<1x16x512xbf16>
    %2 = vector.shape_cast %1 : vector<1x16x512xbf16> to vector<16x512xbf16>
    %cst = arith.constant dense<0.000000e+00> : vector<5x512xf32>
    %3 = tpu.matmul %0, %2, %cst {dimension_numbers = #tpu.dot_dimension_numbers<[1], [0], [0], [1], [0, 0, 1, 1], [], []>} : vector<5x16xbf16>, vector<16x512xbf16>, vector<5x512xf32> -> vector<5x512xf32>
    %c0_4 = arith.constant 0 : index
    %c0_5 = arith.constant 0 : index
    %4 = vector.load %arg3[%c0_4, %c0_5] : memref<5x1xf32, #tpu.memory_space<vmem>>, vector<5x1xf32>
    %5 = vector.broadcast %4 : vector<5x1xf32> to vector<5x512xf32>
    %6 = arith.mulf %3, %5 : vector<5x512xf32>
    %c0_6 = arith.constant 0 : index
    %c0_7 = arith.constant 0 : index
    %7 = vector.load %arg4[%c0_6, %c0_7] : memref<5x1xf32, #tpu.memory_space<vmem>>, vector<5x1xf32>
    %8 = vector.broadcast %7 : vector<5x1xf32> to vector<5x512xf32>
    %9 = arith.addf %6, %8 : vector<5x512xf32>
    %cst_8 = arith.constant 0.000000e+00 : f32
    %10 = vector.broadcast %cst_8 : f32 to vector<5x512xf32>
    %11 = arith.maximumf %9, %10 : vector<5x512xf32>
    %12 = arith.truncf %11 : vector<5x512xf32> to vector<5x512xbf16>
    %c0_9 = arith.constant 0 : index
    %c0_10 = arith.constant 0 : index
    %c0_11 = arith.constant 0 : index
    %13 = vector.load %arg6[%c0_9, %c0_10, %c0_11] : memref<1x5x512xbf16, #tpu.memory_space<vmem>>, vector<1x5x512xbf16>
    %14 = vector.shape_cast %13 : vector<1x5x512xbf16> to vector<5x512xbf16>
    %15 = vector.shape_cast %12 : vector<5x512xbf16> to vector<1x5x512xbf16>
    tpu.vector_store %arg6[%c0_9, %c0_10, %c0_11], %15 {strides = array<i32>} : memref<1x5x512xbf16, #tpu.memory_space<vmem>>, vector<1x5x512xbf16>,
    return
  }
  func.func @transform_0(%arg0: i32, %arg1: i32) -> (i32, i32) {
    %c0_i32 = arith.constant 0 : i32
    %c0_i32_0 = arith.constant 0 : i32
    %c0_i32_1 = arith.constant 0 : i32
    return %c0_i32, %c0_i32_0 : i32, i32
  }
  func.func @transform_1(%arg0: i32, %arg1: i32) -> (i32, i32) {
    %c0_i32 = arith.constant 0 : i32
    %c0_i32_0 = arith.constant 0 : i32
    %c0_i32_1 = arith.constant 0 : i32
    return %c0_i32, %c0_i32_0 : i32, i32
  }
  func.func @transform_2(%arg0: i32, %arg1: i32) -> (i32, i32) {
    %c0_i32 = arith.constant 0 : i32
    %c0_i32_0 = arith.constant 0 : i32
    %c0_i32_1 = arith.constant 0 : i32
    return %c0_i32, %c0_i32_0 : i32, i32
  }
  func.func @transform_3(%arg0: i32, %arg1: i32) -> (i32, i32, i32) {
    %c0_i32 = arith.constant 0 : i32
    %c0_i32_0 = arith.constant 0 : i32
    return %arg0, %c0_i32, %arg1 : i32, i32, i32
  }
  func.func @transform_4(%arg0: i32, %arg1: i32) -> (i32, i32, i32) {
    %c0_i32 = arith.constant 0 : i32
    %c0_i32_0 = arith.constant 0 : i32
    return %arg0, %c0_i32, %arg1 : i32, i32, i32
  }
}

module attributes {stable_mosaic.version = 11 : i64} {
  func.func @_ch_attn_kernel(%arg0: i32, %arg1: memref<1x5x512xbf16, #tpu.memory_space<vmem>>, %arg2: memref<1x5x512xbf16, #tpu.memory_space<vmem>>, %arg3: memref<1x5x512xbf16, #tpu.memory_space<vmem>>, %arg4: memref<16x4xf32, #tpu.memory_space<vmem>>, %arg5: memref<16x1xf32, #tpu.memory_space<vmem>>, %arg6: memref<16x1xf32, #tpu.memory_space<vmem>>, %arg7: memref<16x1xf32, #tpu.memory_space<vmem>>, %arg8: memref<1x16x512xbf16, #tpu.memory_space<vmem>>, %arg9: memref<1x16x512xbf16, #tpu.memory_space<vmem>>) attributes {dimension_semantics = [#tpu.dimension_semantics<parallel>], iteration_bounds = array<i64: 2>, scalar_prefetch = 0 : i64, scratch_operands = 0 : i64, tpu.core_type = #tpu.core_type<tc>, window_params = [{transform_indices = @transform_0, window_bounds = array<i64: 1, 5, 512>}, {transform_indices = @transform_1, window_bounds = array<i64: 1, 5, 512>}, {transform_indices = @transform_2, window_bounds = array<i64: 1, 5, 512>}, {pipeline_mode = #tpu.pipeline_mode<synchronous>, transform_indices = @transform_3, window_bounds = array<i64: 16, 4>}, {pipeline_mode = #tpu.pipeline_mode<synchronous>, transform_indices = @transform_4, window_bounds = array<i64: 16, 1>}, {pipeline_mode = #tpu.pipeline_mode<synchronous>, transform_indices = @transform_5, window_bounds = array<i64: 16, 1>}, {pipeline_mode = #tpu.pipeline_mode<synchronous>, transform_indices = @transform_6, window_bounds = array<i64: 16, 1>}, {transform_indices = @transform_7, window_bounds = array<i64: 1, 16, 512>}, {transform_indices = @transform_8, window_bounds = array<i64: 1, 16, 512>}]} {
    %c0 = arith.constant 0 : index
    %c4 = arith.constant 4 : index
    %c0_0 = arith.constant 0 : index
    %0 = vector.load %arg1[%c0, %c4, %c0_0] : memref<1x5x512xbf16, #tpu.memory_space<vmem>>, vector<1x1x512xbf16>
    %1 = vector.shape_cast %0 : vector<1x1x512xbf16> to vector<1x512xbf16>
    %2 = arith.extf %1 : vector<1x512xbf16> to vector<1x512xf32>
    %c0_1 = arith.constant 0 : index
    %c4_2 = arith.constant 4 : index
    %c0_3 = arith.constant 0 : index
    %3 = vector.load %arg2[%c0_1, %c4_2, %c0_3] : memref<1x5x512xbf16, #tpu.memory_space<vmem>>, vector<1x1x512xbf16>
    %4 = vector.shape_cast %3 : vector<1x1x512xbf16> to vector<1x512xbf16>
    %5 = arith.extf %4 : vector<1x512xbf16> to vector<1x512xf32>
    %c0_4 = arith.constant 0 : index
    %c4_5 = arith.constant 4 : index
    %c0_6 = arith.constant 0 : index
    %6 = vector.load %arg3[%c0_4, %c4_5, %c0_6] : memref<1x5x512xbf16, #tpu.memory_space<vmem>>, vector<1x1x512xbf16>
    %7 = vector.shape_cast %6 : vector<1x1x512xbf16> to vector<1x512xbf16>
    %8 = arith.extf %7 : vector<1x512xbf16> to vector<1x512xf32>
    %cst = arith.constant dense<0xFF800000> : vector<1xf32>
    %9 = vector.multi_reduction <maximumf>, %2, %cst [1] : vector<1x512xf32> to vector<1xf32>
    %10 = vector.shape_cast %9 : vector<1xf32> to vector<1x1xf32>
    %cst_7 = arith.constant dense<0xFF800000> : vector<1xf32>
    %11 = vector.multi_reduction <maximumf>, %5, %cst_7 [1] : vector<1x512xf32> to vector<1xf32>
    %12 = vector.shape_cast %11 : vector<1xf32> to vector<1x1xf32>
    %13 = arith.maximumf %10, %12 : vector<1x1xf32>
    %cst_8 = arith.constant dense<0xFF800000> : vector<1xf32>
    %14 = vector.multi_reduction <maximumf>, %8, %cst_8 [1] : vector<1x512xf32> to vector<1xf32>
    %15 = vector.shape_cast %14 : vector<1xf32> to vector<1x1xf32>
    %16 = arith.maximumf %13, %15 : vector<1x1xf32>
    %cst_9 = arith.constant 0.000000e+00 : f32
    %17 = vector.broadcast %cst_9 : f32 to vector<1x1xf32>
    %cst_10 = arith.constant 0.000000e+00 : f32
    %18 = vector.broadcast %cst_10 : f32 to vector<4x1xf32>
    %c0_11 = arith.constant 0 : index
    %c0_12 = arith.constant 0 : index
    %c0_13 = arith.constant 0 : index
    %19 = vector.load %arg1[%c0_11, %c0_12, %c0_13] : memref<1x5x512xbf16, #tpu.memory_space<vmem>>, vector<1x4x512xbf16>
    %20 = vector.shape_cast %19 : vector<1x4x512xbf16> to vector<4x512xbf16>
    %21 = arith.extf %20 : vector<4x512xbf16> to vector<4x512xf32>
    %22 = vector.broadcast %16 : vector<1x1xf32> to vector<1x512xf32>
    %23 = arith.subf %2, %22 : vector<1x512xf32>
    %24 = math.exp %23 : vector<1x512xf32>
    %cst_14 = arith.constant dense<0.000000e+00> : vector<1xf32>
    %25 = vector.multi_reduction <add>, %24, %cst_14 [1] : vector<1x512xf32> to vector<1xf32>
    %26 = vector.shape_cast %25 : vector<1xf32> to vector<1x1xf32>
    %27 = arith.addf %17, %26 : vector<1x1xf32>
    %28 = vector.broadcast %24 : vector<1x512xf32> to vector<4x512xf32>
    %29 = arith.mulf %21, %28 : vector<4x512xf32>
    %cst_15 = arith.constant dense<0.000000e+00> : vector<4xf32>
    %30 = vector.multi_reduction <add>, %29, %cst_15 [1] : vector<4x512xf32> to vector<4xf32>
    %31 = vector.shape_cast %30 : vector<4xf32> to vector<4x1xf32>
    %32 = arith.addf %18, %31 : vector<4x1xf32>
    %c0_16 = arith.constant 0 : index
    %c0_17 = arith.constant 0 : index
    %c0_18 = arith.constant 0 : index
    %33 = vector.load %arg2[%c0_16, %c0_17, %c0_18] : memref<1x5x512xbf16, #tpu.memory_space<vmem>>, vector<1x4x512xbf16>
    %34 = vector.shape_cast %33 : vector<1x4x512xbf16> to vector<4x512xbf16>
    %35 = arith.extf %34 : vector<4x512xbf16> to vector<4x512xf32>
    %36 = vector.broadcast %16 : vector<1x1xf32> to vector<1x512xf32>
    %37 = arith.subf %5, %36 : vector<1x512xf32>
    %38 = math.exp %37 : vector<1x512xf32>
    %cst_19 = arith.constant dense<0.000000e+00> : vector<1xf32>
    %39 = vector.multi_reduction <add>, %38, %cst_19 [1] : vector<1x512xf32> to vector<1xf32>
    %40 = vector.shape_cast %39 : vector<1xf32> to vector<1x1xf32>
    %41 = arith.addf %27, %40 : vector<1x1xf32>
    %42 = vector.broadcast %38 : vector<1x512xf32> to vector<4x512xf32>
    %43 = arith.mulf %35, %42 : vector<4x512xf32>
    %cst_20 = arith.constant dense<0.000000e+00> : vector<4xf32>
    %44 = vector.multi_reduction <add>, %43, %cst_20 [1] : vector<4x512xf32> to vector<4xf32>
    %45 = vector.shape_cast %44 : vector<4xf32> to vector<4x1xf32>
    %46 = arith.addf %32, %45 : vector<4x1xf32>
    %c0_21 = arith.constant 0 : index
    %c0_22 = arith.constant 0 : index
    %c0_23 = arith.constant 0 : index
    %47 = vector.load %arg3[%c0_21, %c0_22, %c0_23] : memref<1x5x512xbf16, #tpu.memory_space<vmem>>, vector<1x4x512xbf16>
    %48 = vector.shape_cast %47 : vector<1x4x512xbf16> to vector<4x512xbf16>
    %49 = arith.extf %48 : vector<4x512xbf16> to vector<4x512xf32>
    %50 = vector.broadcast %16 : vector<1x1xf32> to vector<1x512xf32>
    %51 = arith.subf %8, %50 : vector<1x512xf32>
    %52 = math.exp %51 : vector<1x512xf32>
    %cst_24 = arith.constant dense<0.000000e+00> : vector<1xf32>
    %53 = vector.multi_reduction <add>, %52, %cst_24 [1] : vector<1x512xf32> to vector<1xf32>
    %54 = vector.shape_cast %53 : vector<1xf32> to vector<1x1xf32>
    %55 = arith.addf %41, %54 : vector<1x1xf32>
    %56 = vector.broadcast %52 : vector<1x512xf32> to vector<4x512xf32>
    %57 = arith.mulf %49, %56 : vector<4x512xf32>
    %cst_25 = arith.constant dense<0.000000e+00> : vector<4xf32>
    %58 = vector.multi_reduction <add>, %57, %cst_25 [1] : vector<4x512xf32> to vector<4xf32>
    %59 = vector.shape_cast %58 : vector<4xf32> to vector<4x1xf32>
    %60 = arith.addf %46, %59 : vector<4x1xf32>
    %61 = vector.broadcast %55 : vector<1x1xf32> to vector<4x1xf32>
    %62 = arith.divf %60, %61 : vector<4x1xf32>
    %c0_26 = arith.constant 0 : index
    %c0_27 = arith.constant 0 : index
    %63 = vector.load %arg4[%c0_26, %c0_27] : memref<16x4xf32, #tpu.memory_space<vmem>>, vector<16x4xf32>
    %cst_28 = arith.constant dense<0.000000e+00> : vector<16x1xf32>
    %64 = tpu.matmul %63, %62, %cst_28 {dimension_numbers = #tpu.dot_dimension_numbers<[1], [0], [0], [1], [0, 0, 1, 1], [], []>} : vector<16x4xf32>, vector<4x1xf32>, vector<16x1xf32> -> vector<16x1xf32>
    %c0_29 = arith.constant 0 : index
    %c0_30 = arith.constant 0 : index
    %65 = vector.load %arg5[%c0_29, %c0_30] : memref<16x1xf32, #tpu.memory_space<vmem>>, vector<16x1xf32>
    %66 = arith.addf %64, %65 : vector<16x1xf32>
    %cst_31 = arith.constant dense<0.000000e+00> : vector<1xf32>
    %67 = vector.multi_reduction <add>, %66, %cst_31 [0] : vector<16x1xf32> to vector<1xf32>
    %68 = vector.shape_cast %67 : vector<1xf32> to vector<1x1xf32>
    %cst_32 = arith.constant 1.600000e+01 : f32
    %69 = vector.broadcast %cst_32 : f32 to vector<1x1xf32>
    %70 = arith.divf %68, %69 : vector<1x1xf32>
    %71 = vector.broadcast %70 : vector<1x1xf32> to vector<16x1xf32>
    %72 = arith.subf %66, %71 : vector<16x1xf32>
    %73 = arith.mulf %72, %72 : vector<16x1xf32>
    %cst_33 = arith.constant dense<0.000000e+00> : vector<1xf32>
    %74 = vector.multi_reduction <add>, %73, %cst_33 [0] : vector<16x1xf32> to vector<1xf32>
    %75 = vector.shape_cast %74 : vector<1xf32> to vector<1x1xf32>
    %cst_34 = arith.constant 1.600000e+01 : f32
    %76 = vector.broadcast %cst_34 : f32 to vector<1x1xf32>
    %77 = arith.divf %75, %76 : vector<1x1xf32>
    %78 = vector.broadcast %70 : vector<1x1xf32> to vector<16x1xf32>
    %79 = arith.subf %66, %78 : vector<16x1xf32>
    %cst_35 = arith.constant 9.99999974E-6 : f32
    %80 = vector.broadcast %cst_35 : f32 to vector<1x1xf32>
    %81 = arith.addf %77, %80 : vector<1x1xf32>
    %82 = math.rsqrt %81 : vector<1x1xf32>
    %83 = vector.broadcast %82 : vector<1x1xf32> to vector<16x1xf32>
    %84 = arith.mulf %79, %83 : vector<16x1xf32>
    %c0_36 = arith.constant 0 : index
    %c0_37 = arith.constant 0 : index
    %85 = vector.load %arg6[%c0_36, %c0_37] : memref<16x1xf32, #tpu.memory_space<vmem>>, vector<16x1xf32>
    %86 = arith.mulf %84, %85 : vector<16x1xf32>
    %c0_38 = arith.constant 0 : index
    %c0_39 = arith.constant 0 : index
    %87 = vector.load %arg7[%c0_38, %c0_39] : memref<16x1xf32, #tpu.memory_space<vmem>>, vector<16x1xf32>
    %88 = arith.addf %86, %87 : vector<16x1xf32>
    %89 = arith.negf %88 : vector<16x1xf32>
    %90 = math.exp %89 : vector<16x1xf32>
    %cst_40 = arith.constant 1.000000e+00 : f32
    %91 = vector.broadcast %cst_40 : f32 to vector<16x1xf32>
    %92 = arith.addf %91, %90 : vector<16x1xf32>
    %93 = arith.divf %91, %92 : vector<16x1xf32>
    %c0_41 = arith.constant 0 : index
    %c0_42 = arith.constant 0 : index
    %c0_43 = arith.constant 0 : index
    %94 = vector.load %arg8[%c0_41, %c0_42, %c0_43] : memref<1x16x512xbf16, #tpu.memory_space<vmem>>, vector<1x16x512xbf16>
    %95 = vector.shape_cast %94 : vector<1x16x512xbf16> to vector<16x512xbf16>
    %96 = arith.extf %95 : vector<16x512xbf16> to vector<16x512xf32>
    %97 = vector.broadcast %93 : vector<16x1xf32> to vector<16x512xf32>
    %98 = arith.mulf %96, %97 : vector<16x512xf32>
    %99 = arith.truncf %98 : vector<16x512xf32> to vector<16x512xbf16>
    %c0_44 = arith.constant 0 : index
    %c0_45 = arith.constant 0 : index
    %c0_46 = arith.constant 0 : index
    %100 = vector.load %arg9[%c0_44, %c0_45, %c0_46] : memref<1x16x512xbf16, #tpu.memory_space<vmem>>, vector<1x16x512xbf16>
    %101 = vector.shape_cast %100 : vector<1x16x512xbf16> to vector<16x512xbf16>
    %102 = vector.shape_cast %99 : vector<16x512xbf16> to vector<1x16x512xbf16>
    tpu.vector_store %arg9[%c0_44, %c0_45, %c0_46], %102 {strides = array<i32>} : memref<1x16x512xbf16, #tpu.memory_space<vmem>>, vector<1x16x512xbf16>,
    return
  }
  func.func @transform_0(%arg0: i32) -> (i32, i32, i32) {
    %c0_i32 = arith.constant 0 : i32
    %c0_i32_0 = arith.constant 0 : i32
    %c0_i32_1 = arith.constant 0 : i32
    return %arg0, %c0_i32, %c0_i32_0 : i32, i32, i32
  }
  func.func @transform_1(%arg0: i32) -> (i32, i32, i32) {
    %c0_i32 = arith.constant 0 : i32
    %c0_i32_0 = arith.constant 0 : i32
    %c0_i32_1 = arith.constant 0 : i32
    return %arg0, %c0_i32, %c0_i32_0 : i32, i32, i32
  }
  func.func @transform_2(%arg0: i32) -> (i32, i32, i32) {
    %c0_i32 = arith.constant 0 : i32
    %c0_i32_0 = arith.constant 0 : i32
    %c0_i32_1 = arith.constant 0 : i32
    return %arg0, %c0_i32, %c0_i32_0 : i32, i32, i32
  }
  func.func @transform_3(%arg0: i32) -> (i32, i32) {
    %c0_i32 = arith.constant 0 : i32
    %c0_i32_0 = arith.constant 0 : i32
    %c0_i32_1 = arith.constant 0 : i32
    return %c0_i32, %c0_i32_0 : i32, i32
  }
  func.func @transform_4(%arg0: i32) -> (i32, i32) {
    %c0_i32 = arith.constant 0 : i32
    %c0_i32_0 = arith.constant 0 : i32
    %c0_i32_1 = arith.constant 0 : i32
    return %c0_i32, %c0_i32_0 : i32, i32
  }
  func.func @transform_5(%arg0: i32) -> (i32, i32) {
    %c0_i32 = arith.constant 0 : i32
    %c0_i32_0 = arith.constant 0 : i32
    %c0_i32_1 = arith.constant 0 : i32
    return %c0_i32, %c0_i32_0 : i32, i32
  }
  func.func @transform_6(%arg0: i32) -> (i32, i32) {
    %c0_i32 = arith.constant 0 : i32
    %c0_i32_0 = arith.constant 0 : i32
    %c0_i32_1 = arith.constant 0 : i32
    return %c0_i32, %c0_i32_0 : i32, i32
  }
  func.func @transform_7(%arg0: i32) -> (i32, i32, i32) {
    %c0_i32 = arith.constant 0 : i32
    %c0_i32_0 = arith.constant 0 : i32
    %c0_i32_1 = arith.constant 0 : i32
    return %arg0, %c0_i32, %c0_i32_0 : i32, i32, i32
  }
  func.func @transform_8(%arg0: i32) -> (i32, i32, i32) {
    %c0_i32 = arith.constant 0 : i32
    %c0_i32_0 = arith.constant 0 : i32
    %c0_i32_1 = arith.constant 0 : i32
    return %arg0, %c0_i32, %c0_i32_0 : i32, i32, i32
  }
}

module attributes {stable_mosaic.version = 11 : i64} {
  func.func @_conv_mm_kernel(%arg0: i32, %arg1: i32, %arg2: memref<8x432xbf16, #tpu.memory_space<vmem>>, %arg3: memref<8x1xf32, #tpu.memory_space<vmem>>, %arg4: memref<8x1xf32, #tpu.memory_space<vmem>>, %arg5: memref<1x432x512xbf16, #tpu.memory_space<vmem>>, %arg6: memref<1x8x512xbf16, #tpu.memory_space<vmem>>) attributes {dimension_semantics = [#tpu.dimension_semantics<parallel>, #tpu.dimension_semantics<parallel>], iteration_bounds = array<i64: 2, 1>, scalar_prefetch = 0 : i64, scratch_operands = 0 : i64, tpu.core_type = #tpu.core_type<tc>, window_params = [{pipeline_mode = #tpu.pipeline_mode<synchronous>, transform_indices = @transform_0, window_bounds = array<i64: 8, 432>}, {pipeline_mode = #tpu.pipeline_mode<synchronous>, transform_indices = @transform_1, window_bounds = array<i64: 8, 1>}, {pipeline_mode = #tpu.pipeline_mode<synchronous>, transform_indices = @transform_2, window_bounds = array<i64: 8, 1>}, {transform_indices = @transform_3, window_bounds = array<i64: 1, 432, 512>}, {transform_indices = @transform_4, window_bounds = array<i64: 1, 8, 512>}]} {
    %c0 = arith.constant 0 : index
    %c0_0 = arith.constant 0 : index
    %0 = vector.load %arg2[%c0, %c0_0] : memref<8x432xbf16, #tpu.memory_space<vmem>>, vector<8x432xbf16>
    %c0_1 = arith.constant 0 : index
    %c0_2 = arith.constant 0 : index
    %c0_3 = arith.constant 0 : index
    %1 = vector.load %arg5[%c0_1, %c0_2, %c0_3] : memref<1x432x512xbf16, #tpu.memory_space<vmem>>, vector<1x432x512xbf16>
    %2 = vector.shape_cast %1 : vector<1x432x512xbf16> to vector<432x512xbf16>
    %cst = arith.constant dense<0.000000e+00> : vector<8x512xf32>
    %3 = tpu.matmul %0, %2, %cst {dimension_numbers = #tpu.dot_dimension_numbers<[1], [0], [0], [1], [0, 0, 1, 1], [], []>} : vector<8x432xbf16>, vector<432x512xbf16>, vector<8x512xf32> -> vector<8x512xf32>
    %c0_4 = arith.constant 0 : index
    %c0_5 = arith.constant 0 : index
    %4 = vector.load %arg3[%c0_4, %c0_5] : memref<8x1xf32, #tpu.memory_space<vmem>>, vector<8x1xf32>
    %5 = vector.broadcast %4 : vector<8x1xf32> to vector<8x512xf32>
    %6 = arith.mulf %3, %5 : vector<8x512xf32>
    %c0_6 = arith.constant 0 : index
    %c0_7 = arith.constant 0 : index
    %7 = vector.load %arg4[%c0_6, %c0_7] : memref<8x1xf32, #tpu.memory_space<vmem>>, vector<8x1xf32>
    %8 = vector.broadcast %7 : vector<8x1xf32> to vector<8x512xf32>
    %9 = arith.addf %6, %8 : vector<8x512xf32>
    %cst_8 = arith.constant 0.000000e+00 : f32
    %10 = vector.broadcast %cst_8 : f32 to vector<8x512xf32>
    %11 = arith.maximumf %9, %10 : vector<8x512xf32>
    %12 = arith.truncf %11 : vector<8x512xf32> to vector<8x512xbf16>
    %c0_9 = arith.constant 0 : index
    %c0_10 = arith.constant 0 : index
    %c0_11 = arith.constant 0 : index
    %13 = vector.load %arg6[%c0_9, %c0_10, %c0_11] : memref<1x8x512xbf16, #tpu.memory_space<vmem>>, vector<1x8x512xbf16>
    %14 = vector.shape_cast %13 : vector<1x8x512xbf16> to vector<8x512xbf16>
    %15 = vector.shape_cast %12 : vector<8x512xbf16> to vector<1x8x512xbf16>
    tpu.vector_store %arg6[%c0_9, %c0_10, %c0_11], %15 {strides = array<i32>} : memref<1x8x512xbf16, #tpu.memory_space<vmem>>, vector<1x8x512xbf16>,
    return
  }
  func.func @transform_0(%arg0: i32, %arg1: i32) -> (i32, i32) {
    %c0_i32 = arith.constant 0 : i32
    %c0_i32_0 = arith.constant 0 : i32
    %c0_i32_1 = arith.constant 0 : i32
    return %c0_i32, %c0_i32_0 : i32, i32
  }
  func.func @transform_1(%arg0: i32, %arg1: i32) -> (i32, i32) {
    %c0_i32 = arith.constant 0 : i32
    %c0_i32_0 = arith.constant 0 : i32
    %c0_i32_1 = arith.constant 0 : i32
    return %c0_i32, %c0_i32_0 : i32, i32
  }
  func.func @transform_2(%arg0: i32, %arg1: i32) -> (i32, i32) {
    %c0_i32 = arith.constant 0 : i32
    %c0_i32_0 = arith.constant 0 : i32
    %c0_i32_1 = arith.constant 0 : i32
    return %c0_i32, %c0_i32_0 : i32, i32
  }
  func.func @transform_3(%arg0: i32, %arg1: i32) -> (i32, i32, i32) {
    %c0_i32 = arith.constant 0 : i32
    %c0_i32_0 = arith.constant 0 : i32
    return %arg0, %c0_i32, %arg1 : i32, i32, i32
  }
  func.func @transform_4(%arg0: i32, %arg1: i32) -> (i32, i32, i32) {
    %c0_i32 = arith.constant 0 : i32
    %c0_i32_0 = arith.constant 0 : i32
    return %arg0, %c0_i32, %arg1 : i32, i32, i32
  }
}

module attributes {stable_mosaic.version = 11 : i64} {
  func.func @_conv_mm_kernel(%arg0: i32, %arg1: i32, %arg2: memref<8x16xbf16, #tpu.memory_space<vmem>>, %arg3: memref<8x1xf32, #tpu.memory_space<vmem>>, %arg4: memref<8x1xf32, #tpu.memory_space<vmem>>, %arg5: memref<1x16x512xbf16, #tpu.memory_space<vmem>>, %arg6: memref<1x8x512xbf16, #tpu.memory_space<vmem>>) attributes {dimension_semantics = [#tpu.dimension_semantics<parallel>, #tpu.dimension_semantics<parallel>], iteration_bounds = array<i64: 2, 1>, scalar_prefetch = 0 : i64, scratch_operands = 0 : i64, tpu.core_type = #tpu.core_type<tc>, window_params = [{pipeline_mode = #tpu.pipeline_mode<synchronous>, transform_indices = @transform_0, window_bounds = array<i64: 8, 16>}, {pipeline_mode = #tpu.pipeline_mode<synchronous>, transform_indices = @transform_1, window_bounds = array<i64: 8, 1>}, {pipeline_mode = #tpu.pipeline_mode<synchronous>, transform_indices = @transform_2, window_bounds = array<i64: 8, 1>}, {transform_indices = @transform_3, window_bounds = array<i64: 1, 16, 512>}, {transform_indices = @transform_4, window_bounds = array<i64: 1, 8, 512>}]} {
    %c0 = arith.constant 0 : index
    %c0_0 = arith.constant 0 : index
    %0 = vector.load %arg2[%c0, %c0_0] : memref<8x16xbf16, #tpu.memory_space<vmem>>, vector<8x16xbf16>
    %c0_1 = arith.constant 0 : index
    %c0_2 = arith.constant 0 : index
    %c0_3 = arith.constant 0 : index
    %1 = vector.load %arg5[%c0_1, %c0_2, %c0_3] : memref<1x16x512xbf16, #tpu.memory_space<vmem>>, vector<1x16x512xbf16>
    %2 = vector.shape_cast %1 : vector<1x16x512xbf16> to vector<16x512xbf16>
    %cst = arith.constant dense<0.000000e+00> : vector<8x512xf32>
    %3 = tpu.matmul %0, %2, %cst {dimension_numbers = #tpu.dot_dimension_numbers<[1], [0], [0], [1], [0, 0, 1, 1], [], []>} : vector<8x16xbf16>, vector<16x512xbf16>, vector<8x512xf32> -> vector<8x512xf32>
    %c0_4 = arith.constant 0 : index
    %c0_5 = arith.constant 0 : index
    %4 = vector.load %arg3[%c0_4, %c0_5] : memref<8x1xf32, #tpu.memory_space<vmem>>, vector<8x1xf32>
    %5 = vector.broadcast %4 : vector<8x1xf32> to vector<8x512xf32>
    %6 = arith.mulf %3, %5 : vector<8x512xf32>
    %c0_6 = arith.constant 0 : index
    %c0_7 = arith.constant 0 : index
    %7 = vector.load %arg4[%c0_6, %c0_7] : memref<8x1xf32, #tpu.memory_space<vmem>>, vector<8x1xf32>
    %8 = vector.broadcast %7 : vector<8x1xf32> to vector<8x512xf32>
    %9 = arith.addf %6, %8 : vector<8x512xf32>
    %cst_8 = arith.constant 0.000000e+00 : f32
    %10 = vector.broadcast %cst_8 : f32 to vector<8x512xf32>
    %11 = arith.maximumf %9, %10 : vector<8x512xf32>
    %12 = arith.truncf %11 : vector<8x512xf32> to vector<8x512xbf16>
    %c0_9 = arith.constant 0 : index
    %c0_10 = arith.constant 0 : index
    %c0_11 = arith.constant 0 : index
    %13 = vector.load %arg6[%c0_9, %c0_10, %c0_11] : memref<1x8x512xbf16, #tpu.memory_space<vmem>>, vector<1x8x512xbf16>
    %14 = vector.shape_cast %13 : vector<1x8x512xbf16> to vector<8x512xbf16>
    %15 = vector.shape_cast %12 : vector<8x512xbf16> to vector<1x8x512xbf16>
    tpu.vector_store %arg6[%c0_9, %c0_10, %c0_11], %15 {strides = array<i32>} : memref<1x8x512xbf16, #tpu.memory_space<vmem>>, vector<1x8x512xbf16>,
    return
  }
  func.func @transform_0(%arg0: i32, %arg1: i32) -> (i32, i32) {
    %c0_i32 = arith.constant 0 : i32
    %c0_i32_0 = arith.constant 0 : i32
    %c0_i32_1 = arith.constant 0 : i32
    return %c0_i32, %c0_i32_0 : i32, i32
  }
  func.func @transform_1(%arg0: i32, %arg1: i32) -> (i32, i32) {
    %c0_i32 = arith.constant 0 : i32
    %c0_i32_0 = arith.constant 0 : i32
    %c0_i32_1 = arith.constant 0 : i32
    return %c0_i32, %c0_i32_0 : i32, i32
  }
  func.func @transform_2(%arg0: i32, %arg1: i32) -> (i32, i32) {
    %c0_i32 = arith.constant 0 : i32
    %c0_i32_0 = arith.constant 0 : i32
    %c0_i32_1 = arith.constant 0 : i32
    return %c0_i32, %c0_i32_0 : i32, i32
  }
  func.func @transform_3(%arg0: i32, %arg1: i32) -> (i32, i32, i32) {
    %c0_i32 = arith.constant 0 : i32
    %c0_i32_0 = arith.constant 0 : i32
    return %arg0, %c0_i32, %arg1 : i32, i32, i32
  }
  func.func @transform_4(%arg0: i32, %arg1: i32) -> (i32, i32, i32) {
    %c0_i32 = arith.constant 0 : i32
    %c0_i32_0 = arith.constant 0 : i32
    return %arg0, %c0_i32, %arg1 : i32, i32, i32
  }
}

module attributes {stable_mosaic.version = 11 : i64} {
  func.func @_sp_attn_kernel(%arg0: i32, %arg1: memref<1x8x512xbf16, #tpu.memory_space<vmem>>, %arg2: memref<1x8x512xbf16, #tpu.memory_space<vmem>>, %arg3: memref<1x8x512xbf16, #tpu.memory_space<vmem>>, %arg4: memref<1x16x512xbf16, #tpu.memory_space<vmem>>, %arg5: memref<1x16x512xf32, #tpu.memory_space<vmem>>) attributes {dimension_semantics = [#tpu.dimension_semantics<parallel>], iteration_bounds = array<i64: 2>, scalar_prefetch = 0 : i64, scratch_operands = 0 : i64, tpu.core_type = #tpu.core_type<tc>, window_params = [{transform_indices = @transform_0, window_bounds = array<i64: 1, 8, 512>}, {transform_indices = @transform_1, window_bounds = array<i64: 1, 8, 512>}, {transform_indices = @transform_2, window_bounds = array<i64: 1, 8, 512>}, {transform_indices = @transform_3, window_bounds = array<i64: 1, 16, 512>}, {transform_indices = @transform_4, window_bounds = array<i64: 1, 16, 512>}]} {
    %c0 = arith.constant 0 : index
    %c4 = arith.constant 4 : index
    %c0_0 = arith.constant 0 : index
    %0 = vector.load %arg1[%c0, %c4, %c0_0] : memref<1x8x512xbf16, #tpu.memory_space<vmem>>, vector<1x4x512xbf16>
    %1 = vector.shape_cast %0 : vector<1x4x512xbf16> to vector<4x512xbf16>
    %2 = arith.extf %1 : vector<4x512xbf16> to vector<4x512xf32>
    %cst = arith.constant dense<0.000000e+00> : vector<4xf32>
    %3 = vector.multi_reduction <add>, %2, %cst [1] : vector<4x512xf32> to vector<4xf32>
    %4 = vector.shape_cast %3 : vector<4xf32> to vector<4x1xf32>
    %cst_1 = arith.constant 5.120000e+02 : f32
    %5 = vector.broadcast %cst_1 : f32 to vector<4x1xf32>
    %6 = arith.divf %4, %5 : vector<4x1xf32>
    %c0_2 = arith.constant 0 : index
    %c4_3 = arith.constant 4 : index
    %c0_4 = arith.constant 0 : index
    %7 = vector.load %arg2[%c0_2, %c4_3, %c0_4] : memref<1x8x512xbf16, #tpu.memory_space<vmem>>, vector<1x4x512xbf16>
    %8 = vector.shape_cast %7 : vector<1x4x512xbf16> to vector<4x512xbf16>
    %9 = arith.extf %8 : vector<4x512xbf16> to vector<4x512xf32>
    %cst_5 = arith.constant dense<0.000000e+00> : vector<4xf32>
    %10 = vector.multi_reduction <add>, %9, %cst_5 [1] : vector<4x512xf32> to vector<4xf32>
    %11 = vector.shape_cast %10 : vector<4xf32> to vector<4x1xf32>
    %cst_6 = arith.constant 5.120000e+02 : f32
    %12 = vector.broadcast %cst_6 : f32 to vector<4x1xf32>
    %13 = arith.divf %11, %12 : vector<4x1xf32>
    %c0_7 = arith.constant 0 : index
    %c4_8 = arith.constant 4 : index
    %c0_9 = arith.constant 0 : index
    %14 = vector.load %arg3[%c0_7, %c4_8, %c0_9] : memref<1x8x512xbf16, #tpu.memory_space<vmem>>, vector<1x4x512xbf16>
    %15 = vector.shape_cast %14 : vector<1x4x512xbf16> to vector<4x512xbf16>
    %16 = arith.extf %15 : vector<4x512xbf16> to vector<4x512xf32>
    %cst_10 = arith.constant dense<0.000000e+00> : vector<4xf32>
    %17 = vector.multi_reduction <add>, %16, %cst_10 [1] : vector<4x512xf32> to vector<4xf32>
    %18 = vector.shape_cast %17 : vector<4xf32> to vector<4x1xf32>
    %cst_11 = arith.constant 5.120000e+02 : f32
    %19 = vector.broadcast %cst_11 : f32 to vector<4x1xf32>
    %20 = arith.divf %18, %19 : vector<4x1xf32>
    %cst_12 = arith.constant dense<0xFF800000> : vector<1xf32>
    %21 = vector.multi_reduction <maximumf>, %6, %cst_12 [0] : vector<4x1xf32> to vector<1xf32>
    %22 = vector.shape_cast %21 : vector<1xf32> to vector<1x1xf32>
    %cst_13 = arith.constant dense<0xFF800000> : vector<1xf32>
    %23 = vector.multi_reduction <maximumf>, %13, %cst_13 [0] : vector<4x1xf32> to vector<1xf32>
    %24 = vector.shape_cast %23 : vector<1xf32> to vector<1x1xf32>
    %25 = arith.maximumf %22, %24 : vector<1x1xf32>
    %cst_14 = arith.constant dense<0xFF800000> : vector<1xf32>
    %26 = vector.multi_reduction <maximumf>, %20, %cst_14 [0] : vector<4x1xf32> to vector<1xf32>
    %27 = vector.shape_cast %26 : vector<1xf32> to vector<1x1xf32>
    %28 = arith.maximumf %25, %27 : vector<1x1xf32>
    %cst_15 = arith.constant 0.000000e+00 : f32
    %29 = vector.broadcast %cst_15 : f32 to vector<1x1xf32>
    %cst_16 = arith.constant 0.000000e+00 : f32
    %30 = vector.broadcast %cst_16 : f32 to vector<1x512xf32>
    %31 = vector.broadcast %28 : vector<1x1xf32> to vector<4x1xf32>
    %32 = arith.subf %6, %31 : vector<4x1xf32>
    %33 = math.exp %32 : vector<4x1xf32>
    %cst_17 = arith.constant dense<0.000000e+00> : vector<1xf32>
    %34 = vector.multi_reduction <add>, %33, %cst_17 [0] : vector<4x1xf32> to vector<1xf32>
    %35 = vector.shape_cast %34 : vector<1xf32> to vector<1x1xf32>
    %36 = arith.addf %29, %35 : vector<1x1xf32>
    %c0_18 = arith.constant 0 : index
    %c0_19 = arith.constant 0 : index
    %c0_20 = arith.constant 0 : index
    %37 = vector.load %arg1[%c0_18, %c0_19, %c0_20] : memref<1x8x512xbf16, #tpu.memory_space<vmem>>, vector<1x4x512xbf16>
    %38 = vector.shape_cast %37 : vector<1x4x512xbf16> to vector<4x512xbf16>
    %39 = arith.extf %38 : vector<4x512xbf16> to vector<4x512xf32>
    %40 = vector.broadcast %33 : vector<4x1xf32> to vector<4x512xf32>
    %41 = arith.mulf %40, %39 : vector<4x512xf32>
    %cst_21 = arith.constant dense<0.000000e+00> : vector<512xf32>
    %42 = vector.multi_reduction <add>, %41, %cst_21 [0] : vector<4x512xf32> to vector<512xf32>
    %43 = vector.shape_cast %42 : vector<512xf32> to vector<1x512xf32>
    %44 = arith.addf %30, %43 : vector<1x512xf32>
    %45 = vector.broadcast %28 : vector<1x1xf32> to vector<4x1xf32>
    %46 = arith.subf %13, %45 : vector<4x1xf32>
    %47 = math.exp %46 : vector<4x1xf32>
    %cst_22 = arith.constant dense<0.000000e+00> : vector<1xf32>
    %48 = vector.multi_reduction <add>, %47, %cst_22 [0] : vector<4x1xf32> to vector<1xf32>
    %49 = vector.shape_cast %48 : vector<1xf32> to vector<1x1xf32>
    %50 = arith.addf %36, %49 : vector<1x1xf32>
    %c0_23 = arith.constant 0 : index
    %c0_24 = arith.constant 0 : index
    %c0_25 = arith.constant 0 : index
    %51 = vector.load %arg2[%c0_23, %c0_24, %c0_25] : memref<1x8x512xbf16, #tpu.memory_space<vmem>>, vector<1x4x512xbf16>
    %52 = vector.shape_cast %51 : vector<1x4x512xbf16> to vector<4x512xbf16>
    %53 = arith.extf %52 : vector<4x512xbf16> to vector<4x512xf32>
    %54 = vector.broadcast %47 : vector<4x1xf32> to vector<4x512xf32>
    %55 = arith.mulf %54, %53 : vector<4x512xf32>
    %cst_26 = arith.constant dense<0.000000e+00> : vector<512xf32>
    %56 = vector.multi_reduction <add>, %55, %cst_26 [0] : vector<4x512xf32> to vector<512xf32>
    %57 = vector.shape_cast %56 : vector<512xf32> to vector<1x512xf32>
    %58 = arith.addf %44, %57 : vector<1x512xf32>
    %59 = vector.broadcast %28 : vector<1x1xf32> to vector<4x1xf32>
    %60 = arith.subf %20, %59 : vector<4x1xf32>
    %61 = math.exp %60 : vector<4x1xf32>
    %cst_27 = arith.constant dense<0.000000e+00> : vector<1xf32>
    %62 = vector.multi_reduction <add>, %61, %cst_27 [0] : vector<4x1xf32> to vector<1xf32>
    %63 = vector.shape_cast %62 : vector<1xf32> to vector<1x1xf32>
    %64 = arith.addf %50, %63 : vector<1x1xf32>
    %c0_28 = arith.constant 0 : index
    %c0_29 = arith.constant 0 : index
    %c0_30 = arith.constant 0 : index
    %65 = vector.load %arg3[%c0_28, %c0_29, %c0_30] : memref<1x8x512xbf16, #tpu.memory_space<vmem>>, vector<1x4x512xbf16>
    %66 = vector.shape_cast %65 : vector<1x4x512xbf16> to vector<4x512xbf16>
    %67 = arith.extf %66 : vector<4x512xbf16> to vector<4x512xf32>
    %68 = vector.broadcast %61 : vector<4x1xf32> to vector<4x512xf32>
    %69 = arith.mulf %68, %67 : vector<4x512xf32>
    %cst_31 = arith.constant dense<0.000000e+00> : vector<512xf32>
    %70 = vector.multi_reduction <add>, %69, %cst_31 [0] : vector<4x512xf32> to vector<512xf32>
    %71 = vector.shape_cast %70 : vector<512xf32> to vector<1x512xf32>
    %72 = arith.addf %58, %71 : vector<1x512xf32>
    %73 = vector.broadcast %64 : vector<1x1xf32> to vector<1x512xf32>
    %74 = arith.divf %72, %73 : vector<1x512xf32>
    %75 = arith.negf %74 : vector<1x512xf32>
    %76 = math.exp %75 : vector<1x512xf32>
    %cst_32 = arith.constant 1.000000e+00 : f32
    %77 = vector.broadcast %cst_32 : f32 to vector<1x512xf32>
    %78 = arith.addf %77, %76 : vector<1x512xf32>
    %79 = arith.divf %77, %78 : vector<1x512xf32>
    %c0_33 = arith.constant 0 : index
    %c0_34 = arith.constant 0 : index
    %c0_35 = arith.constant 0 : index
    %80 = vector.load %arg4[%c0_33, %c0_34, %c0_35] : memref<1x16x512xbf16, #tpu.memory_space<vmem>>, vector<1x16x512xbf16>
    %81 = vector.shape_cast %80 : vector<1x16x512xbf16> to vector<16x512xbf16>
    %82 = arith.extf %81 : vector<16x512xbf16> to vector<16x512xf32>
    %83 = vector.broadcast %79 : vector<1x512xf32> to vector<16x512xf32>
    %84 = arith.mulf %82, %83 : vector<16x512xf32>
    %c0_36 = arith.constant 0 : index
    %c0_37 = arith.constant 0 : index
    %c0_38 = arith.constant 0 : index
    %85 = vector.load %arg5[%c0_36, %c0_37, %c0_38] : memref<1x16x512xf32, #tpu.memory_space<vmem>>, vector<1x16x512xf32>
    %86 = vector.shape_cast %85 : vector<1x16x512xf32> to vector<16x512xf32>
    %87 = vector.shape_cast %84 : vector<16x512xf32> to vector<1x16x512xf32>
    tpu.vector_store %arg5[%c0_36, %c0_37, %c0_38], %87 {strides = array<i32>} : memref<1x16x512xf32, #tpu.memory_space<vmem>>, vector<1x16x512xf32>,
    return
  }
  func.func @transform_0(%arg0: i32) -> (i32, i32, i32) {
    %c0_i32 = arith.constant 0 : i32
    %c0_i32_0 = arith.constant 0 : i32
    %c0_i32_1 = arith.constant 0 : i32
    return %arg0, %c0_i32, %c0_i32_0 : i32, i32, i32
  }
  func.func @transform_1(%arg0: i32) -> (i32, i32, i32) {
    %c0_i32 = arith.constant 0 : i32
    %c0_i32_0 = arith.constant 0 : i32
    %c0_i32_1 = arith.constant 0 : i32
    return %arg0, %c0_i32, %c0_i32_0 : i32, i32, i32
  }
  func.func @transform_2(%arg0: i32) -> (i32, i32, i32) {
    %c0_i32 = arith.constant 0 : i32
    %c0_i32_0 = arith.constant 0 : i32
    %c0_i32_1 = arith.constant 0 : i32
    return %arg0, %c0_i32, %c0_i32_0 : i32, i32, i32
  }
  func.func @transform_3(%arg0: i32) -> (i32, i32, i32) {
    %c0_i32 = arith.constant 0 : i32
    %c0_i32_0 = arith.constant 0 : i32
    %c0_i32_1 = arith.constant 0 : i32
    return %arg0, %c0_i32, %c0_i32_0 : i32, i32, i32
  }
  func.func @transform_4(%arg0: i32) -> (i32, i32, i32) {
    %c0_i32 = arith.constant 0 : i32
    %c0_i32_0 = arith.constant 0 : i32
    %c0_i32_1 = arith.constant 0 : i32
    return %arg0, %c0_i32, %c0_i32_0 : i32, i32, i32
  }
}

</mosaic_0001>

<bundles_post_ra>
// kernel: forward.9
= control target key start
LH: loop header
LB: loop body
LE: loop exit
PB: predicated region body
PF: predicated region fallthrough
CT: control target
= control target key end

     0   :  { %s840_s15 = smov 0   ;;  %s842_s16 = smov 0   ;;  %s922_s0 = inlined_call_operand.vmem [shape: bf16[16,108], index: 0, kind: input, shape index: {}]   ;;  %s923_s1 = inlined_call_operand.vmem [shape: f32[16,1], index: 1, kind: input, shape index: {}]   ;;  %s924_s2 = inlined_call_operand.vmem [shape: f32[16,1], index: 2, kind: input, shape index: {}]   ;;  %s925_s3 = inlined_call_operand.vmem [shape: bf16[2,108,512], index: 3, kind: input, shape index: {}]   ;;  %s926_s4 = inlined_call_operand.vmem [shape: bf16[2,16,512], index: 4, kind: output, shape index: {}]  }
   0x1   :  { %s844_s17 = smov 0  }
   0x2 LB: > { %s26_s18 = sadd.s32 1, %s808_s16  ;;  %p671_p0 = scmp.ge.s32.totalorder %s812_s17, 1  ;;  %s812_s17 = sphi %s844_s17, %s14_s17   ;;  %s808_s16 = sphi %s842_s16, %s928_s16   ;;  %s804_s15 = sphi %s840_s15, %s927_s15  }
   0x3   : > { %p28_p1 = scmp.ge.s32.totalorder %s26_s18, 2  ;;  %p183_p2 = scmp.lt.s32.totalorder %s812_s17, 3 }
   0x5   : > { %s930_s18 = smov (%p28_p1, %s26_s18), 0  ;;  %p184_p3 = pnand %p671_p0, %p183_p2 }
   0x6   : > { %p218_p4 = scmp.lt.s32.totalorder (!%p184_p3), %s804_s15, 1 }
   0x7   : > { %187 = sbr.rel (%p184_p3) target bundleno = 253 (0xfd), region = 36 }
   0xc   : > { %v814_v0 = vmov 0   ;;  %v512_v1 = vld [vmem:[%s923_s1] sm:$0xff]  ;;  %s932_s15 = smov (!%p218_p4, %s804_s15), 1  ;;  %v513_v3 = vld [vmem:[%s923_s1 + $0x8] sm:$0xff]  ;;  %vm413_vm0 = vcmask 1045504   ;;  %vm409_vm1 = vcmask 883712  }
   0xd   : > { %458 = vmatprep.mubr.bf16.mxu0 %v814_v0  ;;  %501 = vmatprep.mubr.bf16.mxu1 %v814_v0  ;;  %v532_v2 = vld [vmem:[%s924_s2] sm:$0xff]  ;;  %s719_s23 = smul.u32 224, %s932_s15  ;;  %v533_v4 = vld [vmem:[%s924_s2 + $0x8] sm:$0xff]  ;;  %s714_s7 = sshll.u32 %s932_s15, 5 }
   0xe   : > { %745 = vset.pattern.permute.xlu0 %v814_v0  ;;  %746 = vset.pattern.permute.xlu1 %v814_v0  ;;  %v789_v35 = vld [vmem:[%s922_s0] sm:$0xff]   ;;  %s235_s10 = scalar_lea.vmem %s926_s4, %s714_s7 }
   0xf   : > { %516 = vperm.xlu0 %745, %v512_v1   ;;  %536 = vperm.xlu1 %746, %v532_v2   ;;  %s876_s30 = scalar_lea.vmem %s925_s3, %s719_s23 }
  0x10   : > { %v747_v5 = vld [vmem:[%s876_s30 + $0xc4] ss:$16 sps:$4 sm:$0x3f]   ;;  %v749_v6 = vld [vmem:[%s876_s30 + $0xcc] ss:$16 sps:$4 sm:$0x3f]  }
  0x11   : > { %704 = vmatprep.subr.msk.bf16.mxu0 %vm413_vm0, %v747_v5  ;;  %v751_v7 = vld [vmem:[%s876_s30 + $0xc0] ss:$16 sps:$4 sm:$0x3f]   ;;  %v752_v8 = vld [vmem:[%s876_s30 + $0xc8] ss:$16 sps:$4 sm:$0x3f]   ;;  %706 = vmatprep.subr.msk.bf16.mxu1 %vm413_vm0, %v749_v6 }
  0x12   : > { %v753_v9 = vld [vmem:[%s876_s30 + $0xa4] ss:$16 sps:$4 sm:$0xff]   ;;  %v415_v10 = vsel %vm413_vm0, %v751_v7, 0  ;;  %v421_v11 = vsel %vm413_vm0, %v752_v8, 0  ;;  %v755_v12 = vld [vmem:[%s876_s30 + $0xac] ss:$16 sps:$4 sm:$0xff]  }
  0x13   : > { %521 = vperm.xlu0 %745, %v513_v3   ;;  %541 = vperm.xlu1 %746, %v533_v4   ;;  %v757_v13 = vld [vmem:[%s876_s30 + $0xa0] ss:$16 sps:$4 sm:$0xff]   ;;  %v758_v14 = vld [vmem:[%s876_s30 + $0xa8] ss:$16 sps:$4 sm:$0xff]   ;;  %v759_v15 = vld [vmem:[%s876_s30 + $0x84] ss:$16 sps:$4 sm:$0xff]  }
  0x14   : > { %429 = vmatpush1.bf16.msra.mxu0 %v415_v10  ;;  %472 = vmatpush1.bf16.msra.mxu1 %v421_v11  ;;  %v761_v16 = vld [vmem:[%s876_s30 + $0x8c] ss:$16 sps:$4 sm:$0xff]   ;;  %v763_v17 = vld [vmem:[%s876_s30 + $0x80] ss:$16 sps:$4 sm:$0xff]   ;;  %v764_v18 = vld [vmem:[%s876_s30 + $0x88] ss:$16 sps:$4 sm:$0xff]  }
  0x15   : > { %430 = vmatprep.subr.bf16.mxu0 %v753_v9  ;;  %473 = vmatprep.subr.bf16.mxu1 %v755_v12  ;;  %v765_v19 = vld [vmem:[%s876_s30 + $0x64] ss:$16 sps:$4 sm:$0xff]   ;;  %v767_v20 = vld [vmem:[%s876_s30 + $0x6c] ss:$16 sps:$4 sm:$0xff]   ;;  %v769_v21 = vld [vmem:[%s876_s30 + $0x60] ss:$16 sps:$4 sm:$0xff]  }
  0x16   : > { %v770_v22 = vld [vmem:[%s876_s30 + $0x68] ss:$16 sps:$4 sm:$0xff]   ;;  %v771_v23 = vld [vmem:[%s876_s30 + $0x44] ss:$16 sps:$4 sm:$0xff]   ;;  %v773_v24 = vld [vmem:[%s876_s30 + $0x4c] ss:$16 sps:$4 sm:$0xff]  }
  0x17   : > { %v775_v25 = vld [vmem:[%s876_s30 + $0x40] ss:$16 sps:$4 sm:$0xff]   ;;  %v776_v26 = vld [vmem:[%s876_s30 + $0x48] ss:$16 sps:$4 sm:$0xff]   ;;  %v777_v27 = vld [vmem:[%s876_s30 + $0x24] ss:$16 sps:$4 sm:$0xff]  }
  0x18   : > { %431 = vmatpush1.bf16.msra.mxu0 %v757_v13  ;;  %474 = vmatpush1.bf16.msra.mxu1 %v758_v14  ;;  %v779_v28 = vld [vmem:[%s876_s30 + $0x2c] ss:$16 sps:$4 sm:$0xff]   ;;  %v781_v29 = vld [vmem:[%s876_s30 + $0x20] ss:$16 sps:$4 sm:$0xff]   ;;  %v782_v30 = vld [vmem:[%s876_s30 + $0x28] ss:$16 sps:$4 sm:$0xff]  }
  0x19   : > { %432 = vmatprep.subr.bf16.mxu0 %v759_v15  ;;  %475 = vmatprep.subr.bf16.mxu1 %v761_v16  ;;  %v783_v31 = vld [vmem:[%s876_s30 + $0x4] ss:$16 sps:$4 sm:$0xff]   ;;  %v785_v32 = vld [vmem:[%s876_s30 + $0xc] ss:$16 sps:$4 sm:$0xff]   ;;  %v787_v33 = vld [vmem:[%s876_s30] ss:$16 sps:$4 sm:$0xff]  }
  0x1a   : > { %v788_v34 = vld [vmem:[%s876_s30 + $0x8] ss:$16 sps:$4 sm:$0xff]  }
  0x1c   : > { %433 = vmatpush1.bf16.msra.mxu0 %v763_v17  ;;  %476 = vmatpush1.bf16.msra.mxu1 %v764_v18 }
  0x1d   : > { %434 = vmatprep.subr.bf16.mxu0 %v765_v19  ;;  %477 = vmatprep.subr.bf16.mxu1 %v767_v20 }
  0x20   : > { %435 = vmatpush1.bf16.msra.mxu0 %v769_v21  ;;  %478 = vmatpush1.bf16.msra.mxu1 %v770_v22 }
  0x21   : > { %436 = vmatprep.subr.bf16.mxu0 %v771_v23  ;;  %479 = vmatprep.subr.bf16.mxu1 %v773_v24 }
  0x24   : > { %437 = vmatpush1.bf16.msra.mxu0 %v775_v25  ;;  %480 = vmatpush1.bf16.msra.mxu1 %v776_v26 }
  0x25   : > { %438 = vmatprep.subr.bf16.mxu0 %v777_v27  ;;  %481 = vmatprep.subr.bf16.mxu1 %v779_v28 }
  0x28   : > { %439 = vmatpush1.bf16.msra.mxu0 %v781_v29  ;;  %482 = vmatpush1.bf16.msra.mxu1 %v782_v30 }
  0x29   : > { %440 = vmatprep.subr.bf16.mxu0 %v783_v31  ;;  %483 = vmatprep.subr.bf16.mxu1 %v785_v32 }
  0x2c   : > { %441 = vmatpush1.bf16.msra.mxu0 %v787_v33  ;;  %484 = vmatpush1.bf16.msra.mxu1 %v788_v34 }
  0x2f   : > { %705 = vmatmul.mubr.msk.bf16.vlgmr.msra.gmra.mxu0 %vm409_vm1, %v789_v35  ;;  %707 = vmatmul.mubr.msk.bf16.vlgmr.msra.gmra.mxu1 %vm409_vm1, %v789_v35 }
  0x8a   : > { %v517_v36 = vpop.permute.xlu0 %516  ;;  %v537_v43 = vpop.permute.xlu1 %536 }
  0x8e   : > { %v522_v50 = vpop.permute.xlu0 %521  ;;  %v542_v61 = vpop.permute.xlu1 %541 }
  0xef   : > { %v460_v37 = vpop.f32.mrf.mxu0  ;;  %v503_v38 = vpop.f32.mrf.mxu1 }
  0xf0   : > { %v524_v39 = vmul.f32 %v517_v36, %v460_v37  ;;  %v526_v40 = vmul.f32 %v517_v36, %v503_v38 }
  0xf1   : > { %v462_v41 = vpop.f32.mrf.mxu0  ;;  %v505_v42 = vpop.f32.mrf.mxu1 }
  0xf2   : > { %v525_v44 = vmul.f32 %v517_v36, %v462_v41  ;;  %v527_v45 = vmul.f32 %v517_v36, %v505_v42  ;;  %v544_v48 = vadd.f32 %v537_v43, %v524_v39  ;;  %v546_v49 = vadd.f32 %v537_v43, %v526_v40 }
  0xf3   : > { %v464_v46 = vpop.f32.mrf.mxu0  ;;  %v507_v47 = vpop.f32.mrf.mxu1 }
  0xf4   : > { %v545_v51 = vadd.f32 %v537_v43, %v525_v44  ;;  %v547_v52 = vadd.f32 %v537_v43, %v527_v45  ;;  %v528_v53 = vmul.f32 %v522_v50, %v464_v46  ;;  %v530_v54 = vmul.f32 %v522_v50, %v507_v47 }
  0xf5   : > { %v466_v55 = vpop.f32.mrf.mxu0  ;;  %v509_v56 = vpop.f32.mrf.mxu1 }
  0xf6   : > { %v715_v57 = vpack.c.bf16 %v545_v51, %v544_v48  ;;  %v716_v58 = vpack.c.bf16 %v547_v52, %v546_v49  ;;  %v529_v59 = vmul.f32 %v522_v50, %v466_v55  ;;  %v531_v60 = vmul.f32 %v522_v50, %v509_v56 }
  0xf7   : > { %v548_v62 = vadd.f32 %v542_v61, %v528_v53  ;;  %v550_v63 = vadd.f32 %v542_v61, %v530_v54 }
  0xf8   : > { %576 = vst [vmem:[%s235_s10] sm:$0xff] %v715_v57  ;;  %577 = vst [vmem:[%s235_s10 + $0x8] sm:$0xff] %v716_v58  ;;  %v549_v0 = vadd.f32 %v542_v61, %v529_v59  ;;  %v551_v1 = vadd.f32 %v542_v61, %v531_v60 }
  0xfa   : > { %v717_v2 = vpack.c.bf16 %v549_v0, %v548_v62  ;;  %v718_v3 = vpack.c.bf16 %v551_v1, %v550_v63 }
  0xfc   : > { %578 = vst [vmem:[%s235_s10 + $0x10] sm:$0xff] %v717_v2  ;;  %579 = vst [vmem:[%s235_s10 + $0x18] sm:$0xff] %v718_v3 }
  0xfd PF: > { %s14_s17 = sadd.s32 1, %s812_s17   ;;  %s927_s15 = smov %s808_s16 }
  0xfe   : > { %p11_p5 = scmp.ge.s32.totalorder %s14_s17, 4   ;;  %s928_s16 = smov %s930_s18 }
 0x100   :  { %13 = sbr.rel (!%p11_p5) target bundleno = 2 (0x2), region = 66 }

// kernel: forward.11
= control target key start
LH: loop header
LB: loop body
LE: loop exit
PB: predicated region body
PF: predicated region fallthrough
CT: control target
= control target key end

     0   :  { %s1581_s15 = smov 0   ;;  %s1583_s16 = smov 0   ;;  %s1792_s0 = inlined_call_operand.vmem [shape: bf16[5,432], index: 0, kind: input, shape index: {}]   ;;  %s1793_s1 = inlined_call_operand.vmem [shape: f32[5,1], index: 1, kind: input, shape index: {}]   ;;  %s1794_s2 = inlined_call_operand.vmem [shape: f32[5,1], index: 2, kind: input, shape index: {}]   ;;  %s1795_s3 = inlined_call_operand.vmem [shape: bf16[2,432,512], index: 3, kind: input, shape index: {}]   ;;  %s1796_s4 = inlined_call_operand.vmem [shape: bf16[2,5,512], index: 4, kind: output, shape index: {}]  }
   0x1   :  { %s1585_s17 = smov 0  }
   0x2 LB: > { %s26_s18 = sadd.s32 1, %s1549_s16  ;;  %p1213_p0 = scmp.ge.s32.totalorder %s1553_s17, 1  ;;  %s1553_s17 = sphi %s1585_s17, %s14_s17   ;;  %s1549_s16 = sphi %s1583_s16, %s1802_s16   ;;  %s1545_s15 = sphi %s1581_s15, %s1801_s15  }
   0x3   : > { %p28_p1 = scmp.ge.s32.totalorder %s26_s18, 2  ;;  %p183_p2 = scmp.lt.s32.totalorder %s1553_s17, 3 }
   0x5   : > { %s1804_s18 = smov (%p28_p1, %s26_s18), 0  ;;  %p184_p3 = pnand %p1213_p0, %p183_p2 }
   0x6   : > { %p218_p4 = scmp.lt.s32.totalorder (!%p184_p3), %s1545_s15, 1 }
   0x7   : > { %187 = sbr.rel (%p184_p3) target bundleno = 333 (0x14d), region = 36 }
   0xc   : > { %v1602_v0 = vld [vmem:[%s1792_s0 + $0x8] sm:$0x77]  ;;  %vm901_vm0 = vcmask 392192   ;;  %v1607_v1 = vld [vmem:[%s1792_s0] sm:$0x77]  ;;  %s1806_s15 = smov (!%p218_p4, %s1545_s15), 1 }
   0xd   : > { %v1611_v2 = vcombine.high %v1602_v0, %v1602_v0  ;;  %v1615_v3 = vcombine.high %v1607_v1, %v1607_v1  ;;  %v1069_v4 = vld [vmem:[%s1793_s1] sm:$0x1f]  ;;  %s1338_s25 = smul.u32 864, %s1806_s15  ;;  %v1555_v5 = vmov 0   ;;  %v1682_v53 = vcombine.low %v1602_v0, %v1602_v0  ;;  %s1335_s5 = sshll.u32 %s1806_s15, 4 }
   0xe   : > { %1364 = vset.pattern.permute.xlu0 %v1555_v5  ;;  %v1079_v6 = vld [vmem:[%s1794_s2] sm:$0x1f]  ;;  %vm1109_vm1 = vcmask 1042432   ;;  %vm1110_vm2 = vsmask.f32 2304  ;;  %vm1112_vm3 = vcmask 1046532   ;;  %s235_s8 = scalar_lea.vmem %s1796_s4, %s1335_s5 }
   0xf   : > { %1329 = vmatprep.mubr.msk.bf16.mxu1 %vm901_vm0, %v1611_v2  ;;  %937 = vmatprep.mubr.bf16.mxu0 %v1615_v3  ;;  %s1629_s28 = scalar_lea.vmem %s1795_s3, %s1338_s25  ;;  %vm1113_vm4 = vsmask.f32 6400  ;;  %vm1758_vm5 = vmand %vm1109_vm1, %vm1110_vm2 }
  0x10   : > { %1072 = vperm.xlu0 %1364, %v1069_v4   ;;  %v1365_v7 = vld [vmem:[%s1629_s28 + $0xe4] ss:$16 sps:$4 sm:$0xff]   ;;  %v1369_v9 = vld [vmem:[%s1629_s28 + $0xe0] ss:$16 sps:$4 sm:$0xff]   ;;  %v1437_v52 = vld [vmem:[%s1629_s28 + $0xec] ss:$16 sps:$4 sm:$0xff]  }
  0x11   : > { %v1367_v8 = vld [vmem:[%s1629_s28 + $0x2e4] ss:$16 sps:$4 sm:$0xff]   ;;  %905 = vmatprep.subr.bf16.mxu0 %v1365_v7  ;;  %v1370_v10 = vld [vmem:[%s1629_s28 + $0x2e0] ss:$16 sps:$4 sm:$0xff]   ;;  %v1435_v54 = vld [vmem:[%s1629_s28 + $0xe8] ss:$16 sps:$4 sm:$0xff]  }
  0x12   : > { %946 = vmatprep.subr.bf16.mxu1 %v1367_v8  ;;  %v1371_v11 = vld [vmem:[%s1629_s28 + $0xc4] ss:$16 sps:$4 sm:$0xff]   ;;  %906 = vmatpush1.bf16.msra.mxu0 %v1369_v9  ;;  %v1375_v13 = vld [vmem:[%s1629_s28 + $0xc0] ss:$16 sps:$4 sm:$0xff]   ;;  %v1443_v57 = vld [vmem:[%s1629_s28 + $0xcc] ss:$16 sps:$4 sm:$0xff]  }
  0x13   : > { %947 = vmatpush1.bf16.msra.mxu1 %v1370_v10  ;;  %v1373_v12 = vld [vmem:[%s1629_s28 + $0x2c4] ss:$16 sps:$4 sm:$0xff]   ;;  %907 = vmatprep.subr.bf16.mxu0 %v1371_v11  ;;  %v1376_v14 = vld [vmem:[%s1629_s28 + $0x2c0] ss:$16 sps:$4 sm:$0xff]   ;;  %v1441_v58 = vld [vmem:[%s1629_s28 + $0xc8] ss:$16 sps:$4 sm:$0xff]  }
  0x14   : > { %1082 = vperm.xlu0 %1364, %v1079_v6   ;;  %948 = vmatprep.subr.bf16.mxu1 %v1373_v12  ;;  %v1377_v15 = vld [vmem:[%s1629_s28 + $0xa4] ss:$16 sps:$4 sm:$0xff]   ;;  %v1381_v17 = vld [vmem:[%s1629_s28 + $0xa0] ss:$16 sps:$4 sm:$0xff]   ;;  %v1449_v61 = vld [vmem:[%s1629_s28 + $0xac] ss:$16 sps:$4 sm:$0xff]   ;;  %v1708_v12 = vcombine.low %v1607_v1, %v1607_v1 }
  0x15   : > { %v1379_v16 = vld [vmem:[%s1629_s28 + $0x2a4] ss:$16 sps:$4 sm:$0xff]   ;;  %v1382_v18 = vld [vmem:[%s1629_s28 + $0x2a0] ss:$16 sps:$4 sm:$0xff]   ;;  %v1447_v62 = vld [vmem:[%s1629_s28 + $0xa8] ss:$16 sps:$4 sm:$0xff]  }
  0x16   : > { %908 = vmatpush1.bf16.msra.mxu0 %v1375_v13  ;;  %v1383_v19 = vld [vmem:[%s1629_s28 + $0x84] ss:$16 sps:$4 sm:$0xff]   ;;  %v1387_v21 = vld [vmem:[%s1629_s28 + $0x80] ss:$16 sps:$4 sm:$0xff]   ;;  %v1455_v4 = vld [vmem:[%s1629_s28 + $0x8c] ss:$16 sps:$4 sm:$0xff]  }
  0x17   : > { %949 = vmatpush1.bf16.msra.mxu1 %v1376_v14  ;;  %909 = vmatprep.subr.bf16.mxu0 %v1377_v15  ;;  %v1385_v20 = vld [vmem:[%s1629_s28 + $0x284] ss:$16 sps:$4 sm:$0xff]   ;;  %v1388_v22 = vld [vmem:[%s1629_s28 + $0x280] ss:$16 sps:$4 sm:$0xff]   ;;  %v1453_v5 = vld [vmem:[%s1629_s28 + $0x88] ss:$16 sps:$4 sm:$0xff]  }
  0x18   : > { %950 = vmatprep.subr.bf16.mxu1 %v1379_v16  ;;  %v1389_v23 = vld [vmem:[%s1629_s28 + $0x64] ss:$16 sps:$4 sm:$0xff]   ;;  %v1393_v25 = vld [vmem:[%s1629_s28 + $0x60] ss:$16 sps:$4 sm:$0xff]   ;;  %v1461_v7 = vld [vmem:[%s1629_s28 + $0x6c] ss:$16 sps:$4 sm:$0xff]  }
  0x19   : > { %v1391_v24 = vld [vmem:[%s1629_s28 + $0x264] ss:$16 sps:$4 sm:$0xff]   ;;  %v1394_v26 = vld [vmem:[%s1629_s28 + $0x260] ss:$16 sps:$4 sm:$0xff]   ;;  %v1459_v8 = vld [vmem:[%s1629_s28 + $0x68] ss:$16 sps:$4 sm:$0xff]  }
  0x1a   : > { %910 = vmatpush1.bf16.msra.mxu0 %v1381_v17  ;;  %v1395_v27 = vld [vmem:[%s1629_s28 + $0x44] ss:$16 sps:$4 sm:$0xff]   ;;  %v1399_v29 = vld [vmem:[%s1629_s28 + $0x40] ss:$16 sps:$4 sm:$0xff]   ;;  %v1467_v10 = vld [vmem:[%s1629_s28 + $0x4c] ss:$16 sps:$4 sm:$0xff]  }
  0x1b   : > { %951 = vmatpush1.bf16.msra.mxu1 %v1382_v18  ;;  %911 = vmatprep.subr.bf16.mxu0 %v1383_v19  ;;  %v1397_v28 = vld [vmem:[%s1629_s28 + $0x244] ss:$16 sps:$4 sm:$0xff]   ;;  %v1400_v30 = vld [vmem:[%s1629_s28 + $0x240] ss:$16 sps:$4 sm:$0xff]   ;;  %v1470_v11 = vld [vmem:[%s1629_s28 + $0x2ec] ss:$16 sps:$4 sm:$0xff]  }
  0x1c   : > { %952 = vmatprep.subr.bf16.mxu1 %v1385_v20  ;;  %v1401_v31 = vld [vmem:[%s1629_s28 + $0x24] ss:$16 sps:$4 sm:$0xff]   ;;  %v1405_v33 = vld [vmem:[%s1629_s28 + $0x20] ss:$16 sps:$4 sm:$0xff]   ;;  %v1465_v13 = vld [vmem:[%s1629_s28 + $0x48] ss:$16 sps:$4 sm:$0xff]  }
  0x1d   : > { %v1403_v32 = vld [vmem:[%s1629_s28 + $0x224] ss:$16 sps:$4 sm:$0xff]   ;;  %v1406_v34 = vld [vmem:[%s1629_s28 + $0x220] ss:$16 sps:$4 sm:$0xff]   ;;  %v1468_v14 = vld [vmem:[%s1629_s28 + $0x2e8] ss:$16 sps:$4 sm:$0xff]  }
  0x1e   : > { %912 = vmatpush1.bf16.msra.mxu0 %v1387_v21  ;;  %v1407_v35 = vld [vmem:[%s1629_s28 + $0x4] ss:$16 sps:$4 sm:$0xff]   ;;  %v1411_v37 = vld [vmem:[%s1629_s28] ss:$16 sps:$4 sm:$0xff]   ;;  %v1473_v15 = vld [vmem:[%s1629_s28 + $0x2c] ss:$16 sps:$4 sm:$0xff]  }
  0x1f   : > { %953 = vmatpush1.bf16.msra.mxu1 %v1388_v22  ;;  %913 = vmatprep.subr.bf16.mxu0 %v1389_v23  ;;  %v1409_v36 = vld [vmem:[%s1629_s28 + $0x204] ss:$16 sps:$4 sm:$0xff]   ;;  %v1412_v38 = vld [vmem:[%s1629_s28 + $0x200] ss:$16 sps:$4 sm:$0xff]   ;;  %v1476_v16 = vld [vmem:[%s1629_s28 + $0x2cc] ss:$16 sps:$4 sm:$0xff]  }
  0x20   : > { %954 = vmatprep.subr.bf16.mxu1 %v1391_v24  ;;  %v1413_v39 = vld [vmem:[%s1629_s28 + $0x1e4] ss:$16 sps:$4 sm:$0xff]   ;;  %v1417_v41 = vld [vmem:[%s1629_s28 + $0x1e0] ss:$16 sps:$4 sm:$0xff]   ;;  %v1471_v17 = vld [vmem:[%s1629_s28 + $0x28] ss:$16 sps:$4 sm:$0xff]  }
  0x21   : > { %v1415_v40 = vld [vmem:[%s1629_s28 + $0x344] ss:$16 sps:$4 sm:$0xff]   ;;  %v1418_v42 = vld [vmem:[%s1629_s28 + $0x340] ss:$16 sps:$4 sm:$0xff]   ;;  %v1474_v18 = vld [vmem:[%s1629_s28 + $0x2c8] ss:$16 sps:$4 sm:$0xff]  }
  0x22   : > { %914 = vmatpush1.bf16.msra.mxu0 %v1393_v25  ;;  %v1419_v43 = vld [vmem:[%s1629_s28 + $0x1c4] ss:$16 sps:$4 sm:$0xff]   ;;  %v1423_v45 = vld [vmem:[%s1629_s28 + $0x1c0] ss:$16 sps:$4 sm:$0xff]   ;;  %v1479_v1 = vld [vmem:[%s1629_s28 + $0xc] ss:$16 sps:$4 sm:$0xff]  }
  0x23   : > { %955 = vmatpush1.bf16.msra.mxu1 %v1394_v26  ;;  %915 = vmatprep.subr.bf16.mxu0 %v1395_v27  ;;  %v1421_v44 = vld [vmem:[%s1629_s28 + $0x324] ss:$16 sps:$4 sm:$0xff]   ;;  %v1424_v46 = vld [vmem:[%s1629_s28 + $0x320] ss:$16 sps:$4 sm:$0xff]   ;;  %v1482_v19 = vld [vmem:[%s1629_s28 + $0x2ac] ss:$16 sps:$4 sm:$0xff]  }
  0x24   : > { %956 = vmatprep.subr.bf16.mxu1 %v1397_v28  ;;  %v1425_v47 = vld [vmem:[%s1629_s28 + $0x1a4] ss:$16 sps:$4 sm:$0xff]   ;;  %v1429_v49 = vld [vmem:[%s1629_s28 + $0x1a0] ss:$16 sps:$4 sm:$0xff]   ;;  %v1477_v20 = vld [vmem:[%s1629_s28 + $0x8] ss:$16 sps:$4 sm:$0xff]  }
  0x25   : > { %v1427_v48 = vld [vmem:[%s1629_s28 + $0x304] ss:$16 sps:$4 sm:$0xff]   ;;  %v1430_v50 = vld [vmem:[%s1629_s28 + $0x300] ss:$16 sps:$4 sm:$0xff]   ;;  %v1480_v21 = vld [vmem:[%s1629_s28 + $0x2a8] ss:$16 sps:$4 sm:$0xff]  }
  0x26   : > { %916 = vmatpush1.bf16.msra.mxu0 %v1399_v29  ;;  %v1433_v51 = vld [vmem:[%s1629_s28 + $0x184] ss:$16 sps:$4 sm:$0xff]   ;;  %v1438_v55 = vld [vmem:[%s1629_s28 + $0x180] ss:$16 sps:$4 sm:$0xff]   ;;  %v1485_v22 = vld [vmem:[%s1629_s28 + $0x1ec] ss:$16 sps:$4 sm:$0xff]  }
  0x27   : > { %957 = vmatpush1.bf16.msra.mxu1 %v1400_v30  ;;  %917 = vmatprep.subr.bf16.mxu0 %v1401_v31  ;;  %v1439_v56 = vld [vmem:[%s1629_s28 + $0x164] ss:$16 sps:$4 sm:$0xff]   ;;  %v1444_v59 = vld [vmem:[%s1629_s28 + $0x160] ss:$16 sps:$4 sm:$0xff]   ;;  %v1488_v23 = vld [vmem:[%s1629_s28 + $0x28c] ss:$16 sps:$4 sm:$0xff]  }
  0x28   : > { %958 = vmatprep.subr.bf16.mxu1 %v1403_v32  ;;  %v1445_v60 = vld [vmem:[%s1629_s28 + $0x144] ss:$16 sps:$4 sm:$0xff]   ;;  %v1450_v63 = vld [vmem:[%s1629_s28 + $0x140] ss:$16 sps:$4 sm:$0xff]   ;;  %v1483_v24 = vld [vmem:[%s1629_s28 + $0x1e8] ss:$16 sps:$4 sm:$0xff]  }
  0x29   : > { %v1451_v0 = vld [vmem:[%s1629_s28 + $0x124] ss:$16 sps:$4 sm:$0xff]   ;;  %v1456_v6 = vld [vmem:[%s1629_s28 + $0x120] ss:$16 sps:$4 sm:$0xff]   ;;  %v1486_v25 = vld [vmem:[%s1629_s28 + $0x288] ss:$16 sps:$4 sm:$0xff]  }
  0x2a   : > { %918 = vmatpush1.bf16.msra.mxu0 %v1405_v33  ;;  %v1462_v9 = vld [vmem:[%s1629_s28 + $0x100] ss:$16 sps:$4 sm:$0xff]   ;;  %v1494_v26 = vld [vmem:[%s1629_s28 + $0x26c] ss:$16 sps:$4 sm:$0xff]   ;;  %v1489_v27 = vld [vmem:[%s1629_s28 + $0x1c8] ss:$16 sps:$4 sm:$0xff]  }
  0x2b   : > { %959 = vmatpush1.bf16.msra.mxu1 %v1406_v34  ;;  %919 = vmatprep.subr.bf16.mxu0 %v1407_v35  ;;  %v1492_v28 = vld [vmem:[%s1629_s28 + $0x268] ss:$16 sps:$4 sm:$0xff]   ;;  %v1497_v29 = vld [vmem:[%s1629_s28 + $0x1ac] ss:$16 sps:$4 sm:$0xff]   ;;  %vm1762_vm6 = vmand %vm1112_vm3, %vm1113_vm4 }
  0x2c   : > { %960 = vmatprep.subr.bf16.mxu1 %v1409_v36  ;;  %v1500_v30 = vld [vmem:[%s1629_s28 + $0x24c] ss:$16 sps:$4 sm:$0xff]   ;;  %v1495_v31 = vld [vmem:[%s1629_s28 + $0x1a8] ss:$16 sps:$4 sm:$0xff]   ;;  %vm1115_vm7 = vmor %vm1762_vm6, %vm1758_vm5 }
  0x2d   : > { %v1498_v32 = vld [vmem:[%s1629_s28 + $0x248] ss:$16 sps:$4 sm:$0xff]   ;;  %v1503_v33 = vld [vmem:[%s1629_s28 + $0x18c] ss:$16 sps:$4 sm:$0xff]  }
  0x2e   : > { %920 = vmatpush1.bf16.msra.mxu0 %v1411_v37  ;;  %v1506_v34 = vld [vmem:[%s1629_s28 + $0x22c] ss:$16 sps:$4 sm:$0xff]   ;;  %v1501_v35 = vld [vmem:[%s1629_s28 + $0x188] ss:$16 sps:$4 sm:$0xff]  }
  0x2f   : > { %961 = vmatpush1.bf16.msra.mxu1 %v1412_v38  ;;  %921 = vmatprep.subr.bf16.mxu0 %v1413_v39  ;;  %v1504_v36 = vld [vmem:[%s1629_s28 + $0x228] ss:$16 sps:$4 sm:$0xff]   ;;  %v1509_v37 = vld [vmem:[%s1629_s28 + $0x16c] ss:$16 sps:$4 sm:$0xff]  }
  0x30   : > { %972 = vmatprep.subr.bf16.mxu1 %v1415_v40  ;;  %v1512_v38 = vld [vmem:[%s1629_s28 + $0x20c] ss:$16 sps:$4 sm:$0xff]   ;;  %v1507_v39 = vld [vmem:[%s1629_s28 + $0x168] ss:$16 sps:$4 sm:$0xff]  }
  0x31   : > { %v1510_v40 = vld [vmem:[%s1629_s28 + $0x208] ss:$16 sps:$4 sm:$0xff]  }
  0x32   : > { %922 = vmatpush2.bf16.msra.mxu0 %v1417_v41  ;;  %v1515_v41 = vld [vmem:[%s1629_s28 + $0x14c] ss:$16 sps:$4 sm:$0xff]  }
  0x33   : > { %973 = vmatpush2.bf16.msra.mxu1 %v1418_v42  ;;  %923 = vmatprep.subr.bf16.mxu0 %v1419_v43  ;;  %v1518_v42 = vld [vmem:[%s1629_s28 + $0x34c] ss:$16 sps:$4 sm:$0xff]   ;;  %v1513_v43 = vld [vmem:[%s1629_s28 + $0x148] ss:$16 sps:$4 sm:$0xff]  }
  0x34   : > { %974 = vmatprep.subr.bf16.mxu1 %v1421_v44  ;;  %v1516_v44 = vld [vmem:[%s1629_s28 + $0x348] ss:$16 sps:$4 sm:$0xff]  }
  0x36   : > { %924 = vmatpush2.bf16.msra.mxu0 %v1423_v45  ;;  %v1521_v45 = vld [vmem:[%s1629_s28 + $0x12c] ss:$16 sps:$4 sm:$0xff]  }
  0x37   : > { %975 = vmatpush2.bf16.msra.mxu1 %v1424_v46  ;;  %925 = vmatprep.subr.bf16.mxu0 %v1425_v47  ;;  %v1524_v46 = vld [vmem:[%s1629_s28 + $0x32c] ss:$16 sps:$4 sm:$0xff]   ;;  %v1519_v47 = vld [vmem:[%s1629_s28 + $0x128] ss:$16 sps:$4 sm:$0xff]  }
  0x38   : > { %976 = vmatprep.subr.bf16.mxu1 %v1427_v48  ;;  %v1522_v48 = vld [vmem:[%s1629_s28 + $0x328] ss:$16 sps:$4 sm:$0xff]  }
  0x3a   : > { %926 = vmatpush2.bf16.msra.mxu0 %v1429_v49  ;;  %v1527_v49 = vld [vmem:[%s1629_s28 + $0x10c] ss:$16 sps:$4 sm:$0xff]  }
  0x3b   : > { %977 = vmatpush2.bf16.msra.mxu1 %v1430_v50  ;;  %927 = vmatprep.subr.bf16.mxu0 %v1433_v51  ;;  %v1530_v50 = vld [vmem:[%s1629_s28 + $0x30c] ss:$16 sps:$4 sm:$0xff]   ;;  %v1525_v51 = vld [vmem:[%s1629_s28 + $0x108] ss:$16 sps:$4 sm:$0xff]  }
  0x3c   : > { %987 = vmatprep.subr.bf16.mxu1 %v1437_v52  ;;  %v1528_v52 = vld [vmem:[%s1629_s28 + $0x308] ss:$16 sps:$4 sm:$0xff]  }
  0x3e   : > { %979 = vmatmul.mubr.bf16.vlgmr.msra.gmra.mxu1 %v1682_v53  ;;  %928 = vmatpush2.bf16.msra.mxu0 %v1438_v55 }
  0x3f   : > { %988 = vmatpush1.bf16.msra.mxu1 %v1435_v54  ;;  %929 = vmatprep.subr.bf16.mxu0 %v1439_v56 }
  0x40   : > { %989 = vmatprep.subr.bf16.mxu1 %v1443_v57  ;;  %1019 = vmatprep.mubr.bf16.mxu1 %v1615_v3  ;;  %v1457_v3 = vld [vmem:[%s1629_s28 + $0x104] ss:$16 sps:$4 sm:$0xff]  }
  0x42   : > { %930 = vmatpush2.bf16.msra.mxu0 %v1444_v59 }
  0x43   : > { %990 = vmatpush1.bf16.msra.mxu1 %v1441_v58  ;;  %931 = vmatprep.subr.bf16.mxu0 %v1445_v60 }
  0x44   : > { %991 = vmatprep.subr.bf16.mxu1 %v1449_v61 }
  0x46   : > { %932 = vmatpush2.bf16.msra.mxu0 %v1450_v63 }
  0x47   : > { %992 = vmatpush1.bf16.msra.mxu1 %v1447_v62  ;;  %933 = vmatprep.subr.bf16.mxu0 %v1451_v0 }
  0x48   : > { %993 = vmatprep.subr.bf16.mxu1 %v1455_v4 }
  0x4a   : > { %934 = vmatpush2.bf16.msra.mxu0 %v1456_v6 }
  0x4b   : > { %994 = vmatpush1.bf16.msra.mxu1 %v1453_v5  ;;  %935 = vmatprep.subr.bf16.mxu0 %v1457_v3 }
  0x4c   : > { %995 = vmatprep.subr.bf16.mxu1 %v1461_v7 }
  0x4e   : > { %936 = vmatpush2.bf16.msra.mxu0 %v1462_v9 }
  0x4f   : > { %996 = vmatpush1.bf16.msra.mxu1 %v1459_v8  ;;  %1028 = vmatprep.subr.bf16.mxu0 %v1470_v11  ;;  %v1116_v11 = vld [vmem:[%s235_s8] sm:$0x77] }
  0x50   : > { %997 = vmatprep.subr.bf16.mxu1 %v1467_v10 }
  0x51   : > { %938 = vmatmul.mubr.bf16.vlgmr.msra.gmra.mxu0 %v1708_v12 }
  0x52   : > { %1029 = vmatpush1.bf16.msra.mxu0 %v1468_v14  ;;  %1330 = vmatprep.mubr.msk.bf16.mxu0 %vm901_vm0, %v1611_v2  ;;  %v1491_v2 = vld [vmem:[%s1629_s28 + $0x1cc] ss:$16 sps:$4 sm:$0xff]  }
  0x53   : > { %998 = vmatpush1.bf16.msra.mxu1 %v1465_v13  ;;  %1030 = vmatprep.subr.bf16.mxu0 %v1476_v16 }
  0x54   : > { %999 = vmatprep.subr.bf16.mxu1 %v1473_v15 }
  0x56   : > { %1031 = vmatpush1.bf16.msra.mxu0 %v1474_v18 }
  0x57   : > { %1000 = vmatpush1.bf16.msra.mxu1 %v1471_v17  ;;  %1032 = vmatprep.subr.bf16.mxu0 %v1482_v19 }
  0x58   : > { %1001 = vmatprep.subr.bf16.mxu1 %v1479_v1 }
  0x5a   : > { %1033 = vmatpush1.bf16.msra.mxu0 %v1480_v21 }
  0x5b   : > { %1002 = vmatpush1.bf16.msra.mxu1 %v1477_v20  ;;  %1034 = vmatprep.subr.bf16.mxu0 %v1488_v23 }
  0x5c   : > { %1003 = vmatprep.subr.bf16.mxu1 %v1485_v22 }
  0x5e   : > { %1035 = vmatpush1.bf16.msra.mxu0 %v1486_v25 }
  0x5f   : > { %1004 = vmatpush2.bf16.msra.mxu1 %v1483_v24  ;;  %1036 = vmatprep.subr.bf16.mxu0 %v1494_v26 }
  0x60   : > { %1005 = vmatprep.subr.bf16.mxu1 %v1491_v2 }
  0x62   : > { %1037 = vmatpush1.bf16.msra.mxu0 %v1492_v28  ;;  %v1119_v28 = vld [vmem:[%s235_s8 + $0x8] sm:$0x77] }
  0x63   : > { %1006 = vmatpush2.bf16.msra.mxu1 %v1489_v27  ;;  %1038 = vmatprep.subr.bf16.mxu0 %v1500_v30 }
  0x64   : > { %1007 = vmatprep.subr.bf16.mxu1 %v1497_v29 }
  0x66   : > { %1039 = vmatpush1.bf16.msra.mxu0 %v1498_v32 }
  0x67   : > { %1008 = vmatpush2.bf16.msra.mxu1 %v1495_v31  ;;  %1040 = vmatprep.subr.bf16.mxu0 %v1506_v34 }
  0x68   : > { %1009 = vmatprep.subr.bf16.mxu1 %v1503_v33 }
  0x6a   : > { %1041 = vmatpush1.bf16.msra.mxu0 %v1504_v36 }
  0x6b   : > { %1010 = vmatpush2.bf16.msra.mxu1 %v1501_v35  ;;  %1042 = vmatprep.subr.bf16.mxu0 %v1512_v38 }
  0x6c   : > { %1011 = vmatprep.subr.bf16.mxu1 %v1509_v37 }
  0x6e   : > { %1043 = vmatpush1.bf16.msra.mxu0 %v1510_v40 }
  0x6f   : > { %1012 = vmatpush2.bf16.msra.mxu1 %v1507_v39  ;;  %1054 = vmatprep.subr.bf16.mxu0 %v1518_v42 }
  0x70   : > { %1013 = vmatprep.subr.bf16.mxu1 %v1515_v41 }
  0x72   : > { %1055 = vmatpush2.bf16.msra.mxu0 %v1516_v44 }
  0x73   : > { %1014 = vmatpush2.bf16.msra.mxu1 %v1513_v43  ;;  %1056 = vmatprep.subr.bf16.mxu0 %v1524_v46 }
  0x74   : > { %1015 = vmatprep.subr.bf16.mxu1 %v1521_v45 }
  0x76   : > { %1057 = vmatpush2.bf16.msra.mxu0 %v1522_v48 }
  0x77   : > { %1016 = vmatpush2.bf16.msra.mxu1 %v1519_v47  ;;  %1058 = vmatprep.subr.bf16.mxu0 %v1530_v50 }
  0x78   : > { %1017 = vmatprep.subr.bf16.mxu1 %v1527_v49 }
  0x7a   : > { %1059 = vmatpush2.bf16.msra.mxu0 %v1528_v52 }
  0x7b   : > { %1018 = vmatpush2.bf16.msra.mxu1 %v1525_v51 }
  0x7d   : > { %1061 = vmatmul.mubr.bf16.vlgmr.msra.gmra.mxu0 %v1682_v53 }
  0x7e   : > { %1020 = vmatmul.mubr.bf16.vlgmr.msra.gmra.mxu1 %v1708_v12 }
  0x8b   : > { %v1073_v58 = vpop.permute.xlu0 %1072 }
  0x8f   : > { %v1083_v62 = vpop.permute.xlu0 %1082 }
  0xfe   : > { %v980_v54 = vpop.f32.mrf.mxu1 }
 0x100   : > { %v982_v55 = vpop.f32.mrf.mxu1 }
 0x102   : > { %v984_v56 = vpop.f32.mrf.mxu1 }
 0x104   : > { %v985_v57 = vpop.f32.mrf.mxu1 }
 0x111   : > { %v939_v59 = vpop.f32.mrf.mxu0 }
 0x112   : > { %v981_v60 = vadd.f32 %v980_v54, %v939_v59 }
 0x113   : > { %v941_v61 = vpop.f32.mrf.mxu0 }
 0x114   : > { %v1075_v63 = vmul.f32 %v1073_v58, %v981_v60  ;;  %v983_v0 = vadd.f32 %v982_v55, %v941_v61 }
 0x115   : > { %v943_v4 = vpop.f32.mrf.mxu0 }
 0x116   : > { %v1076_v5 = vmul.f32 %v1073_v58, %v983_v0  ;;  %v1085_v53 = vadd.f32 %v1083_v62, %v1075_v63 }
 0x117   : > { %v944_v3 = vpop.f32.mrf.mxu0 }
 0x118   : > { %v1086_v8 = vadd.f32 %v1083_v62, %v1076_v5  ;;  %v1089_v9 = vmax.f32 %v1085_v53, 0.0 }
 0x11a   : > { %v1090_v10 = vmax.f32 %v1086_v8, 0.0 }
 0x11c   : > { %v1336_v12 = vpack.c.bf16 %v1090_v10, %v1089_v9 }
 0x11e   : > { %v1117_v13 = vsel %vm1115_vm7, %v1336_v12, %v1116_v11 }
 0x11f   : > { %1118 = vst [vmem:[%s235_s8] sm:$0x77] %v1117_v13 }
 0x13d   : > { %v1062_v15 = vpop.f32.mrf.mxu0 }
 0x13e   : > { %v1021_v14 = vpop.f32.mrf.mxu1 }
 0x13f   : > { %v1063_v16 = vadd.f32 %v1062_v15, %v1021_v14  ;;  %v1064_v18 = vpop.f32.mrf.mxu0 }
 0x140   : > { %v1023_v17 = vpop.f32.mrf.mxu1 }
 0x141   : > { %v1077_v1 = vmul.f32 %v1073_v58, %v1063_v16  ;;  %v1065_v19 = vadd.f32 %v1064_v18, %v1023_v17  ;;  %v1066_v21 = vpop.f32.mrf.mxu0 }
 0x142   : > { %v1025_v20 = vpop.f32.mrf.mxu1 }
 0x143   : > { %v1087_v22 = vadd.f32 %v1083_v62, %v1077_v1  ;;  %v1078_v23 = vmul.f32 %v1073_v58, %v1065_v19  ;;  %v1067_v25 = vpop.f32.mrf.mxu0 }
 0x144   : > { %v1026_v24 = vpop.f32.mrf.mxu1 }
 0x145   : > { %v1088_v2 = vadd.f32 %v1083_v62, %v1078_v23  ;;  %v1091_v26 = vmax.f32 %v1087_v22, 0.0 }
 0x147   : > { %v1092_v27 = vmax.f32 %v1088_v2, 0.0 }
 0x149   : > { %v1337_v29 = vpack.c.bf16 %v1092_v27, %v1091_v26 }
 0x14b   : > { %v1120_v30 = vsel %vm1115_vm7, %v1337_v29, %v1119_v28 }
 0x14c   : > { %1121 = vst [vmem:[%s235_s8 + $0x8] sm:$0x77] %v1120_v30 }
 0x14d PF: > { %s14_s17 = sadd.s32 1, %s1553_s17   ;;  %s1801_s15 = smov %s1549_s16 }
 0x14e   : > { %p11_p5 = scmp.ge.s32.totalorder %s14_s17, 4   ;;  %s1802_s16 = smov %s1804_s18 }
 0x150   :  { %13 = sbr.rel (!%p11_p5) target bundleno = 2 (0x2), region = 66 }

// kernel: forward.10
= control target key start
LH: loop header
LB: loop body
LE: loop exit
PB: predicated region body
PF: predicated region fallthrough
CT: control target
= control target key end

     0   :  { %s594_s15 = smov 0   ;;  %s596_s16 = smov 0   ;;  %s646_s0 = inlined_call_operand.vmem [shape: bf16[5,16], index: 0, kind: input, shape index: {}]   ;;  %s647_s1 = inlined_call_operand.vmem [shape: f32[5,1], index: 1, kind: input, shape index: {}]   ;;  %s648_s2 = inlined_call_operand.vmem [shape: f32[5,1], index: 2, kind: input, shape index: {}]   ;;  %s649_s3 = inlined_call_operand.vmem [shape: bf16[2,16,512], index: 3, kind: input, shape index: {}]   ;;  %s650_s4 = inlined_call_operand.vmem [shape: bf16[2,5,512], index: 4, kind: output, shape index: {}]  }
   0x1   :  { %s598_s17 = smov 0  }
   0x2 LB: > { %s26_s18 = sadd.s32 1, %s562_s16  ;;  %p493_p0 = scmp.ge.s32.totalorder %s566_s17, 1  ;;  %s566_s17 = sphi %s598_s17, %s14_s17   ;;  %s562_s16 = sphi %s596_s16, %s654_s16   ;;  %s558_s15 = sphi %s594_s15, %s653_s15  }
   0x3   : > { %p28_p1 = scmp.ge.s32.totalorder %s26_s18, 2  ;;  %p183_p2 = scmp.lt.s32.totalorder %s566_s17, 3 }
   0x5   : > { %s656_s18 = smov (%p28_p1, %s26_s18), 0  ;;  %p184_p3 = pnand %p493_p0, %p183_p2 }
   0x6   : > { %p218_p4 = scmp.lt.s32.totalorder (!%p184_p3), %s558_s15, 1 }
   0x7   : > { %187 = sbr.rel (%p184_p3) target bundleno = 225 (0xe1), region = 36 }
   0xc   : > { %v568_v0 = vmov 0   ;;  %v349_v1 = vld [vmem:[%s647_s1] sm:$0x1f]  ;;  %s658_s15 = smov (!%p218_p4, %s558_s15), 1  ;;  %vm263_vm0 = vcmask 130048   ;;  %vm389_vm1 = vcmask 1042432  }
   0xd   : > { %299 = vmatprep.mubr.bf16.mxu0 %v568_v0  ;;  %340 = vmatprep.mubr.bf16.mxu1 %v568_v0  ;;  %s508_s21 = sshll.u32 %s658_s15, 5  ;;  %v359_v2 = vld [vmem:[%s648_s2] sm:$0x1f]  ;;  %vm390_vm2 = vsmask.f32 2304  ;;  %s509_s29 = sshll.u32 %s658_s15, 4 }
   0xe   : > { %537 = vset.pattern.permute.xlu0 %v568_v0  ;;  %s225_s26 = scalar_lea.vmem %s649_s3, %s508_s21  ;;  %v238_v7 = vld [vmem:[%s646_s0] sm:$0x7]  ;;  %vm392_vm3 = vcmask 1046532   ;;  %vm393_vm4 = vsmask.f32 6400  ;;  %vm628_vm5 = vmand %vm389_vm1, %vm390_vm2  ;;  %s235_s6 = scalar_lea.vmem %s650_s4, %s509_s29 }
   0xf   : > { %352 = vperm.xlu0 %537, %v349_v1   ;;  %v538_v3 = vld [vmem:[%s225_s26 + $0x4] ss:$16 sps:$4 sm:$0xff]   ;;  %v540_v4 = vld [vmem:[%s225_s26 + $0xc] ss:$16 sps:$4 sm:$0xff]   ;;  %v542_v5 = vld [vmem:[%s225_s26] ss:$16 sps:$4 sm:$0xff]  }
  0x10   : > { %281 = vmatprep.subr.bf16.mxu0 %v538_v3  ;;  %v543_v6 = vld [vmem:[%s225_s26 + $0x8] ss:$16 sps:$4 sm:$0xff]   ;;  %322 = vmatprep.subr.bf16.mxu1 %v540_v4  ;;  %vm394_vm6 = vmand %vm392_vm3, %vm393_vm4  ;;  %v396_v31 = vld [vmem:[%s235_s6] sm:$0x77] }
  0x11   : > { %282 = vmatpush1.bf16.msra.mxu0 %v542_v5  ;;  %323 = vmatpush1.bf16.msra.mxu1 %v543_v6  ;;  %vm395_vm7 = vmor %vm394_vm6, %vm628_vm5  ;;  %v399_v32 = vld [vmem:[%s235_s6 + $0x8] sm:$0x77] }
  0x13   : > { %362 = vperm.xlu0 %537, %v359_v2  }
  0x14   : > { %502 = vmatmul.mubr.msk.bf16.vlgmr.msra.gmra.mxu0 %vm263_vm0, %v238_v7  ;;  %503 = vmatmul.mubr.msk.bf16.vlgmr.msra.gmra.mxu1 %vm263_vm0, %v238_v7 }
  0x8a   : > { %v353_v8 = vpop.permute.xlu0 %352 }
  0x8e   : > { %v363_v11 = vpop.permute.xlu0 %362 }
  0xd4   : > { %v301_v9 = vpop.f32.mrf.mxu0  ;;  %v342_v10 = vpop.f32.mrf.mxu1 }
  0xd5   : > { %v355_v12 = vmul.f32 %v353_v8, %v301_v9  ;;  %v357_v13 = vmul.f32 %v353_v8, %v342_v10 }
  0xd6   : > { %v303_v14 = vpop.f32.mrf.mxu0  ;;  %v344_v15 = vpop.f32.mrf.mxu1 }
  0xd7   : > { %v365_v16 = vadd.f32 %v363_v11, %v355_v12  ;;  %v367_v17 = vadd.f32 %v363_v11, %v357_v13  ;;  %v356_v18 = vmul.f32 %v353_v8, %v303_v14  ;;  %v358_v19 = vmul.f32 %v353_v8, %v344_v15 }
  0xd8   : > { %v305_v21 = vpop.f32.mrf.mxu0  ;;  %v346_v22 = vpop.f32.mrf.mxu1 }
  0xd9   : > { %v366_v23 = vadd.f32 %v363_v11, %v356_v18  ;;  %v368_v24 = vadd.f32 %v363_v11, %v358_v19  ;;  %v369_v27 = vmax.f32 %v365_v16, 0.0  ;;  %v371_v28 = vmax.f32 %v367_v17, 0.0 }
  0xda   : > { %v306_v25 = vpop.f32.mrf.mxu0  ;;  %v347_v26 = vpop.f32.mrf.mxu1 }
  0xdb   : > { %v370_v29 = vmax.f32 %v366_v23, 0.0  ;;  %v372_v30 = vmax.f32 %v368_v24, 0.0 }
  0xdd   : > { %v510_v33 = vpack.c.bf16 %v370_v29, %v369_v27  ;;  %v511_v34 = vpack.c.bf16 %v372_v30, %v371_v28 }
  0xdf   : > { %v397_v35 = vsel %vm395_vm7, %v510_v33, %v396_v31  ;;  %v400_v36 = vsel %vm395_vm7, %v511_v34, %v399_v32 }
  0xe0   : > { %398 = vst [vmem:[%s235_s6] sm:$0x77] %v397_v35  ;;  %401 = vst [vmem:[%s235_s6 + $0x8] sm:$0x77] %v400_v36 }
  0xe1 PF: > { %s14_s17 = sadd.s32 1, %s566_s17   ;;  %s653_s15 = smov %s562_s16 }
  0xe2   : > { %p11_p5 = scmp.ge.s32.totalorder %s14_s17, 4   ;;  %s654_s16 = smov %s656_s18 }
  0xe4   :  { %13 = sbr.rel (!%p11_p5) target bundleno = 2 (0x2), region = 66 }

// kernel: forward.13
= control target key start
LH: loop header
LB: loop body
LE: loop exit
PB: predicated region body
PF: predicated region fallthrough
CT: control target
= control target key end

     0   :  { %s1027_s27 = smov 0   ;;  %s1182_s0 = inlined_call_operand.vmem [shape: bf16[2,5,512], index: 0, kind: input, shape index: {}]   ;;  %s1183_s1 = inlined_call_operand.vmem [shape: bf16[2,5,512], index: 1, kind: input, shape index: {}]   ;;  %s1184_s2 = inlined_call_operand.vmem [shape: bf16[2,5,512], index: 2, kind: input, shape index: {}]   ;;  %s1185_s3 = inlined_call_operand.vmem [shape: f32[16,4], index: 3, kind: input, shape index: {}]   ;;  %s1186_s4 = inlined_call_operand.vmem [shape: f32[16,1], index: 4, kind: input, shape index: {}]   ;;  %s1187_s5 = inlined_call_operand.vmem [shape: f32[16,1], index: 5, kind: input, shape index: {}]   ;;  %s1188_s6 = inlined_call_operand.vmem [shape: f32[16,1], index: 6, kind: input, shape index: {}]   ;;  %s1189_s7 = inlined_call_operand.vmem [shape: bf16[2,16,512], index: 7, kind: input, shape index: {}]   ;;  %s1190_s8 = inlined_call_operand.vmem [shape: bf16[2,16,512], index: 8, kind: output, shape index: {}]  }
   0x1 LB: > { %s883_s28 = sadd.s32 4294967295, %s979_s27   ;;  %p887_p0 = scmp.ge.s32.totalorder %s979_s27, 1  ;;  %s979_s27 = sphi %s1027_s27, %s18_s27  }
   0x2   : > { %p292_p1 = scmp.lt.s32.totalorder %s979_s27, 3 }
   0x4   : > { %p293_p2 = pnand %p887_p0, %p292_p1 }
   0x5   : > { %p341_p3 = scmp.lt.s32.totalorder (!%p293_p2), %s883_s28, 1 }
   0x6   : > { %296 = sbr.rel (%p293_p2) target bundleno = 781 (0x30d), region = 52 }
   0xb   : > { %s1192_s28 = smov (!%p341_p3, %s883_s28), 1  ;;  %vm384_vm0 = vcmask 1044484   ;;  %v442_v61 = vlaneseq  ;;  %vm462_vm1 = vcmask 1043456   ;;  %vm599_vm2 = vcmask 31744  }
   0xc   : > { %s909_s29 = sshll.u32 %s1192_s28, 4  ;;  %vm684_vm3 = vcmask 7168  }
   0xd   : > { %s1041_s10 = scalar_lea.vmem %s1182_s0, %s909_s29  ;;  %s1046_s13 = scalar_lea.vmem %s1183_s1, %s909_s29 }
   0xe   : > { %v366_v0 = vld [vmem:[%s1041_s10] sm:$0x44]  ;;  %v367_v1 = vld [vmem:[%s1041_s10 + $0x8] sm:$0x44]  ;;  %s1054_s16 = scalar_lea.vmem %s1184_s2, %s909_s29 }
   0xf   : > { %v372_v2 = vld [vmem:[%s1046_s13] sm:$0x44]  ;;  %v368_v3 = vunpack.c.l.bf16 %v366_v0  ;;  %v369_v4 = vunpack.c.h.bf16 %v366_v0  ;;  %v370_v5 = vunpack.c.l.bf16 %v367_v1  ;;  %v371_v6 = vunpack.c.h.bf16 %v367_v1  ;;  %v373_v7 = vld [vmem:[%s1046_s13 + $0x8] sm:$0x44] }
  0x10   : > { %v374_v8 = vunpack.c.l.bf16 %v372_v2  ;;  %v375_v9 = vunpack.c.h.bf16 %v372_v2  ;;  %v376_v10 = vunpack.c.l.bf16 %v373_v7  ;;  %v377_v11 = vunpack.c.h.bf16 %v373_v7  ;;  %v378_v12 = vld [vmem:[%s1054_s16] sm:$0x44]  ;;  %v379_v17 = vld [vmem:[%s1054_s16 + $0x8] sm:$0x44]  ;;  %v1073_v7 = vld [vmem:[%s1041_s10 + $0x8] sm:$0x33] }
  0x11   : > { %v385_v13 = vsel %vm384_vm0, %v368_v3, -inf  ;;  %v386_v14 = vsel %vm384_vm0, %v369_v4, -inf  ;;  %v387_v15 = vsel %vm384_vm0, %v370_v5, -inf  ;;  %v388_v16 = vsel %vm384_vm0, %v371_v6, -inf }
  0x12   : > { %v389_v18 = vmax.f32 %v385_v13, %v386_v14  ;;  %v390_v19 = vmax.f32 %v387_v15, %v388_v16  ;;  %v394_v20 = vsel %vm384_vm0, %v374_v8, -inf  ;;  %v395_v21 = vsel %vm384_vm0, %v375_v9, -inf  ;;  %v1082_v13 = vld [vmem:[%s1046_s13 + $0x8] sm:$0x33] }
  0x13   : > { %v396_v22 = vsel %vm384_vm0, %v376_v10, -inf  ;;  %v397_v23 = vsel %vm384_vm0, %v377_v11, -inf  ;;  %v398_v24 = vmax.f32 %v394_v20, %v395_v21  ;;  %v380_v25 = vunpack.c.l.bf16 %v378_v12 }
  0x14   : > { %v391_v26 = vmax.f32 %v389_v18, %v390_v19  ;;  %v399_v27 = vmax.f32 %v396_v22, %v397_v23  ;;  %v381_v28 = vunpack.c.h.bf16 %v378_v12  ;;  %v382_v29 = vunpack.c.l.bf16 %v379_v17 }
  0x15   : > { %v383_v30 = vunpack.c.h.bf16 %v379_v17  ;;  %v404_v31 = vsel %vm384_vm0, %v380_v25, -inf  ;;  %v418_v15 = vunpack.c.l.bf16 %v1073_v7  ;;  %v419_v16 = vunpack.c.h.bf16 %v1073_v7  ;;  %v1087_v17 = vld [vmem:[%s1054_s16 + $0x8] sm:$0x33] }
  0x16   : > { %392 = vmax.xlane.f32.xlu0 %v391_v26  ;;  %v400_v32 = vmax.f32 %v398_v24, %v399_v27  ;;  %v405_v33 = vsel %vm384_vm0, %v381_v28, -inf  ;;  %v406_v34 = vsel %vm384_vm0, %v382_v29, -inf  ;;  %v477_v27 = vunpack.c.l.bf16 %v1082_v13 }
  0x17   : > { %v407_v35 = vsel %vm384_vm0, %v383_v30, -inf  ;;  %v408_v36 = vmax.f32 %v404_v31, %v405_v33  ;;  %v535_v31 = vunpack.c.l.bf16 %v1087_v17 }
  0x18   : > { %v409_v37 = vmax.f32 %v406_v34, %v407_v35 }
  0x1a   : > { %401 = vmax.xlane.f32.xlu0 %v400_v32  ;;  %v410_v38 = vmax.f32 %v408_v36, %v409_v37  ;;  %v536_v32 = vunpack.c.h.bf16 %v1087_v17  ;;  %v478_v37 = vunpack.c.h.bf16 %v1082_v13 }
  0x1c   : > { %411 = vmax.xlane.f32.xlu1 %v410_v38 }
  0x9f   : > { %v393_v39 = vpop.xlane.xlu0 %392 }
  0xa3   : > { %v402_v40 = vpop.xlane.xlu0 %401 }
  0xa4   : > { %v403_v41 = vmax.f32 %v393_v39, %v402_v40 }
  0xa5   : > { %v412_v42 = vpop.xlane.xlu1 %411 }
  0xa6   : > { %v413_v43 = vmax.f32 %v403_v41, %v412_v42 }
  0xa8   : > { %v479_v44 = vsub.f32 %v374_v8, %v413_v43  ;;  %v480_v45 = vsub.f32 %v375_v9, %v413_v43  ;;  %v481_v46 = vsub.f32 %v376_v10, %v413_v43  ;;  %v482_v47 = vsub.f32 %v377_v11, %v413_v43  ;;  %v473_v9 = vld [vmem:[%s1046_s13] sm:$0x33]  ;;  %s912_s13 = sshll.u32 %s1192_s28, 5 }
  0xa9   : > { %v420_v48 = vsub.f32 %v368_v3, %v413_v43  ;;  %v421_v49 = vsub.f32 %v369_v4, %v413_v43  ;;  %v422_v53 = vsub.f32 %v370_v5, %v413_v43  ;;  %v423_v55 = vsub.f32 %v371_v6, %v413_v43  ;;  %v414_v6 = vld [vmem:[%s1041_s10] sm:$0x33]  ;;  %s365_s18 = scalar_lea.vmem %s1190_s8, %s912_s13 }
  0xaa   : > { %v483_v50 = vmul.f32 1.442695, %v479_v44  ;;  %v485_v51 = vmul.f32 1.442695, %v480_v45  ;;  %v487_v52 = vmul.f32 1.442695, %v481_v46  ;;  %v537_v57 = vsub.f32 %v380_v25, %v413_v43 }
  0xab   : > { %v489_v54 = vmul.f32 1.442695, %v482_v47  ;;  %v424_v56 = vmul.f32 1.442695, %v420_v48  ;;  %v426_v58 = vmul.f32 1.442695, %v421_v49  ;;  %v538_v59 = vsub.f32 %v381_v28, %v413_v43 }
  0xac   : > { %937 = vpow2.f32 %v483_v50  ;;  %v428_v60 = vmul.f32 1.442695, %v422_v53  ;;  %v539_v62 = vsub.f32 %v382_v29, %v413_v43  ;;  %v430_v63 = vmul.f32 1.442695, %v423_v55  ;;  %v1079_v10 = vld [vmem:[%s1054_s16] sm:$0x33]  ;;  %s360_s16 = scalar_lea.vmem %s1189_s7, %s912_s13 }
  0xad   : > { %939 = vpow2.f32 %v485_v51  ;;  %v540_v0 = vsub.f32 %v383_v30, %v413_v43  ;;  %v541_v1 = vmul.f32 1.442695, %v537_v57  ;;  %v543_v2 = vmul.f32 1.442695, %v538_v59 }
  0xae   : > { %941 = vpow2.f32 %v487_v52  ;;  %v443_v3 = vshrl.u32 %v442_v61, 7  ;;  %v545_v4 = vmul.f32 1.442695, %v539_v62  ;;  %v416_v11 = vunpack.c.l.bf16 %v414_v6 }
  0xaf   : > { %943 = vpow2.f32 %v489_v54  ;;  %v547_v5 = vmul.f32 1.442695, %v540_v0  ;;  %v417_v12 = vunpack.c.h.bf16 %v414_v6  ;;  %v475_v18 = vunpack.c.l.bf16 %v473_v9 }
  0xb0   : > { %945 = vpow2.f32 %v424_v56  ;;  %v1075_v8 = vsub.s32 4, %v443_v3  ;;  %v533_v21 = vunpack.c.l.bf16 %v1079_v10  ;;  %v534_v22 = vunpack.c.h.bf16 %v1079_v10 }
  0xb1   : > { %947 = vpow2.f32 %v426_v58  ;;  %v476_v26 = vunpack.c.h.bf16 %v473_v9 }
  0xb2   : > { %949 = vpow2.f32 %v428_v60 }
  0xb3   : > { %951 = vpow2.f32 %v430_v63 }
  0xb4   : > { %953 = vpow2.f32 %v541_v1 }
  0xb5   : > { %955 = vpow2.f32 %v543_v2 }
  0xb6   : > { %957 = vpow2.f32 %v545_v4 }
  0xb7   : > { %959 = vpow2.f32 %v547_v5 }
  0xb9   : > { %v938_v14 = vpop.eup %937 }
  0xba   : > { %v940_v19 = vpop.eup %939  ;;  %v491_v20 = vsel %vm384_vm0, %v938_v14, 0.0  ;;  %v504_v23 = vrot.slane %v938_v14, %v1075_v8 }
  0xbb   : > { %v942_v24 = vpop.eup %941  ;;  %v492_v25 = vsel %vm384_vm0, %v940_v19, 0.0  ;;  %v508_v28 = vrot.slane %v940_v19, %v1075_v8 }
  0xbc   : > { %v1096_v29 = vpop.eup %943  ;;  %v493_v30 = vadd.f32 %v492_v25, %v491_v20  ;;  %v512_v33 = vrot.slane %v942_v24, %v1075_v8  ;;  %v494_v35 = vsel %vm384_vm0, %v942_v24, 0.0  ;;  %v517_v38 = vmul.f32 %v504_v23, %v475_v18 }
  0xbd   : > { %v946_v34 = vpop.eup %945  ;;  %v496_v36 = vsel %vm384_vm0, %v1096_v29, 0.0  ;;  %v516_v43 = vrot.slane %v1096_v29, %v1075_v8  ;;  %v518_v47 = vmul.f32 %v508_v28, %v476_v26 }
  0xbe   : > { %v948_v39 = vpop.eup %947  ;;  %v495_v40 = vadd.f32 %v494_v35, %v493_v30  ;;  %v432_v41 = vsel %vm384_vm0, %v946_v34, 0.0  ;;  %v445_v42 = vrot.slane %v946_v34, %v1075_v8  ;;  %v519_v48 = vmul.f32 %v512_v33, %v477_v27 }
  0xbf   : > { %v950_v44 = vpop.eup %949  ;;  %v433_v45 = vsel %vm384_vm0, %v948_v39, 0.0  ;;  %v449_v46 = vrot.slane %v948_v39, %v1075_v8  ;;  %v522_v25 = vsel %vm462_vm1, %v518_v47, 0.0  ;;  %v520_v29 = vmul.f32 %v516_v43, %v478_v37 }
  0xc0   : > { %v952_v49 = vpop.eup %951  ;;  %v497_v50 = vadd.f32 %v496_v36, %v495_v40  ;;  %v434_v51 = vadd.f32 %v433_v45, %v432_v41  ;;  %v435_v52 = vsel %vm384_vm0, %v950_v44, 0.0  ;;  %v453_v53 = vrot.slane %v950_v44, %v1075_v8  ;;  %v595_v40 = vld [vmem:[%s1185_s3] sm:$0xff] }
  0xc1   : > { %v954_v54 = vpop.eup %953  ;;  %v437_v55 = vsel %vm384_vm0, %v952_v49, 0.0  ;;  %v457_v56 = vrot.slane %v952_v49, %v1075_v8  ;;  %v458_v57 = vmul.f32 %v445_v42, %v416_v11  ;;  %v459_v58 = vmul.f32 %v449_v46, %v417_v12  ;;  %923 = vmatprep.mubr.msk.f32.mxu0 %vm599_vm2, %v595_v40 }
  0xc2   : > { %v956_v59 = vpop.eup %955  ;;  %498 = vadd.xlane.f32.xlu0 %v497_v50  ;;  %v436_v60 = vadd.f32 %v435_v52, %v434_v51  ;;  %v460_v61 = vmul.f32 %v453_v53, %v418_v15  ;;  %v549_v62 = vsel %vm384_vm0, %v954_v54, 0.0  ;;  %v562_v63 = vrot.slane %v954_v54, %v1075_v8  ;;  %v596_v54 = vld [vmem:[%s1185_s3 + $0x8] sm:$0xff] }
  0xc3   : > { %v958_v0 = vpop.eup %957  ;;  %v461_v1 = vmul.f32 %v457_v56, %v419_v16  ;;  %v463_v2 = vsel %vm462_vm1, %v458_v57, 0.0  ;;  %v464_v3 = vsel %vm462_vm1, %v459_v58, 0.0  ;;  %v550_v4 = vsel %vm384_vm0, %v956_v59, 0.0  ;;  %v597_v57 = vld [vmem:[%s1186_s4] sm:$0xff] }
  0xc4   : > { %v960_v5 = vpop.eup %959  ;;  %v438_v6 = vadd.f32 %v437_v55, %v436_v60  ;;  %v465_v7 = vadd.f32 %v464_v3, %v463_v2  ;;  %v551_v9 = vadd.f32 %v550_v4, %v549_v62  ;;  %v521_v11 = vsel %vm462_vm1, %v517_v38, 0.0 }
  0xc5   : > { %v466_v12 = vsel %vm462_vm1, %v460_v61, 0.0  ;;  %v468_v13 = vsel %vm462_vm1, %v461_v1, 0.0  ;;  %v552_v14 = vsel %vm384_vm0, %v958_v0, 0.0  ;;  %v566_v15 = vrot.slane %v956_v59, %v1075_v8 }
  0xc6   : > { %439 = vadd.xlane.f32.xlu1 %v438_v6  ;;  %v467_v16 = vadd.f32 %v466_v12, %v465_v7  ;;  %v553_v17 = vadd.f32 %v552_v14, %v551_v9  ;;  %v570_v18 = vrot.slane %v958_v0, %v1075_v8  ;;  %v574_v19 = vrot.slane %v960_v5, %v1075_v8 }
  0xc7   : > { %v554_v20 = vsel %vm384_vm0, %v960_v5, 0.0  ;;  %v575_v23 = vmul.f32 %v562_v63, %v533_v21  ;;  %v576_v24 = vmul.f32 %v566_v15, %v534_v22  ;;  %v523_v35 = vadd.f32 %v522_v25, %v521_v11 }
  0xc8   : > { %v469_v26 = vadd.f32 %v468_v13, %v467_v16  ;;  %v555_v27 = vadd.f32 %v554_v20, %v553_v17  ;;  %v577_v28 = vmul.f32 %v570_v18, %v535_v31  ;;  %v578_v30 = vmul.f32 %v574_v19, %v536_v32 }
  0xc9   : > { %v579_v33 = vsel %vm462_vm1, %v575_v23, 0.0  ;;  %v580_v34 = vsel %vm462_vm1, %v576_v24, 0.0  ;;  %v524_v21 = vsel %vm462_vm1, %v519_v48, 0.0  ;;  %v526_v39 = vsel %vm462_vm1, %v520_v29, 0.0 }
  0xca   : > { %470 = vadd.xlane.f32.xlu0 %v469_v26  ;;  %556 = vadd.xlane.f32.xlu1 %v555_v27  ;;  %v581_v36 = vadd.f32 %v580_v34, %v579_v33  ;;  %v582_v10 = vsel %vm462_vm1, %v577_v28, 0.0  ;;  %v525_v22 = vadd.f32 %v524_v21, %v523_v35  ;;  %v584_v31 = vsel %vm462_vm1, %v578_v30, 0.0  ;;  %v714_v27 = vld [vmem:[%s1187_s5] sm:$0xff]  ;;  %v715_v28 = vld [vmem:[%s1187_s5 + $0x8] sm:$0xff] }
  0xcb   : > { %v981_v55 = vmov 0   ;;  %v718_v33 = vld [vmem:[%s1188_s6] sm:$0xff]  ;;  %v719_v34 = vld [vmem:[%s1188_s6 + $0x8] sm:$0xff] }
  0xcc   : > { %v583_v38 = vadd.f32 %v582_v10, %v581_v36  ;;  %v527_v37 = vadd.f32 %v526_v39, %v525_v22  ;;  %936 = vset.pattern.permute.xlu0 %v981_v55  ;;  %935 = vset.pattern.permute.xlu1 %v981_v55 }
  0xce   : > { %v585_v32 = vadd.f32 %v584_v31, %v583_v38  ;;  %528 = vadd.xlane.f32.xlu1 %v527_v37 }
  0xd0   : > { %586 = vadd.xlane.f32.xlu0 %v585_v32 }
 0x14b   : > { %v499_v41 = vpop.xlane.xlu0 %498 }
 0x14f   : > { %v440_v42 = vpop.xlane.xlu1 %439 }
 0x150   : > { %v500_v43 = vadd.f32 %v499_v41, %v440_v42  ;;  %v734_v42 = vld [vmem:[%s360_s16] sm:$0xff] }
 0x153   : > { %v557_v44 = vpop.xlane.xlu1 %556  ;;  %v471_v47 = vpop.xlane.xlu0 %470 }
 0x154   : > { %v558_v45 = vadd.f32 %v557_v44, %v500_v43  ;;  %v735_v43 = vld [vmem:[%s360_s16 + $0x8] sm:$0xff]  ;;  %v736_v44 = vld [vmem:[%s360_s16 + $0x10] sm:$0xff] }
 0x156   : > { %v592_v46 = vrot.slane %v558_v45, %v1075_v8  ;;  %v598_v8 = vld [vmem:[%s1186_s4 + $0x8] sm:$0xff]  ;;  %v737_v45 = vld [vmem:[%s360_s16 + $0x18] sm:$0xff] }
 0x157   : > { %v529_v48 = vpop.xlane.xlu1 %528 }
 0x158   : > { %961 = vrcp.f32 %v592_v46  ;;  %v530_v49 = vadd.f32 %v529_v48, %v471_v47  ;;  %v738_v46 = vunpack.c.l.bf16 %v734_v42  ;;  %v739_v47 = vunpack.c.h.bf16 %v734_v42 }
 0x159   : > { %v587_v50 = vpop.xlane.xlu0 %586  ;;  %v740_v48 = vunpack.c.l.bf16 %v735_v43 }
 0x15a   : > { %v588_v51 = vadd.f32 %v587_v50, %v530_v49  ;;  %v741_v49 = vunpack.c.h.bf16 %v735_v43  ;;  %v742_v50 = vunpack.c.l.bf16 %v736_v44 }
 0x165   : > { %v962_v52 = vpop.eup %961 }
 0x166   : > { %v594_v53 = vmul.f32 %v962_v52, %v588_v51  ;;  %v743_v51 = vunpack.c.h.bf16 %v736_v44  ;;  %v744_v52 = vunpack.c.l.bf16 %v737_v45 }
 0x168   : > { %921 = vmatprep.subr.msk.mxu0 %vm462_vm1, %v594_v53 }
 0x169   : > { %922 = vmatpush3.msk.msra.mxu0 %vm462_vm1, %v594_v53  ;;  %v745_v53 = vunpack.c.h.bf16 %v737_v45 }
 0x16a   : > { %924 = vmatmul.mubr.msk.f32.vlgmr.msra.gmra.mxu0 %vm599_vm2, %v596_v54 }
 0x22a   : > { %v925_v56 = vpop.f32.mrf.mxu0 }
 0x22b   : > { %v681_v58 = vadd.f32 %v925_v56, %v598_v8 }
 0x22c   : > { %v675_v59 = vpop.f32.mrf.mxu0 }
 0x22d   : > { %v676_v60 = vadd.f32 %v675_v59, %v597_v57  ;;  %v686_v61 = vsel %vm684_vm3, %v681_v58, 0.0 }
 0x22f   : > { %v685_v62 = vsel %vm684_vm3, %v676_v60, 0.0 }
 0x230   : > { %v687_v63 = vadd.f32 %v686_v61, %v685_v62 }
 0x232   : > { %v688_v0 = vrot.slane %v687_v63, 4 }
 0x234   : > { %v689_v1 = vadd.f32 %v688_v0, %v687_v63 }
 0x236   : > { %v690_v2 = vrot.slane %v689_v1, 2 }
 0x238   : > { %v691_v3 = vadd.f32 %v690_v2, %v689_v1 }
 0x23a   : > { %v692_v4 = vrot.slane %v691_v3, 1 }
 0x23c   : > { %v693_v5 = vadd.f32 %v692_v4, %v691_v3 }
 0x23e   : > { %v695_v6 = vmul.f32 0.0625, %v693_v5 }
 0x240   : > { %v696_v7 = vsub.f32 %v676_v60, %v695_v6  ;;  %v697_v9 = vsub.f32 %v681_v58, %v695_v6 }
 0x242   : > { %v698_v11 = vmul.f32 %v696_v7, %v696_v7  ;;  %v699_v12 = vmul.f32 %v697_v9, %v697_v9 }
 0x244   : > { %v700_v13 = vsel %vm684_vm3, %v698_v11, 0.0  ;;  %v701_v14 = vsel %vm684_vm3, %v699_v12, 0.0 }
 0x245   : > { %v702_v15 = vadd.f32 %v701_v14, %v700_v13 }
 0x247   : > { %v703_v16 = vrot.slane %v702_v15, 4 }
 0x249   : > { %v704_v17 = vadd.f32 %v703_v16, %v702_v15 }
 0x24b   : > { %v705_v18 = vrot.slane %v704_v17, 2 }
 0x24d   : > { %v706_v19 = vadd.f32 %v705_v18, %v704_v17 }
 0x24f   : > { %v707_v20 = vrot.slane %v706_v19, 1 }
 0x251   : > { %v708_v23 = vadd.f32 %v707_v20, %v706_v19 }
 0x253   : > { %v709_v24 = vmul.f32 0.0625, %v708_v23 }
 0x255   : > { %v710_v25 = vadd.f32 1e-05, %v709_v24 }
 0x257   : > { %963 = vrsqrt.f32 %v710_v25 }
 0x264   : > { %v964_v26 = vpop.eup %963 }
 0x265   : > { %v712_v29 = vmul.f32 %v964_v26, %v696_v7  ;;  %v713_v30 = vmul.f32 %v964_v26, %v697_v9 }
 0x267   : > { %v716_v35 = vmul.f32 %v714_v27, %v712_v29  ;;  %v717_v36 = vmul.f32 %v715_v28, %v713_v30 }
 0x269   : > { %v720_v21 = vadd.f32 %v718_v33, %v716_v35  ;;  %v721_v10 = vadd.f32 %v719_v34, %v717_v36 }
 0x26b   : > { %v901_v22 = vmul.f32 -1.442695, %v720_v21  ;;  %v902_v38 = vmul.f32 -1.442695, %v721_v10 }
 0x26d   : > { %965 = vpow2.f32 %v901_v22 }
 0x26e   : > { %967 = vpow2.f32 %v902_v38 }
 0x27a   : > { %v966_v39 = vpop.eup %965 }
 0x27b   : > { %v968_v31 = vpop.eup %967  ;;  %v728_v37 = vadd.f32 1.0, %v966_v39 }
 0x27c   : > { %v729_v32 = vadd.f32 1.0, %v968_v31 }
 0x27d   : > { %969 = vrcp.f32 %v728_v37 }
 0x27e   : > { %971 = vrcp.f32 %v729_v32 }
 0x28a   : > { %v970_v40 = vpop.eup %969 }
 0x28b   : > { %v972_v41 = vpop.eup %971  ;;  %748 = vperm.xlu1 %935, %v970_v40  }
 0x28c   : > { %753 = vperm.xlu0 %936, %v972_v41  }
 0x306   : > { %v749_v54 = vpop.permute.xlu1 %748 }
 0x307   : > { %v754_v55 = vpop.permute.xlu0 %753  ;;  %v756_v8 = vmul.f32 %v749_v54, %v738_v46  ;;  %v757_v56 = vmul.f32 %v749_v54, %v739_v47  ;;  %v758_v57 = vmul.f32 %v749_v54, %v740_v48  ;;  %v759_v58 = vmul.f32 %v749_v54, %v741_v49 }
 0x308   : > { %v760_v59 = vmul.f32 %v754_v55, %v742_v50  ;;  %v761_v60 = vmul.f32 %v754_v55, %v743_v51  ;;  %v762_v61 = vmul.f32 %v754_v55, %v744_v52  ;;  %v763_v62 = vmul.f32 %v754_v55, %v745_v53 }
 0x309   : > { %v914_v63 = vpack.c.bf16 %v757_v56, %v756_v8  ;;  %v915_v0 = vpack.c.bf16 %v759_v58, %v758_v57 }
 0x30a   : > { %v916_v1 = vpack.c.bf16 %v761_v60, %v760_v59  ;;  %v917_v2 = vpack.c.bf16 %v763_v62, %v762_v61 }
 0x30b   : > { %788 = vst [vmem:[%s365_s18] sm:$0xff] %v914_v63  ;;  %789 = vst [vmem:[%s365_s18 + $0x8] sm:$0xff] %v915_v0 }
 0x30c   : > { %790 = vst [vmem:[%s365_s18 + $0x10] sm:$0xff] %v916_v1  ;;  %791 = vst [vmem:[%s365_s18 + $0x18] sm:$0xff] %v917_v2 }
 0x30d PF: > { %s18_s27 = sadd.s32 1, %s979_s27  }
 0x30e   : > { %p15_p4 = scmp.ge.s32.totalorder %s18_s27, 4  }
 0x310   :  { %17 = sbr.rel (!%p15_p4) target bundleno = 1 (0x1), region = 91 }

// kernel: forward.15
= control target key start
LH: loop header
LB: loop body
LE: loop exit
PB: predicated region body
PF: predicated region fallthrough
CT: control target
= control target key end

     0   :  { %s1570_s15 = smov 0   ;;  %s1572_s16 = smov 0   ;;  %s1759_s0 = inlined_call_operand.vmem [shape: bf16[8,432], index: 0, kind: input, shape index: {}]   ;;  %s1760_s1 = inlined_call_operand.vmem [shape: f32[8,1], index: 1, kind: input, shape index: {}]   ;;  %s1761_s2 = inlined_call_operand.vmem [shape: f32[8,1], index: 2, kind: input, shape index: {}]   ;;  %s1762_s3 = inlined_call_operand.vmem [shape: bf16[2,432,512], index: 3, kind: input, shape index: {}]   ;;  %s1763_s4 = inlined_call_operand.vmem [shape: bf16[2,8,512], index: 4, kind: output, shape index: {}]  }
   0x1   :  { %s1574_s17 = smov 0  }
   0x2 LB: > { %s26_s18 = sadd.s32 1, %s1538_s16  ;;  %p1202_p0 = scmp.ge.s32.totalorder %s1542_s17, 1  ;;  %s1542_s17 = sphi %s1574_s17, %s14_s17   ;;  %s1538_s16 = sphi %s1572_s16, %s1765_s16   ;;  %s1534_s15 = sphi %s1570_s15, %s1764_s15  }
   0x3   : > { %p28_p1 = scmp.ge.s32.totalorder %s26_s18, 2  ;;  %p183_p2 = scmp.lt.s32.totalorder %s1542_s17, 3 }
   0x5   : > { %s1767_s18 = smov (%p28_p1, %s26_s18), 0  ;;  %p184_p3 = pnand %p1202_p0, %p183_p2 }
   0x6   : > { %p218_p4 = scmp.lt.s32.totalorder (!%p184_p3), %s1534_s15, 1 }
   0x7   : > { %187 = sbr.rel (%p184_p3) target bundleno = 332 (0x14c), region = 36 }
   0xc   : > { %v1591_v0 = vld [vmem:[%s1759_s0 + $0x8] sm:$0xff]  ;;  %vm901_vm0 = vcmask 392192   ;;  %v1596_v1 = vld [vmem:[%s1759_s0] sm:$0xff]  ;;  %v1544_v5 = vmov 0   ;;  %s1769_s15 = smov (!%p218_p4, %s1534_s15), 1 }
   0xd   : > { %v1069_v2 = vld [vmem:[%s1760_s1] sm:$0xff]  ;;  %v1603_v3 = vcombine.high %v1591_v0, %v1591_v0  ;;  %v1607_v4 = vcombine.high %v1596_v1, %v1596_v1  ;;  %1353 = vset.pattern.permute.xlu0 %v1544_v5  ;;  %s1327_s27 = smul.u32 864, %s1769_s15  ;;  %v1671_v53 = vcombine.low %v1591_v0, %v1591_v0  ;;  %s1324_s5 = sshll.u32 %s1769_s15, 4 }
   0xe   : > { %1072 = vperm.xlu0 %1353, %v1069_v2   ;;  %v1079_v6 = vld [vmem:[%s1761_s2] sm:$0xff]  ;;  %s235_s8 = scalar_lea.vmem %s1763_s4, %s1324_s5 }
   0xf   : > { %1318 = vmatprep.mubr.msk.bf16.mxu1 %vm901_vm0, %v1603_v3  ;;  %937 = vmatprep.mubr.bf16.mxu0 %v1607_v4  ;;  %s1621_s30 = scalar_lea.vmem %s1762_s3, %s1327_s27 }
  0x10   : > { %v1354_v7 = vld [vmem:[%s1621_s30 + $0xe4] ss:$16 sps:$4 sm:$0xff]   ;;  %v1358_v9 = vld [vmem:[%s1621_s30 + $0xe0] ss:$16 sps:$4 sm:$0xff]   ;;  %v1426_v52 = vld [vmem:[%s1621_s30 + $0xec] ss:$16 sps:$4 sm:$0xff]  }
  0x11   : > { %v1356_v8 = vld [vmem:[%s1621_s30 + $0x2e4] ss:$16 sps:$4 sm:$0xff]   ;;  %905 = vmatprep.subr.bf16.mxu0 %v1354_v7  ;;  %v1359_v10 = vld [vmem:[%s1621_s30 + $0x2e0] ss:$16 sps:$4 sm:$0xff]   ;;  %v1424_v54 = vld [vmem:[%s1621_s30 + $0xe8] ss:$16 sps:$4 sm:$0xff]  }
  0x12   : > { %1082 = vperm.xlu0 %1353, %v1079_v6   ;;  %946 = vmatprep.subr.bf16.mxu1 %v1356_v8  ;;  %v1360_v11 = vld [vmem:[%s1621_s30 + $0xc4] ss:$16 sps:$4 sm:$0xff]   ;;  %v1364_v13 = vld [vmem:[%s1621_s30 + $0xc0] ss:$16 sps:$4 sm:$0xff]   ;;  %v1432_v57 = vld [vmem:[%s1621_s30 + $0xcc] ss:$16 sps:$4 sm:$0xff]  }
  0x13   : > { %906 = vmatpush1.bf16.msra.mxu0 %v1358_v9  ;;  %947 = vmatpush1.bf16.msra.mxu1 %v1359_v10  ;;  %v1362_v12 = vld [vmem:[%s1621_s30 + $0x2c4] ss:$16 sps:$4 sm:$0xff]   ;;  %v1365_v14 = vld [vmem:[%s1621_s30 + $0x2c0] ss:$16 sps:$4 sm:$0xff]   ;;  %v1430_v58 = vld [vmem:[%s1621_s30 + $0xc8] ss:$16 sps:$4 sm:$0xff]  }
  0x14   : > { %907 = vmatprep.subr.bf16.mxu0 %v1360_v11  ;;  %948 = vmatprep.subr.bf16.mxu1 %v1362_v12  ;;  %v1366_v15 = vld [vmem:[%s1621_s30 + $0xa4] ss:$16 sps:$4 sm:$0xff]   ;;  %v1370_v17 = vld [vmem:[%s1621_s30 + $0xa0] ss:$16 sps:$4 sm:$0xff]   ;;  %v1438_v61 = vld [vmem:[%s1621_s30 + $0xac] ss:$16 sps:$4 sm:$0xff]   ;;  %v1697_v12 = vcombine.low %v1596_v1, %v1596_v1 }
  0x15   : > { %v1368_v16 = vld [vmem:[%s1621_s30 + $0x2a4] ss:$16 sps:$4 sm:$0xff]   ;;  %v1371_v18 = vld [vmem:[%s1621_s30 + $0x2a0] ss:$16 sps:$4 sm:$0xff]   ;;  %v1436_v62 = vld [vmem:[%s1621_s30 + $0xa8] ss:$16 sps:$4 sm:$0xff]  }
  0x16   : > { %v1372_v19 = vld [vmem:[%s1621_s30 + $0x84] ss:$16 sps:$4 sm:$0xff]   ;;  %v1376_v21 = vld [vmem:[%s1621_s30 + $0x80] ss:$16 sps:$4 sm:$0xff]   ;;  %v1444_v2 = vld [vmem:[%s1621_s30 + $0x8c] ss:$16 sps:$4 sm:$0xff]  }
  0x17   : > { %908 = vmatpush1.bf16.msra.mxu0 %v1364_v13  ;;  %949 = vmatpush1.bf16.msra.mxu1 %v1365_v14  ;;  %v1374_v20 = vld [vmem:[%s1621_s30 + $0x284] ss:$16 sps:$4 sm:$0xff]   ;;  %v1377_v22 = vld [vmem:[%s1621_s30 + $0x280] ss:$16 sps:$4 sm:$0xff]   ;;  %v1442_v5 = vld [vmem:[%s1621_s30 + $0x88] ss:$16 sps:$4 sm:$0xff]  }
  0x18   : > { %909 = vmatprep.subr.bf16.mxu0 %v1366_v15  ;;  %950 = vmatprep.subr.bf16.mxu1 %v1368_v16  ;;  %v1378_v23 = vld [vmem:[%s1621_s30 + $0x64] ss:$16 sps:$4 sm:$0xff]   ;;  %v1382_v25 = vld [vmem:[%s1621_s30 + $0x60] ss:$16 sps:$4 sm:$0xff]   ;;  %v1450_v7 = vld [vmem:[%s1621_s30 + $0x6c] ss:$16 sps:$4 sm:$0xff]  }
  0x19   : > { %v1380_v24 = vld [vmem:[%s1621_s30 + $0x264] ss:$16 sps:$4 sm:$0xff]   ;;  %v1383_v26 = vld [vmem:[%s1621_s30 + $0x260] ss:$16 sps:$4 sm:$0xff]   ;;  %v1448_v8 = vld [vmem:[%s1621_s30 + $0x68] ss:$16 sps:$4 sm:$0xff]  }
  0x1a   : > { %v1384_v27 = vld [vmem:[%s1621_s30 + $0x44] ss:$16 sps:$4 sm:$0xff]   ;;  %v1388_v29 = vld [vmem:[%s1621_s30 + $0x40] ss:$16 sps:$4 sm:$0xff]   ;;  %v1456_v10 = vld [vmem:[%s1621_s30 + $0x4c] ss:$16 sps:$4 sm:$0xff]  }
  0x1b   : > { %910 = vmatpush1.bf16.msra.mxu0 %v1370_v17  ;;  %951 = vmatpush1.bf16.msra.mxu1 %v1371_v18  ;;  %v1386_v28 = vld [vmem:[%s1621_s30 + $0x244] ss:$16 sps:$4 sm:$0xff]   ;;  %v1389_v30 = vld [vmem:[%s1621_s30 + $0x240] ss:$16 sps:$4 sm:$0xff]   ;;  %v1459_v11 = vld [vmem:[%s1621_s30 + $0x2ec] ss:$16 sps:$4 sm:$0xff]  }
  0x1c   : > { %911 = vmatprep.subr.bf16.mxu0 %v1372_v19  ;;  %952 = vmatprep.subr.bf16.mxu1 %v1374_v20  ;;  %v1390_v31 = vld [vmem:[%s1621_s30 + $0x24] ss:$16 sps:$4 sm:$0xff]   ;;  %v1394_v33 = vld [vmem:[%s1621_s30 + $0x20] ss:$16 sps:$4 sm:$0xff]   ;;  %v1454_v13 = vld [vmem:[%s1621_s30 + $0x48] ss:$16 sps:$4 sm:$0xff]  }
  0x1d   : > { %v1392_v32 = vld [vmem:[%s1621_s30 + $0x224] ss:$16 sps:$4 sm:$0xff]   ;;  %v1395_v34 = vld [vmem:[%s1621_s30 + $0x220] ss:$16 sps:$4 sm:$0xff]   ;;  %v1457_v14 = vld [vmem:[%s1621_s30 + $0x2e8] ss:$16 sps:$4 sm:$0xff]  }
  0x1e   : > { %v1396_v35 = vld [vmem:[%s1621_s30 + $0x4] ss:$16 sps:$4 sm:$0xff]   ;;  %v1400_v37 = vld [vmem:[%s1621_s30] ss:$16 sps:$4 sm:$0xff]   ;;  %v1462_v15 = vld [vmem:[%s1621_s30 + $0x2c] ss:$16 sps:$4 sm:$0xff]  }
  0x1f   : > { %912 = vmatpush1.bf16.msra.mxu0 %v1376_v21  ;;  %953 = vmatpush1.bf16.msra.mxu1 %v1377_v22  ;;  %v1398_v36 = vld [vmem:[%s1621_s30 + $0x204] ss:$16 sps:$4 sm:$0xff]   ;;  %v1401_v38 = vld [vmem:[%s1621_s30 + $0x200] ss:$16 sps:$4 sm:$0xff]   ;;  %v1465_v16 = vld [vmem:[%s1621_s30 + $0x2cc] ss:$16 sps:$4 sm:$0xff]  }
  0x20   : > { %913 = vmatprep.subr.bf16.mxu0 %v1378_v23  ;;  %954 = vmatprep.subr.bf16.mxu1 %v1380_v24  ;;  %v1402_v39 = vld [vmem:[%s1621_s30 + $0x1e4] ss:$16 sps:$4 sm:$0xff]   ;;  %v1406_v41 = vld [vmem:[%s1621_s30 + $0x1e0] ss:$16 sps:$4 sm:$0xff]   ;;  %v1460_v17 = vld [vmem:[%s1621_s30 + $0x28] ss:$16 sps:$4 sm:$0xff]  }
  0x21   : > { %v1404_v40 = vld [vmem:[%s1621_s30 + $0x344] ss:$16 sps:$4 sm:$0xff]   ;;  %v1407_v42 = vld [vmem:[%s1621_s30 + $0x340] ss:$16 sps:$4 sm:$0xff]   ;;  %v1463_v18 = vld [vmem:[%s1621_s30 + $0x2c8] ss:$16 sps:$4 sm:$0xff]  }
  0x22   : > { %v1408_v43 = vld [vmem:[%s1621_s30 + $0x1c4] ss:$16 sps:$4 sm:$0xff]   ;;  %v1412_v45 = vld [vmem:[%s1621_s30 + $0x1c0] ss:$16 sps:$4 sm:$0xff]   ;;  %v1468_v1 = vld [vmem:[%s1621_s30 + $0xc] ss:$16 sps:$4 sm:$0xff]  }
  0x23   : > { %914 = vmatpush1.bf16.msra.mxu0 %v1382_v25  ;;  %955 = vmatpush1.bf16.msra.mxu1 %v1383_v26  ;;  %v1410_v44 = vld [vmem:[%s1621_s30 + $0x324] ss:$16 sps:$4 sm:$0xff]   ;;  %v1413_v46 = vld [vmem:[%s1621_s30 + $0x320] ss:$16 sps:$4 sm:$0xff]   ;;  %v1471_v19 = vld [vmem:[%s1621_s30 + $0x2ac] ss:$16 sps:$4 sm:$0xff]  }
  0x24   : > { %915 = vmatprep.subr.bf16.mxu0 %v1384_v27  ;;  %956 = vmatprep.subr.bf16.mxu1 %v1386_v28  ;;  %v1414_v47 = vld [vmem:[%s1621_s30 + $0x1a4] ss:$16 sps:$4 sm:$0xff]   ;;  %v1418_v49 = vld [vmem:[%s1621_s30 + $0x1a0] ss:$16 sps:$4 sm:$0xff]   ;;  %v1466_v20 = vld [vmem:[%s1621_s30 + $0x8] ss:$16 sps:$4 sm:$0xff]  }
  0x25   : > { %v1416_v48 = vld [vmem:[%s1621_s30 + $0x304] ss:$16 sps:$4 sm:$0xff]   ;;  %v1419_v50 = vld [vmem:[%s1621_s30 + $0x300] ss:$16 sps:$4 sm:$0xff]   ;;  %v1469_v21 = vld [vmem:[%s1621_s30 + $0x2a8] ss:$16 sps:$4 sm:$0xff]  }
  0x26   : > { %v1422_v51 = vld [vmem:[%s1621_s30 + $0x184] ss:$16 sps:$4 sm:$0xff]   ;;  %v1427_v55 = vld [vmem:[%s1621_s30 + $0x180] ss:$16 sps:$4 sm:$0xff]   ;;  %v1474_v22 = vld [vmem:[%s1621_s30 + $0x1ec] ss:$16 sps:$4 sm:$0xff]  }
  0x27   : > { %916 = vmatpush1.bf16.msra.mxu0 %v1388_v29  ;;  %957 = vmatpush1.bf16.msra.mxu1 %v1389_v30  ;;  %v1428_v56 = vld [vmem:[%s1621_s30 + $0x164] ss:$16 sps:$4 sm:$0xff]   ;;  %v1433_v59 = vld [vmem:[%s1621_s30 + $0x160] ss:$16 sps:$4 sm:$0xff]   ;;  %v1477_v23 = vld [vmem:[%s1621_s30 + $0x28c] ss:$16 sps:$4 sm:$0xff]  }
  0x28   : > { %917 = vmatprep.subr.bf16.mxu0 %v1390_v31  ;;  %958 = vmatprep.subr.bf16.mxu1 %v1392_v32  ;;  %v1434_v60 = vld [vmem:[%s1621_s30 + $0x144] ss:$16 sps:$4 sm:$0xff]   ;;  %v1439_v63 = vld [vmem:[%s1621_s30 + $0x140] ss:$16 sps:$4 sm:$0xff]   ;;  %v1472_v24 = vld [vmem:[%s1621_s30 + $0x1e8] ss:$16 sps:$4 sm:$0xff]  }
  0x29   : > { %v1440_v0 = vld [vmem:[%s1621_s30 + $0x124] ss:$16 sps:$4 sm:$0xff]   ;;  %v1445_v6 = vld [vmem:[%s1621_s30 + $0x120] ss:$16 sps:$4 sm:$0xff]   ;;  %v1475_v25 = vld [vmem:[%s1621_s30 + $0x288] ss:$16 sps:$4 sm:$0xff]  }
  0x2a   : > { %v1451_v9 = vld [vmem:[%s1621_s30 + $0x100] ss:$16 sps:$4 sm:$0xff]   ;;  %v1483_v26 = vld [vmem:[%s1621_s30 + $0x26c] ss:$16 sps:$4 sm:$0xff]   ;;  %v1478_v27 = vld [vmem:[%s1621_s30 + $0x1c8] ss:$16 sps:$4 sm:$0xff]  }
  0x2b   : > { %918 = vmatpush1.bf16.msra.mxu0 %v1394_v33  ;;  %959 = vmatpush1.bf16.msra.mxu1 %v1395_v34  ;;  %v1481_v28 = vld [vmem:[%s1621_s30 + $0x268] ss:$16 sps:$4 sm:$0xff]   ;;  %v1486_v29 = vld [vmem:[%s1621_s30 + $0x1ac] ss:$16 sps:$4 sm:$0xff]  }
  0x2c   : > { %919 = vmatprep.subr.bf16.mxu0 %v1396_v35  ;;  %960 = vmatprep.subr.bf16.mxu1 %v1398_v36  ;;  %v1489_v30 = vld [vmem:[%s1621_s30 + $0x24c] ss:$16 sps:$4 sm:$0xff]   ;;  %v1484_v31 = vld [vmem:[%s1621_s30 + $0x1a8] ss:$16 sps:$4 sm:$0xff]  }
  0x2d   : > { %v1487_v32 = vld [vmem:[%s1621_s30 + $0x248] ss:$16 sps:$4 sm:$0xff]   ;;  %v1492_v33 = vld [vmem:[%s1621_s30 + $0x18c] ss:$16 sps:$4 sm:$0xff]  }
  0x2e   : > { %v1495_v34 = vld [vmem:[%s1621_s30 + $0x22c] ss:$16 sps:$4 sm:$0xff]   ;;  %v1490_v35 = vld [vmem:[%s1621_s30 + $0x188] ss:$16 sps:$4 sm:$0xff]  }
  0x2f   : > { %920 = vmatpush1.bf16.msra.mxu0 %v1400_v37  ;;  %961 = vmatpush1.bf16.msra.mxu1 %v1401_v38  ;;  %v1493_v36 = vld [vmem:[%s1621_s30 + $0x228] ss:$16 sps:$4 sm:$0xff]   ;;  %v1498_v37 = vld [vmem:[%s1621_s30 + $0x16c] ss:$16 sps:$4 sm:$0xff]  }
  0x30   : > { %921 = vmatprep.subr.bf16.mxu0 %v1402_v39  ;;  %972 = vmatprep.subr.bf16.mxu1 %v1404_v40  ;;  %v1501_v38 = vld [vmem:[%s1621_s30 + $0x20c] ss:$16 sps:$4 sm:$0xff]   ;;  %v1496_v39 = vld [vmem:[%s1621_s30 + $0x168] ss:$16 sps:$4 sm:$0xff]  }
  0x31   : > { %v1499_v40 = vld [vmem:[%s1621_s30 + $0x208] ss:$16 sps:$4 sm:$0xff]  }
  0x33   : > { %922 = vmatpush2.bf16.msra.mxu0 %v1406_v41  ;;  %973 = vmatpush2.bf16.msra.mxu1 %v1407_v42  ;;  %v1504_v41 = vld [vmem:[%s1621_s30 + $0x14c] ss:$16 sps:$4 sm:$0xff]  }
  0x34   : > { %923 = vmatprep.subr.bf16.mxu0 %v1408_v43  ;;  %974 = vmatprep.subr.bf16.mxu1 %v1410_v44  ;;  %v1507_v42 = vld [vmem:[%s1621_s30 + $0x34c] ss:$16 sps:$4 sm:$0xff]   ;;  %v1502_v43 = vld [vmem:[%s1621_s30 + $0x148] ss:$16 sps:$4 sm:$0xff]  }
  0x35   : > { %v1505_v44 = vld [vmem:[%s1621_s30 + $0x348] ss:$16 sps:$4 sm:$0xff]  }
  0x37   : > { %924 = vmatpush2.bf16.msra.mxu0 %v1412_v45  ;;  %975 = vmatpush2.bf16.msra.mxu1 %v1413_v46  ;;  %v1510_v45 = vld [vmem:[%s1621_s30 + $0x12c] ss:$16 sps:$4 sm:$0xff]  }
  0x38   : > { %925 = vmatprep.subr.bf16.mxu0 %v1414_v47  ;;  %976 = vmatprep.subr.bf16.mxu1 %v1416_v48  ;;  %v1513_v46 = vld [vmem:[%s1621_s30 + $0x32c] ss:$16 sps:$4 sm:$0xff]   ;;  %v1508_v47 = vld [vmem:[%s1621_s30 + $0x128] ss:$16 sps:$4 sm:$0xff]  }
  0x39   : > { %v1511_v48 = vld [vmem:[%s1621_s30 + $0x328] ss:$16 sps:$4 sm:$0xff]  }
  0x3b   : > { %926 = vmatpush2.bf16.msra.mxu0 %v1418_v49  ;;  %977 = vmatpush2.bf16.msra.mxu1 %v1419_v50  ;;  %v1516_v49 = vld [vmem:[%s1621_s30 + $0x10c] ss:$16 sps:$4 sm:$0xff]  }
  0x3c   : > { %927 = vmatprep.subr.bf16.mxu0 %v1422_v51  ;;  %987 = vmatprep.subr.bf16.mxu1 %v1426_v52  ;;  %v1519_v50 = vld [vmem:[%s1621_s30 + $0x30c] ss:$16 sps:$4 sm:$0xff]   ;;  %v1514_v51 = vld [vmem:[%s1621_s30 + $0x108] ss:$16 sps:$4 sm:$0xff]  }
  0x3d   : > { %v1517_v52 = vld [vmem:[%s1621_s30 + $0x308] ss:$16 sps:$4 sm:$0xff]  }
  0x3e   : > { %979 = vmatmul.mubr.bf16.vlgmr.msra.gmra.mxu1 %v1671_v53 }
  0x3f   : > { %928 = vmatpush2.bf16.msra.mxu0 %v1427_v55  ;;  %988 = vmatpush1.bf16.msra.mxu1 %v1424_v54 }
  0x40   : > { %929 = vmatprep.subr.bf16.mxu0 %v1428_v56  ;;  %989 = vmatprep.subr.bf16.mxu1 %v1432_v57 }
  0x41   : > { %1019 = vmatprep.mubr.bf16.mxu1 %v1607_v4  ;;  %v1446_v4 = vld [vmem:[%s1621_s30 + $0x104] ss:$16 sps:$4 sm:$0xff]  }
  0x43   : > { %930 = vmatpush2.bf16.msra.mxu0 %v1433_v59  ;;  %990 = vmatpush1.bf16.msra.mxu1 %v1430_v58 }
  0x44   : > { %931 = vmatprep.subr.bf16.mxu0 %v1434_v60  ;;  %991 = vmatprep.subr.bf16.mxu1 %v1438_v61 }
  0x47   : > { %932 = vmatpush2.bf16.msra.mxu0 %v1439_v63  ;;  %992 = vmatpush1.bf16.msra.mxu1 %v1436_v62 }
  0x48   : > { %933 = vmatprep.subr.bf16.mxu0 %v1440_v0  ;;  %993 = vmatprep.subr.bf16.mxu1 %v1444_v2 }
  0x4b   : > { %934 = vmatpush2.bf16.msra.mxu0 %v1445_v6  ;;  %994 = vmatpush1.bf16.msra.mxu1 %v1442_v5 }
  0x4c   : > { %935 = vmatprep.subr.bf16.mxu0 %v1446_v4  ;;  %995 = vmatprep.subr.bf16.mxu1 %v1450_v7 }
  0x4f   : > { %936 = vmatpush2.bf16.msra.mxu0 %v1451_v9  ;;  %996 = vmatpush1.bf16.msra.mxu1 %v1448_v8 }
  0x50   : > { %997 = vmatprep.subr.bf16.mxu1 %v1456_v10  ;;  %1028 = vmatprep.subr.bf16.mxu0 %v1459_v11 }
  0x52   : > { %938 = vmatmul.mubr.bf16.vlgmr.msra.gmra.mxu0 %v1697_v12 }
  0x53   : > { %998 = vmatpush1.bf16.msra.mxu1 %v1454_v13  ;;  %1029 = vmatpush1.bf16.msra.mxu0 %v1457_v14 }
  0x54   : > { %999 = vmatprep.subr.bf16.mxu1 %v1462_v15  ;;  %1030 = vmatprep.subr.bf16.mxu0 %v1465_v16 }
  0x55   : > { %1319 = vmatprep.mubr.msk.bf16.mxu0 %vm901_vm0, %v1603_v3  ;;  %v1480_v3 = vld [vmem:[%s1621_s30 + $0x1cc] ss:$16 sps:$4 sm:$0xff]  }
  0x57   : > { %1000 = vmatpush1.bf16.msra.mxu1 %v1460_v17  ;;  %1031 = vmatpush1.bf16.msra.mxu0 %v1463_v18 }
  0x58   : > { %1001 = vmatprep.subr.bf16.mxu1 %v1468_v1  ;;  %1032 = vmatprep.subr.bf16.mxu0 %v1471_v19 }
  0x5b   : > { %1002 = vmatpush1.bf16.msra.mxu1 %v1466_v20  ;;  %1033 = vmatpush1.bf16.msra.mxu0 %v1469_v21 }
  0x5c   : > { %1003 = vmatprep.subr.bf16.mxu1 %v1474_v22  ;;  %1034 = vmatprep.subr.bf16.mxu0 %v1477_v23 }
  0x5f   : > { %1004 = vmatpush2.bf16.msra.mxu1 %v1472_v24  ;;  %1035 = vmatpush1.bf16.msra.mxu0 %v1475_v25 }
  0x60   : > { %1005 = vmatprep.subr.bf16.mxu1 %v1480_v3  ;;  %1036 = vmatprep.subr.bf16.mxu0 %v1483_v26 }
  0x63   : > { %1006 = vmatpush2.bf16.msra.mxu1 %v1478_v27  ;;  %1037 = vmatpush1.bf16.msra.mxu0 %v1481_v28 }
  0x64   : > { %1007 = vmatprep.subr.bf16.mxu1 %v1486_v29  ;;  %1038 = vmatprep.subr.bf16.mxu0 %v1489_v30 }
  0x67   : > { %1008 = vmatpush2.bf16.msra.mxu1 %v1484_v31  ;;  %1039 = vmatpush1.bf16.msra.mxu0 %v1487_v32 }
  0x68   : > { %1009 = vmatprep.subr.bf16.mxu1 %v1492_v33  ;;  %1040 = vmatprep.subr.bf16.mxu0 %v1495_v34 }
  0x6b   : > { %1010 = vmatpush2.bf16.msra.mxu1 %v1490_v35  ;;  %1041 = vmatpush1.bf16.msra.mxu0 %v1493_v36 }
  0x6c   : > { %1011 = vmatprep.subr.bf16.mxu1 %v1498_v37  ;;  %1042 = vmatprep.subr.bf16.mxu0 %v1501_v38 }
  0x6f   : > { %1012 = vmatpush2.bf16.msra.mxu1 %v1496_v39  ;;  %1043 = vmatpush1.bf16.msra.mxu0 %v1499_v40 }
  0x70   : > { %1013 = vmatprep.subr.bf16.mxu1 %v1504_v41  ;;  %1054 = vmatprep.subr.bf16.mxu0 %v1507_v42 }
  0x73   : > { %1014 = vmatpush2.bf16.msra.mxu1 %v1502_v43  ;;  %1055 = vmatpush2.bf16.msra.mxu0 %v1505_v44 }
  0x74   : > { %1015 = vmatprep.subr.bf16.mxu1 %v1510_v45  ;;  %1056 = vmatprep.subr.bf16.mxu0 %v1513_v46 }
  0x77   : > { %1016 = vmatpush2.bf16.msra.mxu1 %v1508_v47  ;;  %1057 = vmatpush2.bf16.msra.mxu0 %v1511_v48 }
  0x78   : > { %1017 = vmatprep.subr.bf16.mxu1 %v1516_v49  ;;  %1058 = vmatprep.subr.bf16.mxu0 %v1519_v50 }
  0x7b   : > { %1018 = vmatpush2.bf16.msra.mxu1 %v1514_v51  ;;  %1059 = vmatpush2.bf16.msra.mxu0 %v1517_v52 }
  0x7e   : > { %1020 = vmatmul.mubr.bf16.vlgmr.msra.gmra.mxu1 %v1697_v12  ;;  %1061 = vmatmul.mubr.bf16.vlgmr.msra.gmra.mxu0 %v1671_v53 }
  0x89   : > { %v1073_v58 = vpop.permute.xlu0 %1072 }
  0x8d   : > { %v1083_v62 = vpop.permute.xlu0 %1082 }
  0xfe   : > { %v980_v54 = vpop.f32.mrf.mxu1 }
 0x100   : > { %v982_v55 = vpop.f32.mrf.mxu1 }
 0x102   : > { %v984_v56 = vpop.f32.mrf.mxu1 }
 0x104   : > { %v985_v57 = vpop.f32.mrf.mxu1 }
 0x112   : > { %v939_v59 = vpop.f32.mrf.mxu0 }
 0x113   : > { %v981_v60 = vadd.f32 %v980_v54, %v939_v59 }
 0x114   : > { %v941_v61 = vpop.f32.mrf.mxu0 }
 0x115   : > { %v1075_v63 = vmul.f32 %v1073_v58, %v981_v60  ;;  %v983_v0 = vadd.f32 %v982_v55, %v941_v61 }
 0x116   : > { %v943_v2 = vpop.f32.mrf.mxu0 }
 0x117   : > { %v1076_v5 = vmul.f32 %v1073_v58, %v983_v0  ;;  %v1085_v6 = vadd.f32 %v1083_v62, %v1075_v63 }
 0x118   : > { %v944_v4 = vpop.f32.mrf.mxu0 }
 0x119   : > { %v1086_v7 = vadd.f32 %v1083_v62, %v1076_v5  ;;  %v1089_v8 = vmax.f32 %v1085_v6, 0.0 }
 0x11b   : > { %v1090_v53 = vmax.f32 %v1086_v7, 0.0 }
 0x11d   : > { %v1325_v9 = vpack.c.bf16 %v1090_v53, %v1089_v8 }
 0x11f   : > { %1109 = vst [vmem:[%s235_s8] sm:$0xff] %v1325_v9 }
 0x13e   : > { %v1021_v10 = vpop.f32.mrf.mxu1  ;;  %v1062_v11 = vpop.f32.mrf.mxu0 }
 0x13f   : > { %v1063_v12 = vadd.f32 %v1062_v11, %v1021_v10 }
 0x140   : > { %v1023_v13 = vpop.f32.mrf.mxu1  ;;  %v1064_v14 = vpop.f32.mrf.mxu0 }
 0x141   : > { %v1077_v15 = vmul.f32 %v1073_v58, %v1063_v12  ;;  %v1065_v16 = vadd.f32 %v1064_v14, %v1023_v13 }
 0x142   : > { %v1025_v17 = vpop.f32.mrf.mxu1  ;;  %v1066_v18 = vpop.f32.mrf.mxu0 }
 0x143   : > { %v1087_v1 = vadd.f32 %v1083_v62, %v1077_v15  ;;  %v1078_v19 = vmul.f32 %v1073_v58, %v1065_v16 }
 0x144   : > { %v1026_v20 = vpop.f32.mrf.mxu1  ;;  %v1067_v21 = vpop.f32.mrf.mxu0 }
 0x145   : > { %v1088_v22 = vadd.f32 %v1083_v62, %v1078_v19  ;;  %v1091_v23 = vmax.f32 %v1087_v1, 0.0 }
 0x147   : > { %v1092_v24 = vmax.f32 %v1088_v22, 0.0 }
 0x149   : > { %v1326_v25 = vpack.c.bf16 %v1092_v24, %v1091_v23 }
 0x14b   : > { %1110 = vst [vmem:[%s235_s8 + $0x8] sm:$0xff] %v1326_v25 }
 0x14c PF: > { %s14_s17 = sadd.s32 1, %s1542_s17   ;;  %s1764_s15 = smov %s1538_s16 }
 0x14d   : > { %p11_p5 = scmp.ge.s32.totalorder %s14_s17, 4   ;;  %s1765_s16 = smov %s1767_s18 }
 0x14f   :  { %13 = sbr.rel (!%p11_p5) target bundleno = 2 (0x2), region = 66 }

// kernel: forward.14
= control target key start
LH: loop header
LB: loop body
LE: loop exit
PB: predicated region body
PF: predicated region fallthrough
CT: control target
= control target key end

     0   :  { %s583_s15 = smov 0   ;;  %s585_s16 = smov 0   ;;  %s629_s0 = inlined_call_operand.vmem [shape: bf16[8,16], index: 0, kind: input, shape index: {}]   ;;  %s630_s1 = inlined_call_operand.vmem [shape: f32[8,1], index: 1, kind: input, shape index: {}]   ;;  %s631_s2 = inlined_call_operand.vmem [shape: f32[8,1], index: 2, kind: input, shape index: {}]   ;;  %s632_s3 = inlined_call_operand.vmem [shape: bf16[2,16,512], index: 3, kind: input, shape index: {}]   ;;  %s633_s4 = inlined_call_operand.vmem [shape: bf16[2,8,512], index: 4, kind: output, shape index: {}]  }
   0x1   :  { %s587_s17 = smov 0  }
   0x2 LB: > { %s26_s18 = sadd.s32 1, %s551_s16  ;;  %p482_p0 = scmp.ge.s32.totalorder %s555_s17, 1  ;;  %s555_s17 = sphi %s587_s17, %s14_s17   ;;  %s551_s16 = sphi %s585_s16, %s635_s16   ;;  %s547_s15 = sphi %s583_s15, %s634_s15  }
   0x3   : > { %p28_p1 = scmp.ge.s32.totalorder %s26_s18, 2  ;;  %p183_p2 = scmp.lt.s32.totalorder %s555_s17, 3 }
   0x5   : > { %s637_s18 = smov (%p28_p1, %s26_s18), 0  ;;  %p184_p3 = pnand %p482_p0, %p183_p2 }
   0x6   : > { %p218_p4 = scmp.lt.s32.totalorder (!%p184_p3), %s547_s15, 1 }
   0x7   : > { %187 = sbr.rel (%p184_p3) target bundleno = 224 (0xe0), region = 36 }
   0xc   : > { %v349_v0 = vld [vmem:[%s630_s1] sm:$0xff]  ;;  %v557_v1 = vmov 0   ;;  %s639_s15 = smov (!%p218_p4, %s547_s15), 1  ;;  %vm263_vm0 = vcmask 130048  }
   0xd   : > { %299 = vmatprep.mubr.bf16.mxu0 %v557_v1  ;;  %340 = vmatprep.mubr.bf16.mxu1 %v557_v1  ;;  %s497_s21 = sshll.u32 %s639_s15, 5  ;;  %v359_v2 = vld [vmem:[%s631_s2] sm:$0xff]  ;;  %s498_s29 = sshll.u32 %s639_s15, 4 }
   0xe   : > { %526 = vset.pattern.permute.xlu0 %v557_v1  ;;  %s225_s26 = scalar_lea.vmem %s632_s3, %s497_s21  ;;  %v238_v7 = vld [vmem:[%s629_s0] sm:$0xf]  ;;  %s235_s6 = scalar_lea.vmem %s633_s4, %s498_s29 }
   0xf   : > { %352 = vperm.xlu0 %526, %v349_v0   ;;  %v527_v3 = vld [vmem:[%s225_s26 + $0x4] ss:$16 sps:$4 sm:$0xff]   ;;  %v529_v4 = vld [vmem:[%s225_s26 + $0xc] ss:$16 sps:$4 sm:$0xff]   ;;  %v531_v5 = vld [vmem:[%s225_s26] ss:$16 sps:$4 sm:$0xff]  }
  0x10   : > { %281 = vmatprep.subr.bf16.mxu0 %v527_v3  ;;  %v532_v6 = vld [vmem:[%s225_s26 + $0x8] ss:$16 sps:$4 sm:$0xff]   ;;  %322 = vmatprep.subr.bf16.mxu1 %v529_v4 }
  0x11   : > { %282 = vmatpush1.bf16.msra.mxu0 %v531_v5  ;;  %323 = vmatpush1.bf16.msra.mxu1 %v532_v6 }
  0x13   : > { %362 = vperm.xlu0 %526, %v359_v2  }
  0x14   : > { %491 = vmatmul.mubr.msk.bf16.vlgmr.msra.gmra.mxu0 %vm263_vm0, %v238_v7  ;;  %492 = vmatmul.mubr.msk.bf16.vlgmr.msra.gmra.mxu1 %vm263_vm0, %v238_v7 }
  0x8a   : > { %v353_v8 = vpop.permute.xlu0 %352 }
  0x8e   : > { %v363_v11 = vpop.permute.xlu0 %362 }
  0xd4   : > { %v301_v9 = vpop.f32.mrf.mxu0  ;;  %v342_v10 = vpop.f32.mrf.mxu1 }
  0xd5   : > { %v355_v12 = vmul.f32 %v353_v8, %v301_v9  ;;  %v357_v13 = vmul.f32 %v353_v8, %v342_v10 }
  0xd6   : > { %v303_v14 = vpop.f32.mrf.mxu0  ;;  %v344_v15 = vpop.f32.mrf.mxu1 }
  0xd7   : > { %v365_v16 = vadd.f32 %v363_v11, %v355_v12  ;;  %v367_v17 = vadd.f32 %v363_v11, %v357_v13  ;;  %v356_v18 = vmul.f32 %v353_v8, %v303_v14  ;;  %v358_v19 = vmul.f32 %v353_v8, %v344_v15 }
  0xd8   : > { %v305_v20 = vpop.f32.mrf.mxu0  ;;  %v346_v21 = vpop.f32.mrf.mxu1 }
  0xd9   : > { %v366_v22 = vadd.f32 %v363_v11, %v356_v18  ;;  %v368_v23 = vadd.f32 %v363_v11, %v358_v19  ;;  %v369_v26 = vmax.f32 %v365_v16, 0.0  ;;  %v371_v27 = vmax.f32 %v367_v17, 0.0 }
  0xda   : > { %v306_v24 = vpop.f32.mrf.mxu0  ;;  %v347_v25 = vpop.f32.mrf.mxu1 }
  0xdb   : > { %v370_v28 = vmax.f32 %v366_v22, 0.0  ;;  %v372_v29 = vmax.f32 %v368_v23, 0.0 }
  0xdd   : > { %v499_v30 = vpack.c.bf16 %v370_v28, %v369_v26  ;;  %v500_v31 = vpack.c.bf16 %v372_v29, %v371_v27 }
  0xdf   : > { %389 = vst [vmem:[%s235_s6] sm:$0xff] %v499_v30  ;;  %390 = vst [vmem:[%s235_s6 + $0x8] sm:$0xff] %v500_v31 }
  0xe0 PF: > { %s14_s17 = sadd.s32 1, %s555_s17   ;;  %s634_s15 = smov %s551_s16 }
  0xe1   : > { %p11_p5 = scmp.ge.s32.totalorder %s14_s17, 4   ;;  %s635_s16 = smov %s637_s18 }
  0xe3   :  { %13 = sbr.rel (!%p11_p5) target bundleno = 2 (0x2), region = 66 }

// kernel: forward.17
= control target key start
LH: loop header
LB: loop body
LE: loop exit
PB: predicated region body
PF: predicated region fallthrough
CT: control target
= control target key end

     0   :  { %s811_s15 = smov 0   ;;  %s902_s0 = inlined_call_operand.vmem [shape: bf16[2,8,512], index: 0, kind: input, shape index: {}]   ;;  %s903_s1 = inlined_call_operand.vmem [shape: bf16[2,8,512], index: 1, kind: input, shape index: {}]   ;;  %s904_s2 = inlined_call_operand.vmem [shape: bf16[2,8,512], index: 2, kind: input, shape index: {}]   ;;  %s905_s3 = inlined_call_operand.vmem [shape: bf16[2,16,512], index: 3, kind: input, shape index: {}]   ;;  %s906_s4 = inlined_call_operand.vmem [shape: f32[2,16,512], index: 4, kind: output, shape index: {}]  }
   0x1 LB: > { %s720_s16 = sadd.s32 4294967295, %s784_s15   ;;  %p724_p0 = scmp.ge.s32.totalorder %s784_s15, 1  ;;  %s784_s15 = sphi %s811_s15, %s14_s15  }
   0x2   : > { %p192_p1 = scmp.lt.s32.totalorder %s784_s15, 3 }
   0x4   : > { %p193_p2 = pnand %p724_p0, %p192_p1 }
   0x5   : > { %p233_p3 = scmp.lt.s32.totalorder (!%p193_p2), %s720_s16, 1 }
   0x6   : > { %196 = sbr.rel (%p193_p2) target bundleno = 292 (0x124), region = 36 }
   0xb   : > { %s908_s16 = smov (!%p233_p3, %s720_s16), 1  ;;  %vm264_vm0 = vcmask 1047556   ;;  %vm337_vm1 = vcmask 1043456  }
   0xc   : > { %s741_s17 = sshll.u32 %s908_s16, 4  ;;  %s744_s27 = sshll.u32 %s908_s16, 5 }
   0xd   : > { %s825_s20 = scalar_lea.vmem %s904_s2, %s741_s17  ;;  %s832_s23 = scalar_lea.vmem %s902_s0, %s741_s17 }
   0xe   : > { %v292_v0 = vld [vmem:[%s825_s20] sm:$0xcc]  ;;  %v293_v1 = vld [vmem:[%s825_s20 + $0x8] sm:$0xcc]  ;;  %s843_s26 = scalar_lea.vmem %s903_s1, %s741_s17  ;;  %s252_s30 = scalar_lea.vmem %s905_s3, %s744_s27 }
   0xf   : > { %v294_v2 = vunpack.c.l.bf16 %v292_v0  ;;  %v295_v3 = vunpack.c.h.bf16 %v292_v0  ;;  %v296_v4 = vunpack.c.l.bf16 %v293_v1  ;;  %v297_v5 = vunpack.c.h.bf16 %v293_v1  ;;  %v258_v10 = vld [vmem:[%s832_s23] sm:$0xcc]  ;;  %v259_v12 = vld [vmem:[%s832_s23 + $0x8] sm:$0xcc]  ;;  %s745_s5 = sshll.u32 %s908_s16, 6 }
  0x10   : > { %v260_v14 = vunpack.c.l.bf16 %v258_v10  ;;  %v261_v15 = vunpack.c.h.bf16 %v258_v10  ;;  %v262_v17 = vunpack.c.l.bf16 %v259_v12  ;;  %v263_v18 = vunpack.c.h.bf16 %v259_v12  ;;  %v276_v19 = vld [vmem:[%s843_s26] sm:$0xcc]  ;;  %v277_v22 = vld [vmem:[%s843_s26 + $0x8] sm:$0xcc]  ;;  %v426_v10 = vld [vmem:[%s843_s26] sm:$0x33]  ;;  %s257_s8 = scalar_lea.vmem %s906_s4, %s745_s5 }
  0x11   : > { %v298_v6 = vsel %vm264_vm0, %v294_v2, 0.0  ;;  %v299_v7 = vsel %vm264_vm0, %v295_v3, 0.0  ;;  %v301_v8 = vsel %vm264_vm0, %v296_v4, 0.0  ;;  %v303_v11 = vsel %vm264_vm0, %v297_v5, 0.0  ;;  %v507_v12 = vld [vmem:[%s825_s20 + $0x8] sm:$0x33] }
  0x12   : > { %v300_v9 = vadd.f32 %v299_v7, %v298_v6  ;;  %v265_v20 = vsel %vm264_vm0, %v260_v14, 0.0  ;;  %v266_v21 = vsel %vm264_vm0, %v261_v15, 0.0  ;;  %v268_v24 = vsel %vm264_vm0, %v262_v17, 0.0  ;;  %v427_v17 = vld [vmem:[%s843_s26 + $0x8] sm:$0x33] }
  0x13   : > { %v267_v23 = vadd.f32 %v266_v21, %v265_v20  ;;  %v270_v25 = vsel %vm264_vm0, %v263_v18, 0.0  ;;  %v278_v26 = vunpack.c.l.bf16 %v276_v19  ;;  %v279_v28 = vunpack.c.h.bf16 %v276_v19 }
  0x14   : > { %v302_v13 = vadd.f32 %v301_v8, %v300_v9  ;;  %v280_v29 = vunpack.c.l.bf16 %v277_v22  ;;  %v281_v30 = vunpack.c.h.bf16 %v277_v22  ;;  %v346_v8 = vld [vmem:[%s832_s23] sm:$0x33]  ;;  %v347_v9 = vld [vmem:[%s832_s23 + $0x8] sm:$0x33]  ;;  %v428_v19 = vunpack.c.l.bf16 %v426_v10 }
  0x15   : > { %v269_v27 = vadd.f32 %v268_v24, %v267_v23  ;;  %v282_v31 = vsel %vm264_vm0, %v278_v26, 0.0  ;;  %v283_v33 = vsel %vm264_vm0, %v279_v28, 0.0  ;;  %v348_v14 = vunpack.c.l.bf16 %v346_v8 }
  0x16   : > { %v304_v16 = vadd.f32 %v303_v11, %v302_v13  ;;  %v285_v34 = vsel %vm264_vm0, %v280_v29, 0.0  ;;  %v284_v35 = vadd.f32 %v283_v33, %v282_v31  ;;  %v287_v36 = vsel %vm264_vm0, %v281_v30, 0.0  ;;  %v506_v11 = vld [vmem:[%s825_s20] sm:$0x33] }
  0x17   : > { %v271_v32 = vadd.f32 %v270_v25, %v269_v27  ;;  %v349_v15 = vunpack.c.h.bf16 %v346_v8  ;;  %v351_v18 = vunpack.c.h.bf16 %v347_v9  ;;  %v429_v20 = vunpack.c.h.bf16 %v426_v10 }
  0x18   : > { %305 = vadd.xlane.f32.xlu1 %v304_v16  ;;  %v286_v37 = vadd.f32 %v285_v34, %v284_v35  ;;  %v350_v16 = vunpack.c.l.bf16 %v347_v9  ;;  %v508_v21 = vunpack.c.l.bf16 %v506_v11  ;;  %v509_v22 = vunpack.c.h.bf16 %v506_v11 }
  0x19   : > { %272 = vadd.xlane.f32.xlu0 %v271_v32  ;;  %v510_v23 = vunpack.c.l.bf16 %v507_v12  ;;  %v511_v24 = vunpack.c.h.bf16 %v507_v12  ;;  %v430_v25 = vunpack.c.l.bf16 %v427_v17  ;;  %v431_v26 = vunpack.c.h.bf16 %v427_v17 }
  0x1a   : > { %v288_v38 = vadd.f32 %v287_v36, %v286_v37  ;;  %v356_v28 = vrot.slane %v348_v14, 4  ;;  %v357_v29 = vrot.slane %v349_v15, 4  ;;  %v358_v30 = vrot.slane %v350_v16, 4 }
  0x1b   : > { %v359_v31 = vrot.slane %v351_v18, 4  ;;  %v436_v32 = vrot.slane %v428_v19, 4  ;;  %v437_v33 = vrot.slane %v429_v20, 4  ;;  %v864_v34 = vrot.slane %v508_v21, 4 }
  0x1c   : > { %v866_v35 = vrot.slane %v509_v22, 4  ;;  %v868_v36 = vrot.slane %v510_v23, 4  ;;  %v870_v37 = vrot.slane %v511_v24, 4 }
  0x1d   : > { %289 = vadd.xlane.f32.xlu0 %v288_v38 }
  0xa1   : > { %v306_v39 = vpop.xlane.xlu1 %305 }
  0xa2   : > { %v307_v40 = vmul.f32 0.001953125, %v306_v39  ;;  %v273_v42 = vpop.xlane.xlu0 %272  ;;  %v438_v39 = vrot.slane %v430_v25, 4 }
  0xa3   : > { %v275_v44 = vmul.f32 0.001953125, %v273_v42 }
  0xa4   : > { %v323_v41 = vsel %vm264_vm0, %v307_v40, -inf }
  0xa5   : > { %v324_v43 = vrot.slane %v323_v41, 4  ;;  %v308_v45 = vsel %vm264_vm0, %v275_v44, -inf }
  0xa6   : > { %v309_v46 = vrot.slane %v308_v45, 4  ;;  %v290_v48 = vpop.xlane.xlu0 %289 }
  0xa7   : > { %v325_v47 = vmax.f32 %v323_v41, %v324_v43  ;;  %v291_v50 = vmul.f32 0.001953125, %v290_v48 }
  0xa8   : > { %v310_v49 = vmax.f32 %v308_v45, %v309_v46 }
  0xa9   : > { %v315_v52 = vsel %vm264_vm0, %v291_v50, -inf  ;;  %v326_v53 = vrot.slane %v325_v47, 2 }
  0xaa   : > { %v311_v51 = vrot.slane %v310_v49, 2  ;;  %v316_v54 = vrot.slane %v315_v52, 4 }
  0xab   : > { %v327_v57 = vmax.f32 %v325_v47, %v326_v53 }
  0xac   : > { %v312_v55 = vmax.f32 %v310_v49, %v311_v51  ;;  %v317_v56 = vmax.f32 %v315_v52, %v316_v54 }
  0xad   : > { %v328_v61 = vrot.slane %v327_v57, 1 }
  0xae   : > { %v318_v58 = vrot.slane %v317_v56, 2  ;;  %v313_v59 = vrot.slane %v312_v55, 1 }
  0xaf   : > { %v329_v1 = vmax.f32 %v327_v57, %v328_v61 }
  0xb0   : > { %v319_v60 = vmax.f32 %v317_v56, %v318_v58  ;;  %v314_v63 = vmax.f32 %v312_v55, %v313_v59 }
  0xb2   : > { %v320_v62 = vrot.slane %v319_v60, 1 }
  0xb4   : > { %v321_v0 = vmax.f32 %v319_v60, %v320_v62 }
  0xb6   : > { %v322_v2 = vmax.f32 %v314_v63, %v321_v0 }
  0xb8   : > { %v330_v3 = vmax.f32 %v322_v2, %v329_v1 }
  0xba   : > { %v331_v4 = vsub.f32 %v275_v44, %v330_v3  ;;  %v412_v5 = vsub.f32 %v291_v50, %v330_v3  ;;  %v492_v13 = vsub.f32 %v307_v40, %v330_v3  ;;  %v439_v40 = vrot.slane %v431_v26, 4 }
  0xbc   : > { %v332_v6 = vmul.f32 1.442695, %v331_v4  ;;  %v413_v7 = vmul.f32 1.442695, %v412_v5  ;;  %v493_v27 = vmul.f32 1.442695, %v492_v13 }
  0xbe   : > { %754 = vpow2.f32 %v332_v6 }
  0xbf   : > { %756 = vpow2.f32 %v413_v7 }
  0xc0   : > { %758 = vpow2.f32 %v493_v27 }
  0xcb   : > { %v755_v38 = vpop.eup %754 }
  0xcc   : > { %v757_v41 = vpop.eup %756  ;;  %v335_v42 = vrot.slane %v755_v38, 4  ;;  %v364_v43 = vmul.f32 %v755_v38, %v356_v28  ;;  %v365_v44 = vmul.f32 %v755_v38, %v357_v29  ;;  %v366_v45 = vmul.f32 %v755_v38, %v358_v30 }
  0xcd   : > { %v367_v46 = vmul.f32 %v755_v38, %v359_v31  ;;  %v416_v47 = vrot.slane %v757_v41, 4  ;;  %v444_v48 = vmul.f32 %v757_v41, %v436_v32  ;;  %v445_v49 = vmul.f32 %v757_v41, %v437_v33  ;;  %v759_v26 = vpop.eup %758 }
  0xce   : > { %v338_v50 = vsel %vm337_vm1, %v335_v42, 0.0  ;;  %v372_v51 = vrot.slane %v364_v43, 4  ;;  %v373_v52 = vrot.slane %v365_v44, 4  ;;  %v374_v53 = vrot.slane %v366_v45, 4 }
  0xcf   : > { %v339_v54 = vrot.slane %v338_v50, 4  ;;  %v375_v55 = vrot.slane %v367_v46, 4  ;;  %v418_v56 = vsel %vm337_vm1, %v416_v47, 0.0  ;;  %v446_v57 = vmul.f32 %v757_v41, %v438_v39 }
  0xd0   : > { %v380_v58 = vsel %vm337_vm1, %v372_v51, 0.0  ;;  %v387_v59 = vsel %vm337_vm1, %v373_v52, 0.0  ;;  %v394_v60 = vsel %vm337_vm1, %v374_v53, 0.0  ;;  %v419_v61 = vrot.slane %v418_v56, 4 }
  0xd1   : > { %v340_v62 = vadd.f32 %v339_v54, %v338_v50  ;;  %v381_v63 = vrot.slane %v380_v58, 4  ;;  %v388_v0 = vrot.slane %v387_v59, 4  ;;  %v395_v1 = vrot.slane %v394_v60, 4 }
  0xd2   : > { %v401_v2 = vsel %vm337_vm1, %v375_v55, 0.0  ;;  %v420_v3 = vadd.f32 %v419_v61, %v418_v56  ;;  %v447_v4 = vmul.f32 %v757_v41, %v439_v40  ;;  %v452_v5 = vrot.slane %v444_v48, 4 }
  0xd3   : > { %v341_v6 = vrot.slane %v340_v62, 2  ;;  %v382_v7 = vadd.f32 %v381_v63, %v380_v58  ;;  %v389_v8 = vadd.f32 %v388_v0, %v387_v59  ;;  %v396_v9 = vadd.f32 %v395_v1, %v394_v60 }
  0xd4   : > { %v402_v10 = vrot.slane %v401_v2, 4  ;;  %v421_v11 = vrot.slane %v420_v3, 2  ;;  %v453_v12 = vrot.slane %v445_v49, 4  ;;  %v454_v13 = vrot.slane %v446_v57, 4 }
  0xd5   : > { %v342_v14 = vadd.f32 %v341_v6, %v340_v62  ;;  %v383_v15 = vrot.slane %v382_v7, 2  ;;  %v390_v16 = vrot.slane %v389_v8, 2  ;;  %v397_v17 = vrot.slane %v396_v9, 2 }
  0xd6   : > { %v403_v18 = vadd.f32 %v402_v10, %v401_v2  ;;  %v422_v19 = vadd.f32 %v421_v11, %v420_v3  ;;  %v455_v20 = vrot.slane %v447_v4, 4  ;;  %v460_v21 = vsel %vm337_vm1, %v452_v5, 0.0 }
  0xd7   : > { %v343_v22 = vrot.slane %v342_v14, 1  ;;  %v384_v23 = vadd.f32 %v383_v15, %v382_v7  ;;  %v391_v24 = vadd.f32 %v390_v16, %v389_v8  ;;  %v398_v25 = vadd.f32 %v397_v17, %v396_v9 }
  0xd8   : > { %v404_v27 = vrot.slane %v403_v18, 2  ;;  %v423_v28 = vrot.slane %v422_v19, 1  ;;  %v461_v29 = vrot.slane %v460_v21, 4  ;;  %v467_v30 = vsel %vm337_vm1, %v453_v12, 0.0 }
  0xd9   : > { %v344_v31 = vadd.f32 %v343_v22, %v342_v14  ;;  %v385_v32 = vrot.slane %v384_v23, 1  ;;  %v392_v33 = vrot.slane %v391_v24, 1  ;;  %v399_v38 = vrot.slane %v398_v25, 1 }
  0xda   : > { %v405_v39 = vadd.f32 %v404_v27, %v403_v18  ;;  %v424_v40 = vadd.f32 %v423_v28, %v422_v19  ;;  %v462_v41 = vadd.f32 %v461_v29, %v460_v21  ;;  %v468_v42 = vrot.slane %v467_v30, 4 }
  0xdb   : > { %v386_v43 = vadd.f32 %v385_v32, %v384_v23  ;;  %v393_v44 = vadd.f32 %v392_v33, %v391_v24  ;;  %v400_v45 = vadd.f32 %v399_v38, %v398_v25  ;;  %v474_v46 = vsel %vm337_vm1, %v454_v13, 0.0 }
  0xdc   : > { %v406_v47 = vrot.slane %v405_v39, 1  ;;  %v425_v48 = vadd.f32 %v424_v40, %v344_v31  ;;  %v463_v49 = vrot.slane %v462_v41, 2  ;;  %v469_v50 = vadd.f32 %v468_v42, %v467_v30 }
  0xdd   : > { %v475_v51 = vrot.slane %v474_v46, 4  ;;  %v481_v52 = vsel %vm337_vm1, %v455_v20, 0.0  ;;  %v496_v53 = vrot.slane %v759_v26, 4  ;;  %v524_v54 = vmul.f32 %v759_v26, %v864_v34 }
  0xde   : > { %v407_v55 = vadd.f32 %v406_v47, %v405_v39  ;;  %v464_v56 = vadd.f32 %v463_v49, %v462_v41  ;;  %v470_v57 = vrot.slane %v469_v50, 2  ;;  %v482_v58 = vrot.slane %v481_v52, 4 }
  0xdf   : > { %v476_v59 = vadd.f32 %v475_v51, %v474_v46  ;;  %v498_v60 = vsel %vm337_vm1, %v496_v53, 0.0  ;;  %v525_v61 = vmul.f32 %v759_v26, %v866_v35  ;;  %v526_v62 = vmul.f32 %v759_v26, %v868_v36 }
  0xe0   : > { %v465_v63 = vrot.slane %v464_v56, 1  ;;  %v471_v0 = vadd.f32 %v470_v57, %v469_v50  ;;  %v483_v1 = vadd.f32 %v482_v58, %v481_v52  ;;  %v499_v2 = vrot.slane %v498_v60, 4 }
  0xe1   : > { %v477_v3 = vrot.slane %v476_v59, 2  ;;  %v527_v4 = vmul.f32 %v759_v26, %v870_v37  ;;  %v532_v5 = vrot.slane %v524_v54, 4  ;;  %v533_v34 = vrot.slane %v525_v61, 4 }
  0xe2   : > { %v466_v6 = vadd.f32 %v465_v63, %v464_v56  ;;  %v472_v7 = vrot.slane %v471_v0, 1  ;;  %v484_v8 = vrot.slane %v483_v1, 2  ;;  %v500_v9 = vadd.f32 %v499_v2, %v498_v60 }
  0xe3   : > { %v478_v10 = vadd.f32 %v477_v3, %v476_v59  ;;  %v534_v11 = vrot.slane %v526_v62, 4  ;;  %v535_v12 = vrot.slane %v527_v4, 4  ;;  %v540_v35 = vsel %vm337_vm1, %v532_v5, 0.0 }
  0xe4   : > { %v473_v13 = vadd.f32 %v472_v7, %v471_v0  ;;  %v485_v36 = vadd.f32 %v484_v8, %v483_v1  ;;  %v488_v14 = vadd.f32 %v466_v6, %v386_v43  ;;  %v501_v15 = vrot.slane %v500_v9, 2 }
  0xe5   : > { %v479_v16 = vrot.slane %v478_v10, 1  ;;  %v541_v17 = vrot.slane %v540_v35, 4  ;;  %v547_v18 = vsel %vm337_vm1, %v533_v34, 0.0  ;;  %v554_v37 = vsel %vm337_vm1, %v534_v11, 0.0 }
  0xe6   : > { %v486_v19 = vrot.slane %v485_v36, 1  ;;  %v489_v20 = vadd.f32 %v473_v13, %v393_v44  ;;  %v502_v21 = vadd.f32 %v501_v15, %v500_v9  ;;  %v548_v22 = vrot.slane %v547_v18, 4  ;;  %v603_v13 = vld [vmem:[%s252_s30 + $0x10] sm:$0xff] }
  0xe7   : > { %v480_v23 = vadd.f32 %v479_v16, %v478_v10  ;;  %v542_v24 = vadd.f32 %v541_v17, %v540_v35  ;;  %v555_v25 = vrot.slane %v554_v37, 4  ;;  %v561_v26 = vsel %vm337_vm1, %v535_v12, 0.0  ;;  %v601_v35 = vld [vmem:[%s252_s30] sm:$0xff] }
  0xe8   : > { %v487_v27 = vadd.f32 %v486_v19, %v485_v36  ;;  %v503_v28 = vrot.slane %v502_v21, 1  ;;  %v549_v29 = vadd.f32 %v548_v22, %v547_v18  ;;  %v562_v30 = vrot.slane %v561_v26, 4  ;;  %v602_v36 = vld [vmem:[%s252_s30 + $0x8] sm:$0xff] }
  0xe9   : > { %v490_v31 = vadd.f32 %v480_v23, %v400_v45  ;;  %v543_v32 = vrot.slane %v542_v24, 2  ;;  %v556_v33 = vadd.f32 %v555_v25, %v554_v37  ;;  %v605_v15 = vunpack.c.l.bf16 %v601_v35 }
  0xea   : > { %v491_v38 = vadd.f32 %v487_v27, %v407_v55  ;;  %v504_v39 = vadd.f32 %v503_v28, %v502_v21  ;;  %v550_v40 = vrot.slane %v549_v29, 2  ;;  %v563_v41 = vadd.f32 %v562_v30, %v561_v26 }
  0xeb   : > { %v544_v42 = vadd.f32 %v543_v32, %v542_v24  ;;  %v557_v43 = vrot.slane %v556_v33, 2  ;;  %v609_v16 = vunpack.c.l.bf16 %v603_v13  ;;  %v606_v17 = vunpack.c.h.bf16 %v601_v35 }
  0xec   : > { %v505_v44 = vadd.f32 %v504_v39, %v425_v48  ;;  %v551_v46 = vadd.f32 %v550_v40, %v549_v29  ;;  %v564_v47 = vrot.slane %v563_v41, 2  ;;  %v610_v18 = vunpack.c.h.bf16 %v603_v13 }
  0xed   : > { %v545_v49 = vrot.slane %v544_v42, 1  ;;  %v558_v50 = vadd.f32 %v557_v43, %v556_v33  ;;  %v607_v37 = vunpack.c.l.bf16 %v602_v36  ;;  %v608_v21 = vunpack.c.h.bf16 %v602_v36 }
  0xee   : > { %v552_v51 = vrot.slane %v551_v46, 1  ;;  %v565_v52 = vadd.f32 %v564_v47, %v563_v41  ;;  %760 = vrcp.f32 %v505_v44 }
  0xef   : > { %v546_v53 = vadd.f32 %v545_v49, %v544_v42  ;;  %v559_v54 = vrot.slane %v558_v50, 1 }
  0xf0   : > { %v553_v56 = vadd.f32 %v552_v51, %v551_v46  ;;  %v566_v45 = vrot.slane %v565_v52, 1 }
  0xf1   : > { %v560_v57 = vadd.f32 %v559_v54, %v558_v50  ;;  %v568_v58 = vadd.f32 %v546_v53, %v488_v14  ;;  %v604_v14 = vld [vmem:[%s252_s30 + $0x18] sm:$0xff] }
  0xf2   : > { %v567_v55 = vadd.f32 %v566_v45, %v565_v52  ;;  %v569_v59 = vadd.f32 %v553_v56, %v489_v20  ;;  %v611_v19 = vunpack.c.l.bf16 %v604_v14  ;;  %v612_v22 = vunpack.c.h.bf16 %v604_v14 }
  0xf3   : > { %v570_v60 = vadd.f32 %v560_v57, %v490_v31 }
  0xf4   : > { %v571_v61 = vadd.f32 %v567_v55, %v491_v38 }
  0xfb   : > { %v761_v62 = vpop.eup %760 }
  0xfc   : > { %v573_v63 = vmul.f32 %v761_v62, %v568_v58  ;;  %v574_v48 = vmul.f32 %v761_v62, %v569_v59  ;;  %v575_v0 = vmul.f32 %v761_v62, %v570_v60  ;;  %v576_v1 = vmul.f32 %v761_v62, %v571_v61 }
  0xfe   : > { %v735_v2 = vmul.f32 -1.442695, %v573_v63  ;;  %v736_v3 = vmul.f32 -1.442695, %v574_v48  ;;  %v737_v4 = vmul.f32 -1.442695, %v575_v0 }
  0xff   : > { %v738_v5 = vmul.f32 -1.442695, %v576_v1 }
 0x100   : > { %762 = vpow2.f32 %v735_v2 }
 0x101   : > { %764 = vpow2.f32 %v736_v3 }
 0x102   : > { %766 = vpow2.f32 %v737_v4 }
 0x103   : > { %768 = vpow2.f32 %v738_v5 }
 0x10d   : > { %v763_v34 = vpop.eup %762 }
 0x10e   : > { %v765_v6 = vpop.eup %764  ;;  %v589_v7 = vadd.f32 1.0, %v763_v34 }
 0x10f   : > { %v767_v8 = vpop.eup %766  ;;  %v590_v9 = vadd.f32 1.0, %v765_v6 }
 0x110   : > { %v769_v10 = vpop.eup %768  ;;  %v591_v11 = vadd.f32 1.0, %v767_v8  ;;  %770 = vrcp.f32 %v589_v7 }
 0x111   : > { %v592_v12 = vadd.f32 1.0, %v769_v10  ;;  %772 = vrcp.f32 %v590_v9 }
 0x112   : > { %774 = vrcp.f32 %v591_v11 }
 0x113   : > { %776 = vrcp.f32 %v592_v12 }
 0x11d   : > { %v771_v20 = vpop.eup %770 }
 0x11e   : > { %v773_v23 = vpop.eup %772  ;;  %v613_v24 = vmul.f32 %v771_v20, %v605_v15  ;;  %v617_v25 = vmul.f32 %v771_v20, %v609_v16 }
 0x11f   : > { %v775_v26 = vpop.eup %774  ;;  %v614_v27 = vmul.f32 %v773_v23, %v606_v17  ;;  %v618_v28 = vmul.f32 %v773_v23, %v610_v18 }
 0x120   : > { %v777_v29 = vpop.eup %776  ;;  %v615_v30 = vmul.f32 %v775_v26, %v607_v37  ;;  %v619_v31 = vmul.f32 %v775_v26, %v611_v19  ;;  %621 = vst [vmem:[%s257_s8] sm:$0xff] %v613_v24  ;;  %625 = vst [vmem:[%s257_s8 + $0x20] sm:$0xff] %v617_v25 }
 0x121   : > { %v616_v32 = vmul.f32 %v777_v29, %v608_v21  ;;  %v620_v33 = vmul.f32 %v777_v29, %v612_v22  ;;  %622 = vst [vmem:[%s257_s8 + $0x8] sm:$0xff] %v614_v27  ;;  %626 = vst [vmem:[%s257_s8 + $0x28] sm:$0xff] %v618_v28 }
 0x122   : > { %623 = vst [vmem:[%s257_s8 + $0x10] sm:$0xff] %v615_v30  ;;  %627 = vst [vmem:[%s257_s8 + $0x30] sm:$0xff] %v619_v31 }
 0x123   : > { %624 = vst [vmem:[%s257_s8 + $0x18] sm:$0xff] %v616_v32  ;;  %628 = vst [vmem:[%s257_s8 + $0x38] sm:$0xff] %v620_v33 }
 0x124 PF: > { %s14_s15 = sadd.s32 1, %s784_s15  }
 0x125   : > { %p11_p4 = scmp.ge.s32.totalorder %s14_s15, 4  }
 0x127   :  { %13 = sbr.rel (!%p11_p4) target bundleno = 1 (0x1), region = 75 }

</bundles_post_ra>
